<compile_context>
chip_gen: v7x
topology: tpu7x:2x2x1
jax: 0.10.0
libtpu: 0.0.40
codegen_flags: <defaults>
</compile_context>

<pallas_src>
import numpy as np
import jax
import jax.numpy as jnp
from jax import lax
from jax.experimental import pallas as pl
from jax.experimental.pallas import tpu as pltpu

jax.config.update("jax_default_matmul_precision", "highest")

# ---------------------------------------------------------------------------
# Problem sizes (small, TPU-friendly synthetic mesh; module defaults for MLP).
# ---------------------------------------------------------------------------
B = 2              # batch
V = 128            # vertices (lane axis)
F = 256            # faces
K = 6              # faces incident to each vertex (vfids width)
IN_CH = 3          # dfeat channels
HD_CH = 64         # hidden width of gating MLP (module default)
PROJ_CH = 64       # projection channels (module default)
C1 = IN_CH + 1     # dfeat channels + 1 area channel

# Parameter-slab layout: one lane-dense (SLAB_ROWS, V) f32 operand holding every
# small parameter, so the kernel needs a single unmasked DMA instead of 7 tiny ones.
#   rows 0..HD_CH-1 , lanes 0..IN_CH-1 : linear.weight[:, :3]   (dfeat columns)
#   rows 0..HD_CH-1 , lane  IN_CH      : linear.weight[:, 3]    (darea column)
#   rows 0..HD_CH-1 , lane  IN_CH+1    : linear.bias
#   rows 0..PROJ-1  , lanes 8..10      : proj.weight
#   rows 0..PROJ-1  , lane  11         : proj.bias
#   row  AREA0_ROW  , lanes 0..V-1     : area0
#   row  W3_ROW     , lanes 0..HD_CH-1 : linear3.weight
#   row  B3_ROW     , lane  0          : linear3.bias
PARAM_BASE = max(HD_CH, PROJ_CH)           # 64 (multiple of 8)
WP_COL = 8
AREA0_ROW = PARAM_BASE
W3_ROW = PARAM_BASE + 1
B3_ROW = PARAM_BASE + 2
SLAB_ROWS = PARAM_BASE + 8                 # 72


# ---------------------------------------------------------------------------
# Fused kernel: geometry (sublane-folded batch) + gating MLP (lane-folded batch).
# ---------------------------------------------------------------------------
def _guided_att_kernel(vnew_ref, dfeat_ref, gdiff_ref, winc_ref, slab_ref, o_ref):
    hi = lax.Precision.HIGHEST

    # ---- geometry: unit vertices, batch stacked on the sublane axis --------
    v = vnew_ref[...]                                               # (B*3, V)
    u_parts = []
    for b in range(B):                                              # static unroll, B=2
        vb = v[3 * b:3 * b + 3, :]                                  # (3, V)
        inv = lax.rsqrt(jnp.sum(vb * vb, axis=0, keepdims=True))    # (1, V)
        u_parts.append(vb * inv)
    u = jnp.concatenate(u_parts, axis=0)                            # (B*3, V)

    # e = [ua-ub | ua-uc] for every (batch, face): ONE MXU matmul against the
    # signed incidence matrix (the gather is linear, so normalize-then-gather is exact).
    gdiff = gdiff_ref[...].astype(jnp.float32)                      # bf16 0/+-1 -> f32 (exact)
    e = jnp.dot(u, gdiff, precision=hi,
                preferred_element_type=jnp.float32)                 # (B*3, 2F)

    farea_rows = []
    for b in range(B):
        e1 = e[3 * b:3 * b + 3, :F]                                 # (3, F) = a - b
        e2 = e[3 * b:3 * b + 3, F:]                                 # (3, F) = a - c
        nx = e1[1:2] * e2[2:3] - e1[2:3] * e2[1:2]
        ny = e1[2:3] * e2[0:1] - e1[0:1] * e2[2:3]
        nz = e1[0:1] * e2[1:2] - e1[1:2] * e2[0:1]
        farea_rows.append(jnp.sqrt(nx * nx + ny * ny + nz * nz))    # (1, F)
    farea = jnp.concatenate(farea_rows, axis=0)                     # (B, F)

    # vfids multiplicity sum (+ pentagon fixup baked into row 0 of winc); /6 stays
    # in f32 here because 1/6 is not exactly representable in bf16.
    winc = winc_ref[...].astype(jnp.float32)                        # (F, V) integer weights
    area0 = slab_ref[AREA0_ROW:AREA0_ROW + 1, :]                    # (1, V)
    darea = (jnp.dot(farea, winc, precision=hi,
                     preferred_element_type=jnp.float32) * (1.0 / 6.0)
             - area0)                                               # (B, V)
    # fold the batch onto the lane axis for the MLP (128-aligned lane concat, cheap)
    darea_row = jnp.concatenate([darea[b:b + 1, :] for b in range(B)], axis=1)  # (1, B*V)

    # ---- gating MLP + projection: the whole batch rides the lane axis ------
    dfeat = dfeat_ref[...]                                          # (IN_CH, B*V)
    w1c = slab_ref[0:HD_CH, 0:IN_CH]                                # (HD, 3)
    w1a = slab_ref[0:HD_CH, IN_CH:IN_CH + 1]                        # (HD, 1) darea column
    b1 = slab_ref[0:HD_CH, IN_CH + 1:IN_CH + 2]                     # (HD, 1)
    wp = slab_ref[0:PROJ_CH, WP_COL:WP_COL + IN_CH]                 # (PROJ, 3)
    bp = slab_ref[0:PROJ_CH, WP_COL + IN_CH:WP_COL + IN_CH + 1]     # (PROJ, 1)
    w3 = slab_ref[W3_ROW:W3_ROW + 1, 0:HD_CH]                       # (1, HD)
    b3 = slab_ref[B3_ROW:B3_ROW + 1, 0:1]                           # (1, 1)

    h = jnp.tanh(jnp.dot(w1c, dfeat, precision=hi,
                         preferred_element_type=jnp.float32)
                 + w1a * darea_row + b1)                            # (HD, B*V)
    logits = jnp.dot(w3, h, precision=hi,
                     preferred_element_type=jnp.float32) + b3       # (1, B*V)
    sa = pl.reciprocal(1.0 + jnp.exp(-logits), approx=False)        # sigmoid gate

    gated = sa * dfeat                                              # (IN_CH, B*V)
    y = jnp.dot(wp, gated, precision=hi,
                preferred_element_type=jnp.float32) + bp            # (PROJ, B*V)
    y = jnp.maximum(y, 0.0)                                         # ReLU

    for b in range(B):                                              # 128-aligned unmasked stores
        o_ref[b] = y[:, b * V:(b + 1) * V]


# ---------------------------------------------------------------------------
# Wrapper: one pallas_call (single grid step) = the whole GuidedAtt.forward.
# ---------------------------------------------------------------------------
def guided_att_forward(vnew, dfeat, gdiff, winc, slab):
    assert vnew.shape == (B, V, 3) and dfeat.shape == (B, IN_CH, V)

    # Layout plumbing only (tiny copies): geometry wants (B*3, V) with V on the
    # lane axis; the MLP wants (C, B*V) so the whole batch fills 256 lanes.
    vnew_s = jnp.transpose(vnew, (0, 2, 1)).reshape(B * 3, V)
    dfeat_s = jnp.transpose(dfeat, (1, 0, 2)).reshape(IN_CH, B * V)

    flops = int(2 * (B * 3) * V * (2 * F)                 # edge-gather matmul
                + 2 * B * F * V                           # area-incidence matmul
                + 2 * B * V * (HD_CH * IN_CH + HD_CH + PROJ_CH * IN_CH)
                + 25 * B * F + 8 * B * V * HD_CH)         # cross products / gating elementwise
    transcendentals = int(B * V * (HD_CH + 3) + 2 * B * F)
    bytes_accessed = int(vnew_s.size * 4 + dfeat_s.size * 4 + gdiff.size * 2
                         + winc.size * 2 + slab.size * 4 + B * PROJ_CH * V * 4)

    return pl.pallas_call(
        _guided_att_kernel,
        out_shape=jax.ShapeDtypeStruct((B, PROJ_CH, V), jnp.float32),
        grid=(1,),
        in_specs=[
            pl.BlockSpec((B * 3, V), lambda i: (0, 0)),          # stacked vertices
            pl.BlockSpec((IN_CH, B * V), lambda i: (0, 0)),      # dfeat, lane-folded
            pl.BlockSpec((V, 2 * F), lambda i: (0, 0)),          # signed edge-gather (bf16)
            pl.BlockSpec((F, V), lambda i: (0, 0)),              # vfids multiplicities (bf16)
            pl.BlockSpec((SLAB_ROWS, V), lambda i: (0, 0)),      # packed params + area0
        ],
        out_specs=pl.BlockSpec((B, PROJ_CH, V), lambda i: (0, 0, 0)),
        # Single step on one TensorCore: with B=2 a grid=(B,) "parallel" split
        # would duplicate the ~200 KB constant DMA per core for ~1 us of work;
        # revisit the 2-TC split only if B grows (perf-review item 2).
        compiler_params=pltpu.CompilerParams(dimension_semantics=("arbitrary",)),
        cost_estimate=pl.CostEstimate(flops=flops, transcendentals=transcendentals,
                                      bytes_accessed=bytes_accessed),
    )(vnew_s, dfeat_s, gdiff, winc, slab)


# ---------------------------------------------------------------------------
# Host-side, once-per-mesh precompute (topology constants of the module).
# ---------------------------------------------------------------------------
def build_topology(f0, vfids):
    """Builds the signed edge-gather matrix and the vfids incidence matrix.

    NOTE(scale): this dense-incidence formulation is O(V*F) in HBM/VMEM; ideal at
    this synthetic size, but past V*F of a few million (v7x: 64 MiB VMEM) it must
    be replaced by a scalar-prefetch gather (f0/vfids tables in SMEM driving
    index_maps / manual DMA) or an F-tiled grid axis marked "arbitrary".
    """
    f0 = np.asarray(f0)
    vfids = np.asarray(vfids)
    fc = f0.shape[0]
    cols = np.arange(fc)

    # gdiff: u @ gdiff = [ua-ub | ua-uc]  (add.at so degenerate faces cancel to 0)
    gdiff = np.zeros((V, 2 * fc), np.float32)
    np.add.at(gdiff, (f0[:, 0], cols), 1.0)
    np.add.at(gdiff, (f0[:, 1], cols), -1.0)
    np.add.at(gdiff, (f0[:, 0], fc + cols), 1.0)
    np.add.at(gdiff, (f0[:, 2], fc + cols), -1.0)

    # winc: farea @ winc = sum_k farea[vfids[v,k]] - [v<12]*farea[0]
    # (integer multiplicities; the /6 scale is applied in f32 inside the kernel)
    winc = np.zeros((fc, V), np.float32)
    rows = np.arange(V)
    for k in range(vfids.shape[1]):
        np.add.at(winc, (vfids[:, k], rows), 1.0)
    winc[0, :12] -= 1.0

    # entries are exact small integers -> bf16 storage is lossless, halves HBM traffic
    return jnp.asarray(gdiff, jnp.bfloat16), jnp.asarray(winc, jnp.bfloat16)


def pack_params(w1, b1, w3, b3, wp, bp, area0):
    slab = np.zeros((SLAB_ROWS, V), np.float32)
    slab[:HD_CH, 0:IN_CH] = w1[:, :IN_CH]
    slab[:HD_CH, IN_CH] = w1[:, IN_CH]
    slab[:HD_CH, IN_CH + 1] = b1
    slab[:PROJ_CH, WP_COL:WP_COL + IN_CH] = wp
    slab[:PROJ_CH, WP_COL + IN_CH] = bp
    slab[AREA0_ROW, :] = area0
    slab[W3_ROW, :HD_CH] = w3[0]
    slab[B3_ROW, 0] = np.asarray(b3).reshape(-1)[0]
    return jnp.asarray(slab)


# ---------------------------------------------------------------------------
# Pure-JAX reference (mirrors the PyTorch module) for correctness checking.
# ---------------------------------------------------------------------------
def reference_forward(vnew, dfeat, f0, vfids, area0, raw_params):
    w1, b1, w3, b3, wp, bp = raw_params
    u = vnew / jnp.linalg.norm(vnew, axis=-1, keepdims=True)
    a = u[:, f0[:, 0], :]
    b = u[:, f0[:, 1], :]
    c = u[:, f0[:, 2], :]
    normal = jnp.cross(a - b, a - c)
    farea = jnp.linalg.norm(normal, axis=-1)              # (B, F)
    vareas = farea[:, vfids]                              # (B, V, K)
    varea = jnp.sum(vareas, axis=-1)
    varea = varea.at[:, :12].add(-farea[:, 0:1])
    varea = varea / 6.0
    darea = varea - area0[None, :]                        # (B, V)
    dfeat_t = jnp.transpose(dfeat, (0, 2, 1))             # (B, V, IN_CH)
    df = jnp.concatenate([dfeat_t, darea[..., None]], axis=-1)
    h = jnp.tanh(df @ w1.T + b1)
    sa = jax.nn.sigmoid(h @ w3.T + b3)
    y = jnp.maximum((sa * dfeat_t) @ wp.T + bp, 0.0)
    return jnp.transpose(y, (0, 2, 1))                    # (B, PROJ_CH, V)


if __name__ == "__main__":
    key = jax.random.PRNGKey(0)
    ks = jax.random.split(key, 12)

    # Synthetic mesh / buffers (stand-ins for f0, area0, model_files/vfids.npy).
    vnew = jax.random.normal(ks[0], (B, V, 3), jnp.float32) + 2.0   # away from origin
    dfeat = jax.random.normal(ks[1], (B, IN_CH, V), jnp.float32)
    f0 = jax.random.randint(ks[2], (F, 3), 0, V, dtype=jnp.int32)
    vfids = jax.random.randint(ks[3], (V, K), 0, F, dtype=jnp.int32)
    area0 = jax.random.uniform(ks[4], (V,), jnp.float32)

    # nn.Linear layout: weight (out_features, in_features), y = x @ W.T + b.
    w1 = jax.random.normal(ks[5], (HD_CH, C1), jnp.float32) * 0.3
    b1 = jax.random.normal(ks[6], (HD_CH,), jnp.float32) * 0.1
    w3 = jax.random.normal(ks[7], (1, HD_CH), jnp.float32) * 0.3
    b3 = jax.random.normal(ks[8], (1,), jnp.float32) * 0.1
    wp = jax.random.normal(ks[9], (PROJ_CH, IN_CH), jnp.float32) * 0.3
    bp = jax.random.normal(ks[10], (PROJ_CH,), jnp.float32) * 0.1

    gdiff, winc = build_topology(np.asarray(f0), np.asarray(vfids))
    slab = pack_params(np.asarray(w1), np.asarray(b1), np.asarray(w3),
                       np.asarray(b3), np.asarray(wp), np.asarray(bp),
                       np.asarray(area0))

    out = jax.block_until_ready(guided_att_forward(vnew, dfeat, gdiff, winc, slab))
    ref = jax.block_until_ready(
        reference_forward(vnew, dfeat, f0, vfids, area0, (w1, b1, w3, b3, wp, bp)))

    assert out.shape == (B, PROJ_CH, V), out.shape
    max_err = float(np.max(np.abs(np.asarray(out) - np.asarray(ref))))
    assert np.allclose(np.asarray(out), np.asarray(ref), rtol=1e-4, atol=1e-4), max_err
    print("KERNEL_OK")
</pallas_src>

<mosaic_0001>
module attributes {stable_mosaic.version = 11 : i64} {
  func.func @_guided_att_kernel(%arg0: i32, %arg1: memref<6x128xf32, #tpu.memory_space<vmem>>, %arg2: memref<3x256xf32, #tpu.memory_space<vmem>>, %arg3: memref<128x512xbf16, #tpu.memory_space<vmem>>, %arg4: memref<256x128xbf16, #tpu.memory_space<vmem>>, %arg5: memref<72x128xf32, #tpu.memory_space<vmem>>, %arg6: memref<2x64x128xf32, #tpu.memory_space<vmem>>) attributes {dimension_semantics = [#tpu.dimension_semantics<arbitrary>], iteration_bounds = array<i64: 1>, scalar_prefetch = 0 : i64, scratch_operands = 0 : i64, tpu.core_type = #tpu.core_type<tc>, window_params = [{pipeline_mode = #tpu.pipeline_mode<synchronous>, transform_indices = @transform_0, window_bounds = array<i64: 6, 128>}, {pipeline_mode = #tpu.pipeline_mode<synchronous>, transform_indices = @transform_1, window_bounds = array<i64: 3, 256>}, {pipeline_mode = #tpu.pipeline_mode<synchronous>, transform_indices = @transform_2, window_bounds = array<i64: 128, 512>}, {pipeline_mode = #tpu.pipeline_mode<synchronous>, transform_indices = @transform_3, window_bounds = array<i64: 256, 128>}, {pipeline_mode = #tpu.pipeline_mode<synchronous>, transform_indices = @transform_4, window_bounds = array<i64: 72, 128>}, {pipeline_mode = #tpu.pipeline_mode<synchronous>, transform_indices = @transform_5, window_bounds = array<i64: 2, 64, 128>}]} {
    %c0 = arith.constant 0 : index
    %c0_0 = arith.constant 0 : index
    %0 = vector.load %arg1[%c0, %c0_0] : memref<6x128xf32, #tpu.memory_space<vmem>>, vector<6x128xf32>
    %1 = vector.extract_strided_slice %0 {offsets = [0, 0], sizes = [3, 128], strides = [1, 1]} : vector<6x128xf32> to vector<3x128xf32>
    %2 = arith.mulf %1, %1 : vector<3x128xf32>
    %cst = arith.constant dense<0.000000e+00> : vector<128xf32>
    %3 = vector.multi_reduction <add>, %2, %cst [0] : vector<3x128xf32> to vector<128xf32>
    %4 = vector.shape_cast %3 : vector<128xf32> to vector<1x128xf32>
    %5 = math.rsqrt %4 : vector<1x128xf32>
    %6 = vector.broadcast %5 : vector<1x128xf32> to vector<3x128xf32>
    %7 = arith.mulf %1, %6 : vector<3x128xf32>
    %8 = vector.extract_strided_slice %0 {offsets = [3, 0], sizes = [3, 128], strides = [1, 1]} : vector<6x128xf32> to vector<3x128xf32>
    %9 = arith.mulf %8, %8 : vector<3x128xf32>
    %cst_1 = arith.constant dense<0.000000e+00> : vector<128xf32>
    %10 = vector.multi_reduction <add>, %9, %cst_1 [0] : vector<3x128xf32> to vector<128xf32>
    %11 = vector.shape_cast %10 : vector<128xf32> to vector<1x128xf32>
    %12 = math.rsqrt %11 : vector<1x128xf32>
    %13 = vector.broadcast %12 : vector<1x128xf32> to vector<3x128xf32>
    %14 = arith.mulf %8, %13 : vector<3x128xf32>
    %15 = tpu.concatenate %7, %14 in 0 : vector<3x128xf32>, vector<3x128xf32> -> vector<6x128xf32>
    %c0_2 = arith.constant 0 : index
    %c0_3 = arith.constant 0 : index
    %16 = vector.load %arg3[%c0_2, %c0_3] : memref<128x512xbf16, #tpu.memory_space<vmem>>, vector<128x512xbf16>
    %17 = arith.extf %16 : vector<128x512xbf16> to vector<128x512xf32>
    %cst_4 = arith.constant dense<0.000000e+00> : vector<6x512xf32>
    %18 = tpu.matmul %15, %17, %cst_4 {dimension_numbers = #tpu.dot_dimension_numbers<[1], [0], [0], [1], [0, 0, 1, 1], [], []>, precision = #tpu.contract_precision<fp32>} : vector<6x128xf32>, vector<128x512xf32>, vector<6x512xf32> -> vector<6x512xf32>
    %19 = vector.extract_strided_slice %18 {offsets = [0, 0], sizes = [3, 256], strides = [1, 1]} : vector<6x512xf32> to vector<3x256xf32>
    %20 = vector.extract_strided_slice %18 {offsets = [0, 256], sizes = [3, 256], strides = [1, 1]} : vector<6x512xf32> to vector<3x256xf32>
    %21 = vector.extract_strided_slice %19 {offsets = [1, 0], sizes = [1, 256], strides = [1, 1]} : vector<3x256xf32> to vector<1x256xf32>
    %22 = vector.extract_strided_slice %20 {offsets = [2, 0], sizes = [1, 256], strides = [1, 1]} : vector<3x256xf32> to vector<1x256xf32>
    %23 = arith.mulf %21, %22 : vector<1x256xf32>
    %24 = vector.extract_strided_slice %19 {offsets = [2, 0], sizes = [1, 256], strides = [1, 1]} : vector<3x256xf32> to vector<1x256xf32>
    %25 = vector.extract_strided_slice %20 {offsets = [1, 0], sizes = [1, 256], strides = [1, 1]} : vector<3x256xf32> to vector<1x256xf32>
    %26 = arith.mulf %24, %25 : vector<1x256xf32>
    %27 = arith.subf %23, %26 : vector<1x256xf32>
    %28 = vector.extract_strided_slice %19 {offsets = [2, 0], sizes = [1, 256], strides = [1, 1]} : vector<3x256xf32> to vector<1x256xf32>
    %29 = vector.extract_strided_slice %20 {offsets = [0, 0], sizes = [1, 256], strides = [1, 1]} : vector<3x256xf32> to vector<1x256xf32>
    %30 = arith.mulf %28, %29 : vector<1x256xf32>
    %31 = vector.extract_strided_slice %19 {offsets = [0, 0], sizes = [1, 256], strides = [1, 1]} : vector<3x256xf32> to vector<1x256xf32>
    %32 = vector.extract_strided_slice %20 {offsets = [2, 0], sizes = [1, 256], strides = [1, 1]} : vector<3x256xf32> to vector<1x256xf32>
    %33 = arith.mulf %31, %32 : vector<1x256xf32>
    %34 = arith.subf %30, %33 : vector<1x256xf32>
    %35 = vector.extract_strided_slice %19 {offsets = [0, 0], sizes = [1, 256], strides = [1, 1]} : vector<3x256xf32> to vector<1x256xf32>
    %36 = vector.extract_strided_slice %20 {offsets = [1, 0], sizes = [1, 256], strides = [1, 1]} : vector<3x256xf32> to vector<1x256xf32>
    %37 = arith.mulf %35, %36 : vector<1x256xf32>
    %38 = vector.extract_strided_slice %19 {offsets = [1, 0], sizes = [1, 256], strides = [1, 1]} : vector<3x256xf32> to vector<1x256xf32>
    %39 = vector.extract_strided_slice %20 {offsets = [0, 0], sizes = [1, 256], strides = [1, 1]} : vector<3x256xf32> to vector<1x256xf32>
    %40 = arith.mulf %38, %39 : vector<1x256xf32>
    %41 = arith.subf %37, %40 : vector<1x256xf32>
    %42 = arith.mulf %27, %27 : vector<1x256xf32>
    %43 = arith.mulf %34, %34 : vector<1x256xf32>
    %44 = arith.addf %42, %43 : vector<1x256xf32>
    %45 = arith.mulf %41, %41 : vector<1x256xf32>
    %46 = arith.addf %44, %45 : vector<1x256xf32>
    %47 = math.sqrt %46 : vector<1x256xf32>
    %48 = vector.extract_strided_slice %18 {offsets = [3, 0], sizes = [3, 256], strides = [1, 1]} : vector<6x512xf32> to vector<3x256xf32>
    %49 = vector.extract_strided_slice %18 {offsets = [3, 256], sizes = [3, 256], strides = [1, 1]} : vector<6x512xf32> to vector<3x256xf32>
    %50 = vector.extract_strided_slice %48 {offsets = [1, 0], sizes = [1, 256], strides = [1, 1]} : vector<3x256xf32> to vector<1x256xf32>
    %51 = vector.extract_strided_slice %49 {offsets = [2, 0], sizes = [1, 256], strides = [1, 1]} : vector<3x256xf32> to vector<1x256xf32>
    %52 = arith.mulf %50, %51 : vector<1x256xf32>
    %53 = vector.extract_strided_slice %48 {offsets = [2, 0], sizes = [1, 256], strides = [1, 1]} : vector<3x256xf32> to vector<1x256xf32>
    %54 = vector.extract_strided_slice %49 {offsets = [1, 0], sizes = [1, 256], strides = [1, 1]} : vector<3x256xf32> to vector<1x256xf32>
    %55 = arith.mulf %53, %54 : vector<1x256xf32>
    %56 = arith.subf %52, %55 : vector<1x256xf32>
    %57 = vector.extract_strided_slice %48 {offsets = [2, 0], sizes = [1, 256], strides = [1, 1]} : vector<3x256xf32> to vector<1x256xf32>
    %58 = vector.extract_strided_slice %49 {offsets = [0, 0], sizes = [1, 256], strides = [1, 1]} : vector<3x256xf32> to vector<1x256xf32>
    %59 = arith.mulf %57, %58 : vector<1x256xf32>
    %60 = vector.extract_strided_slice %48 {offsets = [0, 0], sizes = [1, 256], strides = [1, 1]} : vector<3x256xf32> to vector<1x256xf32>
    %61 = vector.extract_strided_slice %49 {offsets = [2, 0], sizes = [1, 256], strides = [1, 1]} : vector<3x256xf32> to vector<1x256xf32>
    %62 = arith.mulf %60, %61 : vector<1x256xf32>
    %63 = arith.subf %59, %62 : vector<1x256xf32>
    %64 = vector.extract_strided_slice %48 {offsets = [0, 0], sizes = [1, 256], strides = [1, 1]} : vector<3x256xf32> to vector<1x256xf32>
    %65 = vector.extract_strided_slice %49 {offsets = [1, 0], sizes = [1, 256], strides = [1, 1]} : vector<3x256xf32> to vector<1x256xf32>
    %66 = arith.mulf %64, %65 : vector<1x256xf32>
    %67 = vector.extract_strided_slice %48 {offsets = [1, 0], sizes = [1, 256], strides = [1, 1]} : vector<3x256xf32> to vector<1x256xf32>
    %68 = vector.extract_strided_slice %49 {offsets = [0, 0], sizes = [1, 256], strides = [1, 1]} : vector<3x256xf32> to vector<1x256xf32>
    %69 = arith.mulf %67, %68 : vector<1x256xf32>
    %70 = arith.subf %66, %69 : vector<1x256xf32>
    %71 = arith.mulf %56, %56 : vector<1x256xf32>
    %72 = arith.mulf %63, %63 : vector<1x256xf32>
    %73 = arith.addf %71, %72 : vector<1x256xf32>
    %74 = arith.mulf %70, %70 : vector<1x256xf32>
    %75 = arith.addf %73, %74 : vector<1x256xf32>
    %76 = math.sqrt %75 : vector<1x256xf32>
    %77 = tpu.concatenate %47, %76 in 0 : vector<1x256xf32>, vector<1x256xf32> -> vector<2x256xf32>
    %c0_5 = arith.constant 0 : index
    %c0_6 = arith.constant 0 : index
    %78 = vector.load %arg4[%c0_5, %c0_6] : memref<256x128xbf16, #tpu.memory_space<vmem>>, vector<256x128xbf16>
    %79 = arith.extf %78 : vector<256x128xbf16> to vector<256x128xf32>
    %c64 = arith.constant 64 : index
    %c0_7 = arith.constant 0 : index
    %80 = vector.load %arg5[%c64, %c0_7] : memref<72x128xf32, #tpu.memory_space<vmem>>, vector<1x128xf32>
    %cst_8 = arith.constant dense<0.000000e+00> : vector<2x128xf32>
    %81 = tpu.matmul %77, %79, %cst_8 {dimension_numbers = #tpu.dot_dimension_numbers<[1], [0], [0], [1], [0, 0, 1, 1], [], []>, precision = #tpu.contract_precision<fp32>} : vector<2x256xf32>, vector<256x128xf32>, vector<2x128xf32> -> vector<2x128xf32>
    %cst_9 = arith.constant 0.166666672 : f32
    %82 = vector.broadcast %cst_9 : f32 to vector<2x128xf32>
    %83 = arith.mulf %81, %82 : vector<2x128xf32>
    %84 = vector.broadcast %80 : vector<1x128xf32> to vector<2x128xf32>
    %85 = arith.subf %83, %84 : vector<2x128xf32>
    %86 = vector.extract_strided_slice %85 {offsets = [0, 0], sizes = [1, 128], strides = [1, 1]} : vector<2x128xf32> to vector<1x128xf32>
    %87 = vector.extract_strided_slice %85 {offsets = [1, 0], sizes = [1, 128], strides = [1, 1]} : vector<2x128xf32> to vector<1x128xf32>
    %88 = tpu.concatenate %86, %87 in 1 : vector<1x128xf32>, vector<1x128xf32> -> vector<1x256xf32>
    %c0_10 = arith.constant 0 : index
    %c0_11 = arith.constant 0 : index
    %89 = vector.load %arg2[%c0_10, %c0_11] : memref<3x256xf32, #tpu.memory_space<vmem>>, vector<3x256xf32>
    %c0_12 = arith.constant 0 : index
    %c0_13 = arith.constant 0 : index
    %90 = vector.load %arg5[%c0_12, %c0_13] : memref<72x128xf32, #tpu.memory_space<vmem>>, vector<64x3xf32>
    %c0_14 = arith.constant 0 : index
    %c3 = arith.constant 3 : index
    %91 = vector.load %arg5[%c0_14, %c3] : memref<72x128xf32, #tpu.memory_space<vmem>>, vector<64x1xf32>
    %c0_15 = arith.constant 0 : index
    %c4 = arith.constant 4 : index
    %92 = vector.load %arg5[%c0_15, %c4] : memref<72x128xf32, #tpu.memory_space<vmem>>, vector<64x1xf32>
    %c0_16 = arith.constant 0 : index
    %c8 = arith.constant 8 : index
    %93 = vector.load %arg5[%c0_16, %c8] : memref<72x128xf32, #tpu.memory_space<vmem>>, vector<64x3xf32>
    %c0_17 = arith.constant 0 : index
    %c11 = arith.constant 11 : index
    %94 = vector.load %arg5[%c0_17, %c11] : memref<72x128xf32, #tpu.memory_space<vmem>>, vector<64x1xf32>
    %c65 = arith.constant 65 : index
    %c0_18 = arith.constant 0 : index
    %95 = vector.load %arg5[%c65, %c0_18] : memref<72x128xf32, #tpu.memory_space<vmem>>, vector<1x64xf32>
    %c66 = arith.constant 66 : index
    %c0_19 = arith.constant 0 : index
    %96 = vector.load %arg5[%c66, %c0_19] : memref<72x128xf32, #tpu.memory_space<vmem>>, vector<1x1xf32>
    %cst_20 = arith.constant dense<0.000000e+00> : vector<64x256xf32>
    %97 = tpu.matmul %90, %89, %cst_20 {dimension_numbers = #tpu.dot_dimension_numbers<[1], [0], [0], [1], [0, 0, 1, 1], [], []>, precision = #tpu.contract_precision<fp32>} : vector<64x3xf32>, vector<3x256xf32>, vector<64x256xf32> -> vector<64x256xf32>
    %98 = vector.broadcast %91 : vector<64x1xf32> to vector<64x256xf32>
    %99 = vector.broadcast %88 : vector<1x256xf32> to vector<64x256xf32>
    %100 = arith.mulf %98, %99 : vector<64x256xf32>
    %101 = arith.addf %97, %100 : vector<64x256xf32>
    %102 = vector.broadcast %92 : vector<64x1xf32> to vector<64x256xf32>
    %103 = arith.addf %101, %102 : vector<64x256xf32>
    %104 = math.tanh %103 : vector<64x256xf32>
    %cst_21 = arith.constant dense<0.000000e+00> : vector<1x256xf32>
    %105 = tpu.matmul %95, %104, %cst_21 {dimension_numbers = #tpu.dot_dimension_numbers<[1], [0], [0], [1], [0, 0, 1, 1], [], []>, precision = #tpu.contract_precision<fp32>} : vector<1x64xf32>, vector<64x256xf32>, vector<1x256xf32> -> vector<1x256xf32>
    %106 = vector.broadcast %96 : vector<1x1xf32> to vector<1x256xf32>
    %107 = arith.addf %105, %106 : vector<1x256xf32>
    %cst_22 = arith.constant 0.000000e+00 : f32
    %108 = vector.broadcast %cst_22 : f32 to vector<1x256xf32>
    %109 = arith.subf %108, %107 : vector<1x256xf32>
    %110 = math.exp %109 : vector<1x256xf32>
    %cst_23 = arith.constant 1.000000e+00 : f32
    %111 = vector.broadcast %cst_23 : f32 to vector<1x256xf32>
    %112 = arith.addf %111, %110 : vector<1x256xf32>
    %113 = tpu.reciprocal %112 : vector<1x256xf32> -> vector<1x256xf32>
    %114 = vector.broadcast %113 : vector<1x256xf32> to vector<3x256xf32>
    %115 = arith.mulf %114, %89 : vector<3x256xf32>
    %cst_24 = arith.constant dense<0.000000e+00> : vector<64x256xf32>
    %116 = tpu.matmul %93, %115, %cst_24 {dimension_numbers = #tpu.dot_dimension_numbers<[1], [0], [0], [1], [0, 0, 1, 1], [], []>, precision = #tpu.contract_precision<fp32>} : vector<64x3xf32>, vector<3x256xf32>, vector<64x256xf32> -> vector<64x256xf32>
    %117 = vector.broadcast %94 : vector<64x1xf32> to vector<64x256xf32>
    %118 = arith.addf %116, %117 : vector<64x256xf32>
    %cst_25 = arith.constant 0.000000e+00 : f32
    %119 = vector.broadcast %cst_25 : f32 to vector<64x256xf32>
    %120 = arith.maximumf %118, %119 : vector<64x256xf32>
    %121 = vector.extract_strided_slice %120 {offsets = [0, 0], sizes = [64, 128], strides = [1, 1]} : vector<64x256xf32> to vector<64x128xf32>
    %c0_26 = arith.constant 0 : index
    %c0_27 = arith.constant 0 : index
    %c0_28 = arith.constant 0 : index
    %122 = vector.load %arg6[%c0_26, %c0_27, %c0_28] : memref<2x64x128xf32, #tpu.memory_space<vmem>>, vector<1x64x128xf32>
    %123 = vector.shape_cast %122 : vector<1x64x128xf32> to vector<64x128xf32>
    %124 = vector.shape_cast %121 : vector<64x128xf32> to vector<1x64x128xf32>
    tpu.vector_store %arg6[%c0_26, %c0_27, %c0_28], %124 {strides = array<i32>} : memref<2x64x128xf32, #tpu.memory_space<vmem>>, vector<1x64x128xf32>,
    %125 = vector.extract_strided_slice %120 {offsets = [0, 128], sizes = [64, 128], strides = [1, 1]} : vector<64x256xf32> to vector<64x128xf32>
    %c1 = arith.constant 1 : index
    %c0_29 = arith.constant 0 : index
    %c0_30 = arith.constant 0 : index
    %126 = vector.load %arg6[%c1, %c0_29, %c0_30] : memref<2x64x128xf32, #tpu.memory_space<vmem>>, vector<1x64x128xf32>
    %127 = vector.shape_cast %126 : vector<1x64x128xf32> to vector<64x128xf32>
    %128 = vector.shape_cast %125 : vector<64x128xf32> to vector<1x64x128xf32>
    tpu.vector_store %arg6[%c1, %c0_29, %c0_30], %128 {strides = array<i32>} : memref<2x64x128xf32, #tpu.memory_space<vmem>>, vector<1x64x128xf32>,
    return
  }
  func.func @transform_0(%arg0: i32) -> (i32, i32) {
    %c0_i32 = arith.constant 0 : i32
    %c0_i32_0 = arith.constant 0 : i32
    %c0_i32_1 = arith.constant 0 : i32
    return %c0_i32, %c0_i32_0 : i32, i32
  }
  func.func @transform_1(%arg0: i32) -> (i32, i32) {
    %c0_i32 = arith.constant 0 : i32
    %c0_i32_0 = arith.constant 0 : i32
    %c0_i32_1 = arith.constant 0 : i32
    return %c0_i32, %c0_i32_0 : i32, i32
  }
  func.func @transform_2(%arg0: i32) -> (i32, i32) {
    %c0_i32 = arith.constant 0 : i32
    %c0_i32_0 = arith.constant 0 : i32
    %c0_i32_1 = arith.constant 0 : i32
    return %c0_i32, %c0_i32_0 : i32, i32
  }
  func.func @transform_3(%arg0: i32) -> (i32, i32) {
    %c0_i32 = arith.constant 0 : i32
    %c0_i32_0 = arith.constant 0 : i32
    %c0_i32_1 = arith.constant 0 : i32
    return %c0_i32, %c0_i32_0 : i32, i32
  }
  func.func @transform_4(%arg0: i32) -> (i32, i32) {
    %c0_i32 = arith.constant 0 : i32
    %c0_i32_0 = arith.constant 0 : i32
    %c0_i32_1 = arith.constant 0 : i32
    return %c0_i32, %c0_i32_0 : i32, i32
  }
  func.func @transform_5(%arg0: i32) -> (i32, i32, i32) {
    %c0_i32 = arith.constant 0 : i32
    %c0_i32_0 = arith.constant 0 : i32
    %c0_i32_1 = arith.constant 0 : i32
    %c0_i32_2 = arith.constant 0 : i32
    return %c0_i32, %c0_i32_0, %c0_i32_1 : i32, i32, i32
  }
}

</mosaic_0001>

<bundles_post_ra>
// kernel: tpu_custom_call.1
= control target key start
LH: loop header
LB: loop body
LE: loop exit
PB: predicated region body
PF: predicated region fallthrough
CT: control target
= control target key end

     0   :  { %10 = vsyncpa [#allocation3], 0  ;;  %s8910_s0 = inlined_call_operand.hbm [shape: f32[6,128], index: 0, kind: input, shape index: {}]   ;;  %s8911_s1 = inlined_call_operand.hbm [shape: f32[3,256], index: 1, kind: input, shape index: {}]   ;;  %s8912_s2 = inlined_call_operand.hbm [shape: bf16[128,512], index: 2, kind: input, shape index: {}]   ;;  %s8913_s3 = inlined_call_operand.hbm [shape: bf16[256,128], index: 3, kind: input, shape index: {}]   ;;  %s8914_s4 = inlined_call_operand.hbm [shape: f32[72,128], index: 4, kind: input, shape index: {}]   ;;  %s8915_s5 = inlined_call_operand.hbm [shape: f32[2,64,128], index: 5, kind: output, shape index: {}]  }
   0x1   :  { %11 = vsyncpa [#allocation6], 0 }
   0x2   :  { %12 = vsyncpa [#allocation9], 0 }
   0x3   :  { %13 = vsyncpa [#allocation4], 0  ;;  %s6489_s18 = smov [#allocation5]   ;;  %s6490_s20 = smov [#allocation8]  }
   0x4   :  { %s30_s19 = sshll.u32 %s6489_s18, 4  ;;  %s51_s21 = sshll.u32 %s6490_s20, 4  ;;  %s31_s19 = int_to_ptr.vmem [resolvable:$true] %s30_s19  ;;  %s6537_s21 = int_to_ptr.vmem [resolvable:$true] %s51_s21 }
   0x5   :  { %s6349_s24 = scalar_lea.hbm %s8911_s1, 128 }
   0x6   :  { %p6350_p0 = scmp.ne.s32.totalorder %s8911_s1, %s6349_s24  ;;  %p6353_p1 = scmp.lt.u32.totalorder %s6349_s24, %s8911_s1 }
   0x8   :  { %p6355_p2 = pnand %p6353_p1, %p6350_p0 }
   0xa   :  { %6358 = shalt.err (!%p6355_p2)
}
   0xb   :  { %s6359_s29 = scalar_lea.vmem %s31_s19, 128  ;;  %p6364_p4 = scmp.lt.s32.totalorder %s31_s19, %s31_s19 }
   0xc   :  { %p6360_p3 = scmp.ne.s32.totalorder %s31_s19, %s6359_s29  ;;  %p6365_p5 = scmp.lt.s32.totalorder %s6359_s29, %s6359_s29 }
   0xe   :  { %p6366_p6 = por %p6365_p5, %p6364_p4 }
  0x10   :  { %p6367_p7 = pnand %p6366_p6, %p6360_p3 }
  0x12   :  { %6370 = shalt.err (!%p6367_p7)
}
  0x13   :  { %33 = dma.hbm_to_vmem [thread:$0]  %s8911_s1, 128, %s31_s19, [#allocation6]  }
  0x14   :  { %s6371_s9 = scalar_lea.hbm %s8913_s3, 2048 }
  0x15   :  { %p6372_p8 = scmp.ne.s32.totalorder %s8913_s3, %s6371_s9  ;;  %p6375_p9 = scmp.lt.u32.totalorder %s6371_s9, %s8913_s3 }
  0x17   :  { %p6377_p10 = pnand %p6375_p9, %p6372_p8 }
  0x19   :  { %6380 = shalt.err (!%p6377_p10)
}
  0x1a   :  { %s6381_s14 = scalar_lea.vmem %s6537_s21, 2048  ;;  %p6386_p12 = scmp.lt.s32.totalorder %s6537_s21, %s6537_s21 }
  0x1b   :  { %p6382_p11 = scmp.ne.s32.totalorder %s6537_s21, %s6381_s14  ;;  %p6387_p13 = scmp.lt.s32.totalorder %s6381_s14, %s6381_s14 }
  0x1d   :  { %p6388_p0 = por %p6387_p13, %p6386_p12 }
  0x1f   :  { %p6389_p1 = pnand %p6388_p0, %p6382_p11 }
  0x21   :  { %6392 = shalt.err (!%p6389_p1)
}
  0x22   :  { %s6491_s1 = smov 64   ;;  %s6492_s15 = smov 4  }
  0x23   :  { %57 = dma.hbm_to_vmem [thread:$0]  %s8913_s3, 2048, %s6537_s21, [#allocation9], %s6491_s1, %s6491_s1, %s6492_s15  }
  0x24   :  { %s6493_s18 = smov [#allocation2]   ;;  %s6494_s20 = smov [#allocation7]  }
  0x25   :  { %s20_s19 = sshll.u32 %s6493_s18, 4  ;;  %s39_s22 = sshll.u32 %s6494_s20, 4  ;;  %s21_s19 = int_to_ptr.vmem [resolvable:$true] %s20_s19  ;;  %s6568_s22 = int_to_ptr.vmem [resolvable:$true] %s39_s22 }
  0x26   :  { %s6393_s25 = scalar_lea.hbm %s8910_s0, 128 }
  0x27   :  { %p6394_p2 = scmp.ne.s32.totalorder %s8910_s0, %s6393_s25  ;;  %p6397_p3 = scmp.lt.u32.totalorder %s6393_s25, %s8910_s0 }
  0x29   :  { %p6399_p4 = pnand %p6397_p3, %p6394_p2 }
  0x2b   :  { %6402 = shalt.err (!%p6399_p4)
}
  0x2c   :  { %s6403_s3 = scalar_lea.vmem %s21_s19, 128  ;;  %p6408_p6 = scmp.lt.s32.totalorder %s21_s19, %s21_s19 }
  0x2d   :  { %p6404_p5 = scmp.ne.s32.totalorder %s21_s19, %s6403_s3  ;;  %p6409_p7 = scmp.lt.s32.totalorder %s6403_s3, %s6403_s3 }
  0x2f   :  { %p6410_p8 = por %p6409_p7, %p6408_p6 }
  0x31   :  { %p6411_p9 = pnand %p6410_p8, %p6404_p5 }
  0x33   :  { %6414 = shalt.err (!%p6411_p9)
}
  0x34   :  { %23 = dma.hbm_to_vmem [thread:$0]  %s8910_s0, 128, %s21_s19, [#allocation3]  }
  0x35   :  { %s6415_s8 = scalar_lea.hbm %s8912_s2, 4096 }
  0x36   :  { %p6416_p10 = scmp.ne.s32.totalorder %s8912_s2, %s6415_s8  ;;  %p6419_p11 = scmp.lt.u32.totalorder %s6415_s8, %s8912_s2 }
  0x38   :  { %p6421_p12 = pnand %p6419_p11, %p6416_p10 }
  0x3a   :  { %6424 = shalt.err (!%p6421_p12)
}
  0x3b   :  { %s6425_s13 = scalar_lea.vmem %s6568_s22, 4096  ;;  %p6430_p0 = scmp.lt.s32.totalorder %s6568_s22, %s6568_s22 }
  0x3c   :  { %p6426_p13 = scmp.ne.s32.totalorder %s6568_s22, %s6425_s13  ;;  %p6431_p1 = scmp.lt.s32.totalorder %s6425_s13, %s6425_s13 }
  0x3e   :  { %p6432_p2 = por %p6431_p1, %p6430_p0 }
  0x40   :  { %p6433_p3 = pnand %p6432_p2, %p6426_p13 }
  0x42   :  { %6436 = shalt.err (!%p6433_p3)
}
  0x43   :  { %s6495_s0 = smov 256   ;;  %s6496_s14 = smov 16  }
  0x44   :  { %45 = dma.hbm_to_vmem [thread:$0]  %s8912_s2, 4096, %s6568_s22, [#allocation6], %s6495_s0, %s6495_s0, %s6496_s14  }
  0x45   :  { %s6497_s16 = smov [#allocation10]   ;;  %s6437_s20 = scalar_lea.hbm %s8914_s4, 1152 }
  0x46   :  { %s63_s17 = sshll.u32 %s6497_s16, 4  ;;  %p6438_p4 = scmp.ne.s32.totalorder %s8914_s4, %s6437_s20  ;;  %s64_s17 = int_to_ptr.vmem [resolvable:$true] %s63_s17 }
  0x47   :  { %p6441_p5 = scmp.lt.u32.totalorder %s6437_s20, %s8914_s4 }
  0x49   :  { %p6443_p6 = pnand %p6441_p5, %p6438_p4 }
  0x4b   :  { %6446 = shalt.err (!%p6443_p6)
}
  0x4c   :  { %s6447_s27 = scalar_lea.vmem %s64_s17, 1152  ;;  %p6452_p8 = scmp.lt.s32.totalorder %s64_s17, %s64_s17 }
  0x4d   :  { %p6448_p7 = scmp.ne.s32.totalorder %s64_s17, %s6447_s27  ;;  %p6453_p9 = scmp.lt.s32.totalorder %s6447_s27, %s6447_s27 }
  0x4f   :  { %p6454_p10 = por %p6453_p9, %p6452_p8 }
  0x51   :  { %p6455_p11 = pnand %p6454_p10, %p6448_p7 }
  0x53   :  { %6458 = shalt.err (!%p6455_p11)
}
  0x54   :  { %s6498_s2 = smov 128   ;;  %s6499_s22 = smov 8  }
  0x55   :  { %69 = dma.hbm_to_vmem [thread:$0]  %s8914_s4, 1152, %s64_s17, [#allocation9], %s6498_s2, %s6498_s2, %s6499_s22  }
  0x56   :  { %6481 = dma.done.wait [#allocation3], 128  }
  0x57   :  { %6482 = vsyncadd [#allocation3], 4294967168 }
  0x58   :  { %6483 = dma.done.wait [#allocation6], 4224  }
  0x59   :  { %6484 = vsyncadd [#allocation6], 4294963072 }
  0x5a   :  { %6485 = dma.done.wait [#allocation9], 3200  }
  0x5b   :  { %6486 = vsyncadd [#allocation9], 4294964096  ;;  %v8927_v0 = vmov 0.0   ;;  %v6616_v1 = vld [vmem:[#allocation7] sm:$0xff]  ;;  %v6618_v2 = vld [vmem:[#allocation7 + $0x10] sm:$0xff]  ;;  %vm87_vm0 = vcmask 1042432  }
  0x5c   :  { %270 = vmatprep.mubr.f32.mxu0 %v8927_v0  ;;  %1137 = vmatprep.mubr.f32.mxu1 %v8927_v0  ;;  %v6620_v3 = vld [vmem:[#allocation7 + $0x20] sm:$0xff]  ;;  %v142_v4 = vunpack.c.l.bf16 %v6616_v1  ;;  %v146_v5 = vunpack.c.l.bf16 %v6618_v2  ;;  %v6626_v6 = vcombine.high %v6616_v1, %v6618_v2  ;;  %v6630_v7 = vcombine.low %v6616_v1, %v6618_v2  ;;  %v6632_v8 = vld [vmem:[#allocation7 + $0x30] sm:$0xff]  ;;  %v111_v9 = vld [vmem:[#allocation7 + $0x8] sm:$0xff]  ;;  %s6504_s4 = smov 120   ;;  %s6506_s3 = smov [#allocation11]  }
  0x5d   :  { %v113_v10 = vld [vmem:[#allocation7 + $0x18] sm:$0xff]  ;;  %v150_v11 = vunpack.c.l.bf16 %v6620_v3  ;;  %v6637_v12 = vcombine.high %v6620_v3, %v6632_v8  ;;  %v145_v13 = vunpack.c.h.bf16 %v111_v9  ;;  %v154_v14 = vunpack.c.l.bf16 %v6632_v8  ;;  %v6641_v16 = vld [vmem:[#allocation7 + $0x40] sm:$0xff]  ;;  %v6643_v17 = vld [vmem:[#allocation7 + $0x50] sm:$0xff]  ;;  %s4928_s21 = sshll.u32 %s6506_s3, 4  ;;  %s4929_s21 = int_to_ptr.vmem [resolvable:$true] %s4928_s21 }
  0x5e   :  { %9165 = vst [vmem:[#allocation16_spill] sm:$0xff] %v6626_v6  ;;  %9166 = vst [vmem:[#allocation17_spill] sm:$0xff] %v6630_v7  ;;  %5233 = vmatprep.subr.bf16.mxu0 %v6626_v6  ;;  %v149_v15 = vunpack.c.h.bf16 %v113_v10  ;;  %v6645_v18 = vld [vmem:[#allocation7 + $0x28] sm:$0xff]  ;;  %v6647_v19 = vsub.f32 %v142_v4, %v142_v4  ;;  %v6654_v21 = vcombine.low %v6620_v3, %v6632_v8  ;;  %v144_v22 = vunpack.c.l.bf16 %v111_v9  ;;  %v6663_v27 = vld [vmem:[#allocation7 + $0x38] sm:$0xff]  ;;  %s6459_s30 = scalar_lea.vmem %s4929_s21, 2048  ;;  %p6464_p13 = scmp.lt.s32.totalorder %s4929_s21, %s4929_s21 }
  0x5f   :  { %9167 = vst [vmem:[#allocation18_spill] sm:$0xff] %v6637_v12  ;;  %9168 = vst [vmem:[#allocation19_spill] sm:$0xff] %v6645_v18  ;;  %5235 = vmatpush1.bf16.msra.mxu0 %v6630_v7  ;;  %v6650_v20 = vsub.f32 %v145_v13, %v145_v13  ;;  %v6656_v23 = vsub.f32 %v146_v5, %v146_v5  ;;  %v6659_v24 = vsub.f32 %v150_v11, %v150_v11  ;;  %v6709_v52 = vld [vmem:[#allocation7 + $0x60] sm:$0xff]  ;;  %v6711_v53 = vld [vmem:[#allocation7 + $0x70] sm:$0xff]  ;;  %vm1618_vm5 = vcmask 1040384   ;;  %p6460_p12 = scmp.ne.s32.totalorder %s4929_s21, %s6459_s30  ;;  %p6465_p0 = scmp.lt.s32.totalorder %s6459_s30, %s6459_s30 }
  0x60   :  { %9169 = vst [vmem:[#allocation20_spill] sm:$0xff] %v6647_v19  ;;  %9171 = vst [vmem:[#allocation22_spill] sm:$0xff] %v6654_v21  ;;  %5237 = vmatprep.subr.bf16.mxu0 %v6637_v12  ;;  %v6661_v25 = vsub.f32 %v149_v15, %v149_v15  ;;  %v148_v26 = vunpack.c.l.bf16 %v113_v10  ;;  %v6666_v29 = vsub.f32 %v144_v22, %v144_v22  ;;  %v153_v31 = vunpack.c.h.bf16 %v6645_v18  ;;  %v6722_v62 = vld [vmem:[#allocation7 + $0x48] sm:$0xff]  ;;  %v6724_v63 = vld [vmem:[#allocation7 + $0x58] sm:$0xff] }
  0x61   :  { %9170 = vst [vmem:[#allocation21_spill] sm:$0xff] %v6650_v20  ;;  %9173 = vst [vmem:[#allocation24_spill] sm:$0xff] %v6663_v27  ;;  %v8926_v28 = vand.u32 4294901760, %v6650_v20  ;;  %v6670_v30 = vcombine.high %v6641_v16, %v6643_v17  ;;  %v6673_v32 = vsub.f32 %v154_v14, %v154_v14  ;;  %v158_v35 = vunpack.c.l.bf16 %v6641_v16  ;;  %v6815_v0 = vld [vmem:[#allocation7 + $0xb0] sm:$0xff]  ;;  %p6466_p1 = por %p6465_p0, %p6464_p13 }
  0x62   :  { %9172 = vst [vmem:[#allocation23_spill] sm:$0xff] %v6661_v25  ;;  %9174 = vst [vmem:[#allocation25_spill] sm:$0xff] %v6666_v29  ;;  %v8925_v33 = vand.u32 4294901760, %v6661_v25  ;;  %v6676_v34 = vsub.f32 %v148_v26, %v148_v26  ;;  %v8923_v37 = vand.u32 4294901760, %v6666_v29  ;;  %v157_v38 = vunpack.c.h.bf16 %v6663_v27 }
  0x63   :  { %9175 = vst [vmem:[#allocation26_spill] sm:$0xff] %v6670_v30  ;;  %v947_v36 = vsub.f32 %v6650_v20, %v8926_v28  ;;  %5239 = vmatpush1.bf16.msra.mxu0 %v6654_v21  ;;  %v6685_v39 = vsub.f32 %v153_v31, %v153_v31  ;;  %v6694_v42 = vcombine.low %v6641_v16, %v6643_v17  ;;  %v152_v43 = vunpack.c.l.bf16 %v6645_v18  ;;  %v6813_v28 = vld [vmem:[#allocation7 + $0xa0] sm:$0xff]  ;;  %p6467_p2 = pnand %p6466_p1, %p6460_p12 }
  0x64   :  { %9176 = vst [vmem:[#allocation27_spill] sm:$0xff] %v6676_v34  ;;  %v957_v40 = vsub.f32 %v6661_v25, %v8925_v33  ;;  %v8922_v41 = vand.u32 4294901760, %v6676_v34  ;;  %5241 = vmatprep.subr.bf16.mxu0 %v6670_v30  ;;  %v952_v45 = vsub.f32 %v6666_v29, %v8923_v37  ;;  %v6701_v47 = vsub.f32 %v157_v38, %v157_v38 }
  0x65   :  { %9177 = vst [vmem:[#allocation28_spill] sm:$0xff] %v6685_v39  ;;  %9178 = vst [vmem:[#allocation29_spill] sm:$0xff] %v6694_v42  ;;  %v948_v44 = vand.u32 4294901760, %v947_v36  ;;  %v8921_v46 = vand.u32 4294901760, %v6685_v39  ;;  %v156_v50 = vunpack.c.l.bf16 %v6663_v27  ;;  %v6707_v51 = vsub.f32 %v152_v43, %v152_v43 }
  0x66   :  { %9179 = vst [vmem:[#allocation30_spill] sm:$0xff] %v6701_v47  ;;  %v958_v48 = vand.u32 4294901760, %v957_v40  ;;  %v962_v49 = vsub.f32 %v6676_v34, %v8922_v41  ;;  %v953_v54 = vand.u32 4294901760, %v952_v45  ;;  %v162_v55 = vunpack.c.l.bf16 %v6643_v17  ;;  %9180 = vst [vmem:[#allocation31_spill] sm:$0xff] %v6722_v62  ;;  %v6754_v45 = vld [vmem:[#allocation7 + $0x90] sm:$0xff] }
  0x67   :  { %v967_v56 = vsub.f32 %v6685_v39, %v8921_v46  ;;  %v8920_v57 = vand.u32 4294901760, %v6701_v47  ;;  %5243 = vmatpush1.bf16.msra.mxu0 %v6694_v42  ;;  %v8918_v60 = vand.u32 4294901760, %v6707_v51  ;;  %v6720_v61 = vsub.f32 %v156_v50, %v156_v50  ;;  %9181 = vst [vmem:[#allocation32_spill] sm:$0xff] %v6724_v63 }
  0x68   :  { %v5456_v58 = vpack.c.bf16 %v958_v48, %v948_v44  ;;  %v963_v59 = vand.u32 4294901760, %v962_v49  ;;  %v6726_v4 = vsub.f32 %v158_v35, %v158_v35  ;;  %v6733_v10 = vcombine.high %v6709_v52, %v6711_v53  ;;  %v6752_v44 = vld [vmem:[#allocation7 + $0x80] sm:$0xff] }
  0x69   :  { %v968_v5 = vand.u32 4294901760, %v967_v56  ;;  %v977_v9 = vsub.f32 %v6701_v47, %v8920_v57  ;;  %v972_v13 = vsub.f32 %v6707_v51, %v8918_v60  ;;  %v8916_v14 = vand.u32 4294901760, %v6720_v61 }
  0x6a   :  { %9182 = vst [vmem:[#allocation33_spill] sm:$0xff] %v6726_v4  ;;  %9183 = vst [vmem:[#allocation34_spill] sm:$0xff] %v6733_v10  ;;  %5457 = vmatprep.subr.bf16.mxu1 %v5456_v58  ;;  %v5458_v11 = vpack.c.bf16 %v963_v59, %v953_v54  ;;  %v166_v15 = vunpack.c.l.bf16 %v6709_v52  ;;  %v170_v26 = vunpack.c.l.bf16 %v6711_v53  ;;  %5245 = vmatprep.subr.bf16.mxu0 %v6733_v10  ;;  %v161_v31 = vunpack.c.h.bf16 %v6722_v62 }
  0x6b   :  { %v978_v22 = vand.u32 4294901760, %v977_v9  ;;  %v165_v35 = vunpack.c.h.bf16 %v6724_v63  ;;  %v973_v36 = vand.u32 4294901760, %v972_v13  ;;  %v982_v38 = vsub.f32 %v6720_v61, %v8916_v14 }
  0x6c   :  { %5459 = vmatpush1.bf16.msra.mxu1 %v5458_v11  ;;  %v6749_v40 = vcombine.low %v6709_v52, %v6711_v53  ;;  %v160_v43 = vunpack.c.l.bf16 %v6722_v62  ;;  %v6756_v49 = vsub.f32 %v161_v31, %v161_v31  ;;  %v164_v54 = vunpack.c.l.bf16 %v6724_v63  ;;  %v6768_v11 = vld [vmem:[#allocation7 + $0x68] sm:$0xff]  ;;  %v6778_v31 = vld [vmem:[#allocation7 + $0x78] sm:$0xff] }
  0x6d   :  { %v5460_v48 = vpack.c.bf16 %v978_v22, %v968_v5  ;;  %v6758_v50 = vsub.f32 %v165_v35, %v165_v35  ;;  %v6761_v56 = vsub.f32 %v162_v55, %v162_v55  ;;  %v983_v58 = vand.u32 4294901760, %v982_v38  ;;  %9186 = vst [vmem:[#allocation37_spill] sm:$0xff] %v6768_v11  ;;  %9188 = vst [vmem:[#allocation39_spill] sm:$0xff] %v6778_v31 }
  0x6e   :  { %9184 = vst [vmem:[#allocation35_spill] sm:$0xff] %v6749_v40  ;;  %v6763_v59 = vsub.f32 %v166_v15, %v166_v15  ;;  %5247 = vmatpush1.bf16.msra.mxu0 %v6749_v40  ;;  %v6766_v9 = vsub.f32 %v160_v43, %v160_v43  ;;  %v8917_v5 = vand.u32 4294901760, %v6756_v49  ;;  %v6772_v22 = vsub.f32 %v164_v54, %v164_v54  ;;  %v6827_v40 = vld [vmem:[#allocation7 + $0x98] sm:$0xff] }
  0x6f   :  { %9185 = vst [vmem:[#allocation36_spill] sm:$0xff] %v6761_v56  ;;  %5461 = vmatprep.subr.bf16.mxu1 %v5460_v48  ;;  %v8919_v13 = vand.u32 4294901760, %v6758_v50  ;;  %v6776_v55 = vcombine.high %v6752_v44, %v6754_v45  ;;  %v5462_v15 = vpack.c.bf16 %v983_v58, %v973_v36  ;;  %v6780_v35 = vsub.f32 %v170_v26, %v170_v26 }
  0x70   :  { %v8924_v38 = vand.u32 4294901760, %v6766_v9  ;;  %v174_v43 = vunpack.c.l.bf16 %v6752_v44  ;;  %v987_v48 = vsub.f32 %v6756_v49, %v8917_v5  ;;  %v8931_v14 = vand.u32 4294901760, %v6772_v22  ;;  %9193 = vst [vmem:[#allocation44_spill] sm:$0xff] %v6827_v40 }
  0x71   :  { %9187 = vst [vmem:[#allocation38_spill] sm:$0xff] %v6776_v55  ;;  %v997_v54 = vsub.f32 %v6758_v50, %v8919_v13  ;;  %5249 = vmatprep.subr.bf16.mxu0 %v6776_v55  ;;  %v169_v36 = vunpack.c.h.bf16 %v6768_v11  ;;  %5463 = vmatpush1.bf16.msra.mxu1 %v5462_v15  ;;  %v173_v58 = vunpack.c.h.bf16 %v6778_v31  ;;  %v6799_v5 = vcombine.low %v6752_v44, %v6754_v45 }
  0x72   :  { %v992_v26 = vsub.f32 %v6766_v9, %v8924_v38  ;;  %v168_v60 = vunpack.c.l.bf16 %v6768_v11  ;;  %v988_v13 = vand.u32 4294901760, %v987_v48  ;;  %v1002_v46 = vsub.f32 %v6772_v22, %v8931_v14 }
  0x73   :  { %9189 = vst [vmem:[#allocation40_spill] sm:$0xff] %v6799_v5  ;;  %v998_v57 = vand.u32 4294901760, %v997_v54  ;;  %v6805_v41 = vsub.f32 %v169_v36, %v169_v36  ;;  %v6807_v37 = vsub.f32 %v173_v58, %v173_v58  ;;  %5251 = vmatpush1.bf16.msra.mxu0 %v6799_v5  ;;  %v172_v38 = vunpack.c.l.bf16 %v6778_v31 }
  0x74   :  { %v993_v15 = vand.u32 4294901760, %v992_v26  ;;  %v6811_v33 = vsub.f32 %v168_v60, %v168_v60  ;;  %v1003_v54 = vand.u32 4294901760, %v1002_v46  ;;  %v178_v55 = vunpack.c.l.bf16 %v6754_v45  ;;  %v6825_v60 = vld [vmem:[#allocation7 + $0x88] sm:$0xff] }
  0x75   :  { %v5464_v48 = vpack.c.bf16 %v998_v57, %v988_v13  ;;  %v8938_v36 = vand.u32 4294901760, %v6805_v41  ;;  %v6819_v14 = vsub.f32 %v174_v43, %v174_v43  ;;  %v8943_v26 = vand.u32 4294901760, %v6807_v37  ;;  %9192 = vst [vmem:[#allocation43_spill] sm:$0xff] %v6825_v60 }
  0x76   :  { %9190 = vst [vmem:[#allocation41_spill] sm:$0xff] %v6811_v33  ;;  %v8946_v58 = vand.u32 4294901760, %v6811_v33  ;;  %v6823_v5 = vsub.f32 %v172_v38, %v172_v38  ;;  %v5466_v10 = vpack.c.bf16 %v1003_v54, %v993_v15  ;;  %v182_v57 = vunpack.c.l.bf16 %v6813_v28 }
  0x77   :  { %5465 = vmatprep.subr.bf16.mxu1 %v5464_v48  ;;  %v1007_v46 = vsub.f32 %v6805_v41, %v8938_v36  ;;  %v6835_v13 = vcombine.high %v6813_v28, %v6815_v0  ;;  %v1017_v38 = vsub.f32 %v6807_v37, %v8943_v26  ;;  %v186_v48 = vunpack.c.l.bf16 %v6815_v0 }
  0x78   :  { %9191 = vst [vmem:[#allocation42_spill] sm:$0xff] %v6823_v5  ;;  %v1012_v43 = vsub.f32 %v6811_v33, %v8946_v58  ;;  %v8959_v15 = vand.u32 4294901760, %v6823_v5  ;;  %5467 = vmatpush1.bf16.msra.mxu1 %v5466_v10  ;;  %v177_v36 = vunpack.c.h.bf16 %v6825_v60  ;;  %v181_v42 = vunpack.c.h.bf16 %v6827_v40  ;;  %v6856_v10 = vld [vmem:[#allocation7 + $0xc0] sm:$0xff] }
  0x79   :  { %9194 = vst [vmem:[#allocation45_spill] sm:$0xff] %v6835_v13  ;;  %v1008_v54 = vand.u32 4294901760, %v1007_v46  ;;  %5253 = vmatprep.subr.bf16.mxu0 %v6835_v13  ;;  %v6850_v30 = vcombine.low %v6813_v28, %v6815_v0  ;;  %v1018_v26 = vand.u32 4294901760, %v1017_v38  ;;  %v176_v12 = vunpack.c.l.bf16 %v6825_v60  ;;  %9196 = vst [vmem:[#allocation47_spill] sm:$0xff] %v6856_v10  ;;  %v6858_v46 = vld [vmem:[#allocation7 + $0xd0] sm:$0xff]  ;;  %v6872_v60 = vld [vmem:[#allocation7 + $0xa8] sm:$0xff] }
  0x7a   :  { %v1013_v21 = vand.u32 4294901760, %v1012_v43  ;;  %v1022_v58 = vsub.f32 %v6823_v5, %v8959_v15  ;;  %v6860_v13 = vsub.f32 %v178_v55, %v178_v55  ;;  %v6862_v7 = vsub.f32 %v177_v36, %v177_v36  ;;  %9200 = vst [vmem:[#allocation51_spill] sm:$0xff] %v6872_v60 }
  0x7b   :  { %9195 = vst [vmem:[#allocation46_spill] sm:$0xff] %v6850_v30  ;;  %v6864_v6 = vsub.f32 %v181_v42, %v181_v42  ;;  %5255 = vmatpush1.bf16.msra.mxu0 %v6850_v30  ;;  %v180_v38 = vunpack.c.l.bf16 %v6827_v40  ;;  %v5468_v43 = vpack.c.bf16 %v1018_v26, %v1008_v54  ;;  %v6868_v31 = vsub.f32 %v182_v57, %v182_v57  ;;  %v6882_v30 = vld [vmem:[#allocation7 + $0xb8] sm:$0xff] }
  0x7c   :  { %v1023_v11 = vand.u32 4294901760, %v1022_v58  ;;  %v6870_v15 = vsub.f32 %v176_v12, %v176_v12  ;;  %v8968_v62 = vand.u32 4294901760, %v6862_v7  ;;  %v6880_v42 = vcombine.high %v6856_v10, %v6858_v46  ;;  %9203 = vst [vmem:[#allocation54_spill] sm:$0xff] %v6882_v30 }
  0x7d   :  { %9197 = vst [vmem:[#allocation48_spill] sm:$0xff] %v6864_v6  ;;  %9198 = vst [vmem:[#allocation49_spill] sm:$0xff] %v6868_v31  ;;  %v8969_v55 = vand.u32 4294901760, %v6864_v6  ;;  %v6876_v36 = vsub.f32 %v180_v38, %v180_v38  ;;  %5469 = vmatprep.subr.bf16.mxu1 %v5468_v43  ;;  %v6884_v58 = vsub.f32 %v186_v48, %v186_v48  ;;  %v190_v57 = vunpack.c.l.bf16 %v6856_v10 }
  0x7e   :  { %9199 = vst [vmem:[#allocation50_spill] sm:$0xff] %v6870_v15  ;;  %9202 = vst [vmem:[#allocation53_spill] sm:$0xff] %v6880_v42  ;;  %v5470_v26 = vpack.c.bf16 %v1023_v11, %v1013_v21  ;;  %v8978_v12 = vand.u32 4294901760, %v6870_v15  ;;  %v1027_v54 = vsub.f32 %v6862_v7, %v8968_v62  ;;  %5257 = vmatprep.subr.bf16.mxu0 %v6880_v42  ;;  %v185_v21 = vunpack.c.h.bf16 %v6872_v60 }
  0x7f   :  { %9201 = vst [vmem:[#allocation52_spill] sm:$0xff] %v6876_v36  ;;  %9204 = vst [vmem:[#allocation55_spill] sm:$0xff] %v6884_v58  ;;  %v1037_v38 = vsub.f32 %v6864_v6, %v8969_v55  ;;  %v8985_v40 = vand.u32 4294901760, %v6876_v36  ;;  %v189_v48 = vunpack.c.h.bf16 %v6882_v30  ;;  %v6903_v43 = vcombine.low %v6856_v10, %v6858_v46  ;;  %v6917_v10 = vld [vmem:[#allocation7 + $0xe0] sm:$0xff] }
  0x80   :  { %5471 = vmatpush1.bf16.msra.mxu1 %v5470_v26  ;;  %v1032_v11 = vsub.f32 %v6870_v15, %v8978_v12  ;;  %v184_v62 = vunpack.c.l.bf16 %v6872_v60  ;;  %v1028_v55 = vand.u32 4294901760, %v1027_v54  ;;  %v6909_v18 = vsub.f32 %v185_v21, %v185_v21  ;;  %v6919_v60 = vld [vmem:[#allocation7 + $0xf0] sm:$0xff] }
  0x81   :  { %9205 = vst [vmem:[#allocation56_spill] sm:$0xff] %v6903_v43  ;;  %v1038_v63 = vand.u32 4294901760, %v1037_v38  ;;  %v1042_v42 = vsub.f32 %v6876_v36, %v8985_v40  ;;  %v6911_v27 = vsub.f32 %v189_v48, %v189_v48  ;;  %5259 = vmatpush1.bf16.msra.mxu0 %v6903_v43  ;;  %v188_v12 = vunpack.c.l.bf16 %v6882_v30  ;;  %v6931_v30 = vld [vmem:[#allocation7 + $0xd8] sm:$0xff] }
  0x82   :  { %9206 = vst [vmem:[#allocation57_spill] sm:$0xff] %v6909_v18  ;;  %v1033_v26 = vand.u32 4294901760, %v1032_v11  ;;  %v6915_v15 = vsub.f32 %v184_v62, %v184_v62  ;;  %v8992_v21 = vand.u32 4294901760, %v6909_v18  ;;  %v6923_v40 = vsub.f32 %v190_v57, %v190_v57  ;;  %v6929_v62 = vld [vmem:[#allocation7 + $0xc8] sm:$0xff]  ;;  %9212 = vst [vmem:[#allocation63_spill] sm:$0xff] %v6931_v30 }
  0x83   :  { %9207 = vst [vmem:[#allocation58_spill] sm:$0xff] %v6911_v27  ;;  %v5472_v54 = vpack.c.bf16 %v1038_v63, %v1028_v55  ;;  %v1043_v38 = vand.u32 4294901760, %v1042_v42  ;;  %v8993_v11 = vand.u32 4294901760, %v6911_v27  ;;  %v6927_v43 = vsub.f32 %v188_v12, %v188_v12  ;;  %9211 = vst [vmem:[#allocation62_spill] sm:$0xff] %v6929_v62 }
  0x84   :  { %9208 = vst [vmem:[#allocation59_spill] sm:$0xff] %v6915_v15  ;;  %9209 = vst [vmem:[#allocation60_spill] sm:$0xff] %v6923_v40  ;;  %v8996_v48 = vand.u32 4294901760, %v6915_v15  ;;  %v1047_v63 = vsub.f32 %v6909_v18, %v8992_v21  ;;  %v6939_v42 = vcombine.high %v6917_v10, %v6919_v60  ;;  %v193_v21 = vunpack.c.h.bf16 %v6929_v62 }
  0x85   :  { %9210 = vst [vmem:[#allocation61_spill] sm:$0xff] %v6927_v43  ;;  %5473 = vmatprep.subr.bf16.mxu1 %v5472_v54  ;;  %v5474_v36 = vpack.c.bf16 %v1043_v38, %v1033_v26  ;;  %v1057_v12 = vsub.f32 %v6911_v27, %v8993_v11  ;;  %v9004_v26 = vand.u32 4294901760, %v6927_v43  ;;  %v197_v55 = vunpack.c.h.bf16 %v6931_v30 }
  0x86   :  { %9213 = vst [vmem:[#allocation64_spill] sm:$0xff] %v6939_v42  ;;  %v1052_v57 = vsub.f32 %v6915_v15, %v8996_v48  ;;  %v1048_v38 = vand.u32 4294901760, %v1047_v63  ;;  %5261 = vmatprep.subr.bf16.mxu0 %v6939_v42  ;;  %v6954_v58 = vcombine.low %v6917_v10, %v6919_v60  ;;  %v192_v54 = vunpack.c.l.bf16 %v6929_v62  ;;  %v6967_v15 = vld [vmem:[#allocation7 + $0xe8] sm:$0xff] }
  0x87   :  { %5475 = vmatpush1.bf16.msra.mxu1 %v5474_v36  ;;  %v1058_v11 = vand.u32 4294901760, %v1057_v12  ;;  %v1062_v48 = vsub.f32 %v6927_v43, %v9004_v26  ;;  %v6960_v36 = vsub.f32 %v193_v21, %v193_v21  ;;  %v6962_v63 = vsub.f32 %v197_v55, %v197_v55  ;;  %9217 = vst [vmem:[#allocation68_spill] sm:$0xff] %v6967_v15 }
  0x88   :  { %9214 = vst [vmem:[#allocation65_spill] sm:$0xff] %v6954_v58  ;;  %v1053_v27 = vand.u32 4294901760, %v1052_v57  ;;  %5263 = vmatpush1.bf16.msra.mxu0 %v6954_v58  ;;  %v196_v42 = vunpack.c.l.bf16 %v6931_v30  ;;  %v143_v18 = vunpack.c.h.bf16 %v6616_v1  ;;  %v6969_v40 = vsub.f32 %v192_v54, %v192_v54  ;;  %v6978_v58 = vld [vmem:[#allocation7 + $0xf8] sm:$0xff] }
  0x89   :  { %9215 = vst [vmem:[#allocation66_spill] sm:$0xff] %v6960_v36  ;;  %9216 = vst [vmem:[#allocation67_spill] sm:$0xff] %v6962_v63  ;;  %v5476_v12 = vpack.c.bf16 %v1058_v11, %v1048_v38  ;;  %v1063_v57 = vand.u32 4294901760, %v1062_v48  ;;  %v147_v26 = vunpack.c.h.bf16 %v6618_v2  ;;  %v9013_v62 = vand.u32 4294901760, %v6960_v36 }
  0x8a   :  { %9218 = vst [vmem:[#allocation69_spill] sm:$0xff] %v6969_v40  ;;  %v9016_v21 = vand.u32 4294901760, %v6962_v63  ;;  %v6974_v55 = vsub.f32 %v196_v42, %v196_v42  ;;  %v6976_v43 = vsub.f32 %v143_v18, %v143_v18  ;;  %9221 = vst [vmem:[#allocation72_spill] sm:$0xff] %v6978_v58  ;;  %v9019_v30 = vand.u32 4294901760, %v6969_v40 }
  0x8b   :  { %5477 = vmatprep.subr.bf16.mxu1 %v5476_v12  ;;  %v5478_v1 = vpack.c.bf16 %v1063_v57, %v1053_v27  ;;  %v6981_v11 = vsub.f32 %v147_v26, %v147_v26  ;;  %v201_v48 = vunpack.c.h.bf16 %v6967_v15  ;;  %v1067_v2 = vsub.f32 %v6960_v36, %v9013_v62  ;;  %v6999_v57 = vld [vmem:[#allocation2] sm:$0x3f] }
  0x8c   :  { %9219 = vst [vmem:[#allocation70_spill] sm:$0xff] %v6974_v55  ;;  %9220 = vst [vmem:[#allocation71_spill] sm:$0xff] %v6976_v43  ;;  %v1077_v42 = vsub.f32 %v6962_v63, %v9016_v21  ;;  %v9025_v18 = vand.u32 4294901760, %v6974_v55  ;;  %v9026_v54 = vand.u32 4294901760, %v6976_v43  ;;  %v1072_v27 = vsub.f32 %v6969_v40, %v9019_v30 }
  0x8d   :  { %9222 = vst [vmem:[#allocation73_spill] sm:$0xff] %v6981_v11  ;;  %5479 = vmatpush1.bf16.msra.mxu1 %v5478_v1  ;;  %v9029_v26 = vand.u32 4294901760, %v6981_v11  ;;  %v205_v38 = vunpack.c.h.bf16 %v6978_v58  ;;  %v6997_v12 = vsub.f32 %v201_v48, %v201_v48  ;;  %v1068_v62 = vand.u32 4294901760, %v1067_v2 }
  0x8e   :  { %v1078_v36 = vand.u32 4294901760, %v1077_v42  ;;  %v1082_v21 = vsub.f32 %v6974_v55, %v9025_v18  ;;  %v284_v1 = vsub.f32 %v6976_v43, %v9026_v54  ;;  %v1073_v63 = vand.u32 4294901760, %v1072_v27 }
  0x8f   :  { %9223 = vst [vmem:[#allocation74_spill] sm:$0xff] %v6997_v12  ;;  %v294_v30 = vsub.f32 %v6981_v11, %v9029_v26  ;;  %v9032_v48 = vand.u32 4294901760, %v6997_v12  ;;  %v7011_v40 = vsub.f32 %v205_v38, %v205_v38  ;;  %v86_v6 = vmul.f32 %v6999_v57, %v6999_v57 }
  0x90   :  { %v5480_v31 = vpack.c.bf16 %v1078_v36, %v1068_v62  ;;  %v1083_v2 = vand.u32 4294901760, %v1082_v21  ;;  %v285_v42 = vand.u32 4294901760, %v284_v1  ;;  %v9038_v55 = vand.u32 4294901760, %v6647_v19 }
  0x91   :  { %9224 = vst [vmem:[#allocation75_spill] sm:$0xff] %v7011_v40  ;;  %v295_v18 = vand.u32 4294901760, %v294_v30  ;;  %v1087_v54 = vsub.f32 %v6997_v12, %v9032_v48  ;;  %v9033_v27 = vand.u32 4294901760, %v7011_v40  ;;  %v88_v38 = vsel %vm87_vm0, %v86_v6, 0.0 }
  0x92   :  { %5481 = vmatprep.subr.bf16.mxu1 %v5480_v31  ;;  %v5482_v26 = vpack.c.bf16 %v1083_v2, %v1073_v63  ;;  %v98_v11 = vrot.slane %v86_v6, 3  ;;  %v9043_v62 = vand.u32 4294901760, %v6656_v23  ;;  %v89_v1 = vrot.slane %v88_v38, 4 }
  0x93   :  { %v5264_v36 = vpack.c.bf16 %v295_v18, %v285_v42  ;;  %v1088_v21 = vand.u32 4294901760, %v1087_v54  ;;  %v1097_v30 = vsub.f32 %v7011_v40, %v9033_v27  ;;  %v289_v31 = vsub.f32 %v6647_v19, %v9038_v55 }
  0x94   :  { %5483 = vmatpush1.bf16.msra.mxu1 %v5482_v26  ;;  %v100_v48 = vsel %vm87_vm0, %v98_v11, 0.0  ;;  %v299_v6 = vsub.f32 %v6656_v23, %v9043_v62  ;;  %v200_v63 = vunpack.c.l.bf16 %v6967_v15  ;;  %v90_v54 = vadd.f32 %v89_v1, %v88_v38 }
  0x95   :  { %5265 = vmatprep.subr.bf16.mxu0 %v5264_v36  ;;  %v1098_v18 = vand.u32 4294901760, %v1097_v30  ;;  %v101_v2 = vrot.slane %v100_v48, 4  ;;  %v204_v42 = vunpack.c.l.bf16 %v6978_v58  ;;  %v290_v27 = vand.u32 4294901760, %v289_v31 }
  0x96   :  { %v300_v26 = vand.u32 4294901760, %v299_v6  ;;  %v7034_v40 = vsub.f32 %v200_v63, %v200_v63  ;;  %v151_v11 = vunpack.c.h.bf16 %v6620_v3  ;;  %v91_v55 = vrot.slane %v90_v54, 2 }
  0x97   :  { %v5484_v12 = vpack.c.bf16 %v1098_v18, %v1088_v21  ;;  %v102_v19 = vadd.f32 %v101_v2, %v100_v48  ;;  %v7037_v43 = vsub.f32 %v204_v42, %v204_v42  ;;  %v155_v38 = vunpack.c.h.bf16 %v6632_v8 }
  0x98   :  { %9225 = vst [vmem:[#allocation76_spill] sm:$0xff] %v7034_v40  ;;  %v7039_v62 = vpack.c.bf16 %v300_v26, %v290_v27  ;;  %v9045_v36 = vand.u32 4294901760, %v7034_v40  ;;  %v7043_v30 = vsub.f32 %v151_v11, %v151_v11  ;;  %v92_v1 = vadd.f32 %v91_v55, %v90_v54 }
  0x99   :  { %9226 = vst [vmem:[#allocation77_spill] sm:$0xff] %v7037_v43  ;;  %5485 = vmatprep.subr.bf16.mxu1 %v5484_v12  ;;  %v103_v31 = vrot.slane %v102_v19, 2  ;;  %v9044_v6 = vand.u32 4294901760, %v7037_v43  ;;  %v5488_v3 = vpack.c.bf16 %v6661_v25, %v6650_v20  ;;  %v7052_v21 = vsub.f32 %v155_v38, %v155_v38 }
  0x9a   :  { %v1092_v48 = vsub.f32 %v7034_v40, %v9045_v36  ;;  %v9046_v27 = vand.u32 4294901760, %v7043_v30  ;;  %v9049_v8 = vand.u32 4294901760, %v6659_v24  ;;  %v93_v63 = vrot.slane %v92_v1, 1 }
  0x9b   :  { %v104_v18 = vadd.f32 %v103_v31, %v102_v19  ;;  %v1102_v55 = vsub.f32 %v7037_v43, %v9044_v6  ;;  %v9050_v12 = vand.u32 4294901760, %v6673_v32  ;;  %v9051_v42 = vand.u32 4294901760, %v7052_v21 }
  0x9c   :  { %v1093_v54 = vand.u32 4294901760, %v1092_v48  ;;  %v304_v2 = vsub.f32 %v7043_v30, %v9046_v27  ;;  %v309_v26 = vsub.f32 %v6659_v24, %v9049_v8  ;;  %v94_v11 = vadd.f32 %v93_v63, %v92_v1 }
  0x9d   :  { %v105_v38 = vrot.slane %v104_v18, 1  ;;  %v1103_v19 = vand.u32 4294901760, %v1102_v55  ;;  %v319_v31 = vsub.f32 %v6673_v32, %v9050_v12  ;;  %v314_v48 = vsub.f32 %v7052_v21, %v9051_v42 }
  0x9e   :  { %v305_v6 = vand.u32 4294901760, %v304_v2  ;;  %v310_v36 = vand.u32 4294901760, %v309_v26  ;;  %6290 = vrsqrt.f32 %v94_v11  ;;  %v159_v63 = vunpack.c.h.bf16 %v6641_v16 }
  0x9f   :  { %v106_v25 = vadd.f32 %v105_v38, %v104_v18  ;;  %v5486_v20 = vpack.c.bf16 %v1103_v19, %v1093_v54  ;;  %v320_v8 = vand.u32 4294901760, %v319_v31  ;;  %v315_v1 = vand.u32 4294901760, %v314_v48 }
  0xa0   :  { %v163_v55 = vunpack.c.h.bf16 %v6643_v17  ;;  %v9053_v26 = vand.u32 4294901760, %v6726_v4  ;;  %v9052_v42 = vand.u32 4294901760, %v6761_v56  ;;  %v7084_v18 = vsub.f32 %v159_v63, %v159_v63 }
  0xa1   :  { %6292 = vrsqrt.f32 %v106_v25  ;;  %5487 = vmatpush1.bf16.msra.mxu1 %v5486_v20  ;;  %v7078_v12 = vpack.c.bf16 %v320_v8, %v310_v36  ;;  %v7082_v11 = vpack.c.bf16 %v315_v1, %v305_v6  ;;  %v167_v25 = vunpack.c.h.bf16 %v6709_v52 }
  0xa2   :  { %5489 = vmatprep.subr.bf16.mxu1 %v5488_v3  ;;  %9227 = vst [vmem:[#allocation78_spill] sm:$0xff] %v7084_v18  ;;  %v7086_v54 = vsub.f32 %v163_v55, %v163_v55  ;;  %v7093_v17 = vsub.f32 %v6726_v4, %v9053_v26  ;;  %v7098_v20 = vsub.f32 %v6761_v56, %v9052_v42  ;;  %v171_v36 = vunpack.c.h.bf16 %v6711_v53 }
  0xa3   :  { %v9054_v6 = vand.u32 4294901760, %v7084_v18  ;;  %v9055_v38 = vand.u32 4294901760, %v6763_v59  ;;  %v9229_v19 = vunpack.c.l.bf16 %v6858_v46  ;;  %v9230_v48 = vunpack.c.l.bf16 %v6917_v10 }
  0xa4   :  { %9228 = vst [vmem:[#allocation79_spill] sm:$0xff] %v7086_v54  ;;  %v9056_v3 = vand.u32 4294901760, %v7086_v54  ;;  %v7117_v53 = vsub.f32 %v167_v25, %v167_v25  ;;  %v7119_v1 = vsub.f32 %v171_v36, %v171_v36  ;;  %v9231_v63 = vunpack.c.l.bf16 %v6919_v60 }
  0xa5   :  { %v7110_v31 = vsub.f32 %v9229_v19, %v9229_v19  ;;  %v7115_v52 = vsub.f32 %v9230_v48, %v9230_v48  ;;  %v7129_v42 = vsub.f32 %v7084_v18, %v9054_v6  ;;  %v349_v19 = vsub.f32 %v6763_v59, %v9055_v38 }
  0xa6   :  { %v7124_v55 = vsub.f32 %v9231_v63, %v9231_v63  ;;  %v9059_v48 = vand.u32 4294901760, %v6780_v35  ;;  %v9066_v36 = vand.u32 4294901760, %v7117_v53  ;;  %v9069_v26 = vand.u32 4294901760, %v7119_v1 }
  0xa7   :  { %v7143_v6 = vsub.f32 %v7086_v54, %v9056_v3  ;;  %v350_v16 = vand.u32 4294901760, %v349_v19  ;;  %v175_v27 = vunpack.c.h.bf16 %v6752_v44  ;;  %v179_v3 = vunpack.c.h.bf16 %v6754_v45 }
  0xa8   :  { %v359_v38 = vsub.f32 %v6780_v35, %v9059_v48  ;;  %v6291_v25 = vpop.eup %6290  ;;  %v344_v2 = vsub.f32 %v7117_v53, %v9066_v36  ;;  %v354_v63 = vsub.f32 %v7119_v1, %v9069_v26  ;;  %v9071_v45 = vand.u32 4294901760, %v6819_v14 }
  0xa9   :  { %v96_v8 = vmul.f32 %v6291_v25, %v6999_v57  ;;  %v7161_v36 = vsub.f32 %v175_v27, %v175_v27  ;;  %v7163_v43 = vsub.f32 %v179_v3, %v179_v3  ;;  %v9070_v25 = vand.u32 4294901760, %v6860_v13 }
  0xaa   :  { %v360_v56 = vand.u32 4294901760, %v359_v38  ;;  %v345_v54 = vand.u32 4294901760, %v344_v2  ;;  %v355_v18 = vand.u32 4294901760, %v354_v63  ;;  %vm2442_vm6 = vcmask 23552  }
  0xab   :  { %v6293_v4 = vpop.eup %6292  ;;  %v9072_v38 = vand.u32 4294901760, %v7161_v36  ;;  %v9075_v48 = vand.u32 4294901760, %v7163_v43  ;;  %vm3340_vm7 = vcmask 523264  }
  0xac   :  { %v108_v26 = vmul.f32 %v6293_v4, %v6999_v57  ;;  %v7166_v44 = vpack.c.bf16 %v360_v56, %v350_v16  ;;  %v7170_v19 = vpack.c.bf16 %v355_v18, %v345_v54  ;;  %v369_v4 = vsub.f32 %v6819_v14, %v9071_v45  ;;  %v9238_v45 = vld [vmem:[#allocation55_spill] sm:$0xff] }
  0xad   :  { %v379_v56 = vsub.f32 %v6860_v13, %v9070_v25  ;;  %v183_v57 = vunpack.c.h.bf16 %v6813_v28  ;;  %v364_v54 = vsub.f32 %v7161_v36, %v9072_v38  ;;  %v187_v16 = vunpack.c.h.bf16 %v6815_v0  ;;  %v9233_v25 = vld [vmem:[#allocation48_spill] sm:$0xff] }
  0xae   :  { %v109_v2 = vsel %vm87_vm0, %v96_v8, %v108_v26  ;;  %v374_v26 = vsub.f32 %v7163_v43, %v9075_v48  ;;  %v370_v3 = vand.u32 4294901760, %v369_v4  ;;  %v9235_v48 = vpack.c.bf16 %v6676_v34, %v6666_v29 }
  0xaf   :  { %v7184_v18 = vand.u32 4294901760, %v109_v2  ;;  %v380_v8 = vand.u32 4294901760, %v379_v56  ;;  %v7193_v63 = vsub.f32 %v183_v57, %v183_v57  ;;  %v365_v27 = vand.u32 4294901760, %v364_v54  ;;  %v9237_v56 = vld [vmem:[#allocation49_spill] sm:$0xff] }
  0xb0   :  { %v375_v38 = vand.u32 4294901760, %v374_v26  ;;  %v7201_v40 = vsub.f32 %v187_v16, %v187_v16  ;;  %v9085_v57 = vand.u32 4294901760, %v9237_v56  ;;  %v9241_v54 = vpack.c.bf16 %v6701_v47, %v6685_v39  ;;  %v9242_v16 = vld [vmem:[#allocation50_spill] sm:$0xff] }
  0xb1   :  { %9232 = vst [vmem:[#allocation80_spill] sm:$0xff] %v7184_v18  ;;  %v7198_v28 = vsub.f32 %v109_v2, %v7184_v18  ;;  %1139 = vmatmul.mubr.f32.vlgmr.msra.gmra.mrb[0].mxu1 %v7184_v18  ;;  %v7206_v0 = vpack.c.bf16 %v380_v8, %v370_v3  ;;  %v9084_v4 = vand.u32 4294901760, %v7193_v63  ;;  %v9239_v2 = vmov 0.0   ;;  %v9243_v3 = vld [vmem:[#allocation52_spill] sm:$0xff] }
  0xb2   :  { %5491 = vmatpush1.bf16.msra.mxu1 %v9235_v48  ;;  %1241 = vmatprep.mubr.f32.mxu1 %v9239_v2  ;;  %v7218_v26 = vpack.c.bf16 %v375_v38, %v365_v27  ;;  %v389_v34 = vsub.f32 %v9237_v56, %v9085_v57  ;;  %v9244_v29 = vand.u32 4294901760, %v9238_v45  ;;  %v335_v48 = vand.u32 4294901760, %v7143_v6 }
  0xb3   :  { %9234 = vst [vmem:[#allocation48_spill] sm:$0xff] %v7198_v28  ;;  %9236 = vst [vmem:[#allocation81_spill] sm:$0xff] %v7206_v0  ;;  %v7213_v18 = vand.u32 4294901760, %v7198_v28  ;;  %5493 = vmatprep.subr.bf16.mxu1 %v9241_v54  ;;  %v384_v15 = vsub.f32 %v7193_v63, %v9084_v4  ;;  %v9245_v54 = vld [vmem:[#allocation47_spill] sm:$0xff]  ;;  %v9246_v8 = vand.u32 4294901760, %v7201_v40  ;;  %v195_v4 = vunpack.c.h.bf16 %v6858_v46 }
  0xb4   :  { %v399_v47 = vsub.f32 %v9238_v45, %v9244_v29  ;;  %v191_v38 = vunpack.c.h.bf16 %v9245_v54  ;;  %v9247_v57 = vpack.c.bf16 %v6720_v61, %v6707_v51  ;;  %v390_v58 = vand.u32 4294901760, %v389_v34 }
  0xb5   :  { %9240 = vst [vmem:[#allocation82_spill] sm:$0xff] %v7213_v18  ;;  %v274_v27 = vsub.f32 %v7198_v28, %v7213_v18  ;;  %v394_v39 = vsub.f32 %v7201_v40, %v9246_v8  ;;  %v385_v0 = vand.u32 4294901760, %v384_v15  ;;  %v9249_v6 = vpack.c.bf16 %v6758_v50, %v6756_v49  ;;  %v9250_v8 = vld [vmem:[#allocation60_spill] sm:$0xff]  ;;  %v9252_v15 = vld [vmem:[#allocation61_spill] sm:$0xff] }
  0xb6   :  { %5495 = vmatpush1.bf16.msra.mxu1 %v9247_v57  ;;  %v400_v29 = vand.u32 4294901760, %v399_v47  ;;  %v7243_v45 = vsub.f32 %v191_v38, %v191_v38  ;;  %v7250_v28 = vsub.f32 %v195_v4, %v195_v4  ;;  %v9094_v46 = vand.u32 4294901760, %v9250_v8  ;;  %v9251_v47 = vld [vmem:[#allocation59_spill] sm:$0xff] }
  0xb7   :  { %v7245_v54 = vand.u32 4294901760, %v274_v27  ;;  %5497 = vmatprep.subr.bf16.mxu1 %v9249_v6  ;;  %v395_v18 = vand.u32 4294901760, %v394_v39  ;;  %v5510_v38 = vpack.c.bf16 %v9252_v15, %v9251_v47  ;;  %v9253_v4 = vand.u32 4294901760, %v7129_v42 }
  0xb8   :  { %v7253_v56 = vpack.c.bf16 %v400_v29, %v390_v58  ;;  %v9095_v57 = vand.u32 4294901760, %v7243_v45  ;;  %v409_v39 = vsub.f32 %v9250_v8, %v9094_v46  ;;  %v199_v58 = vunpack.c.h.bf16 %v6917_v10 }
  0xb9   :  { %9248 = vst [vmem:[#allocation47_spill] sm:$0xff] %v7245_v54  ;;  %276 = vmatmul.mubr.f32.vlgmr.msra.gmra.mrb[0].mxu0 %v7245_v54  ;;  %v7260_v27 = vpack.c.bf16 %v395_v18, %v385_v0  ;;  %v5272_v29 = vpack.c.bf16 %v335_v48, %v9253_v4  ;;  %v9254_v34 = vpack.c.bf16 %v6772_v22, %v6766_v9  ;;  %v9255_v0 = vand.u32 4294901760, %v7110_v31 }
  0xba   :  { %5267 = vmatpush1.bf16.msra.mxu0 %v7039_v62  ;;  %v404_v18 = vsub.f32 %v7243_v45, %v9095_v57  ;;  %v203_v46 = vunpack.c.h.bf16 %v6919_v60  ;;  %v9256_v10 = vpack.c.bf16 %v6807_v37, %v6805_v41  ;;  %v9257_v62 = vand.u32 4294901760, %v7250_v28  ;;  %474 = vmatprep.mubr.f32.mxu0 %v9239_v2 }
  0xbb   :  { %5499 = vmatpush1.bf16.msra.mxu1 %v9254_v34  ;;  %v419_v6 = vsub.f32 %v7110_v31, %v9255_v0  ;;  %5269 = vmatprep.subr.bf16.mxu0 %v7082_v11  ;;  %v410_v48 = vand.u32 4294901760, %v409_v39  ;;  %v7287_v34 = vsub.f32 %v199_v58, %v199_v58  ;;  %v9097_v4 = vand.u32 4294901760, %v7115_v52 }
  0xbc   :  { %5501 = vmatprep.subr.bf16.mxu1 %v9256_v10  ;;  %v414_v42 = vsub.f32 %v7250_v28, %v9257_v62  ;;  %v405_v57 = vand.u32 4294901760, %v404_v18  ;;  %v7290_v0 = vsub.f32 %v203_v46, %v203_v46  ;;  %v9098_v60 = vand.u32 4294901760, %v7124_v55  ;;  %v9261_v18 = vld [vmem:[#allocation71_spill] sm:$0xff]  ;;  %v9262_v62 = vld [vmem:[#allocation73_spill] sm:$0xff] }
  0xbd   :  { %v420_v54 = vand.u32 4294901760, %v419_v6  ;;  %v9258_v11 = vand.u32 4294901760, %v7093_v17  ;;  %v9259_v10 = vand.u32 4294901760, %v7098_v20  ;;  %v9101_v39 = vand.u32 4294901760, %v7287_v34 }
  0xbe   :  { %v415_v47 = vand.u32 4294901760, %v414_v42  ;;  %v429_v58 = vsub.f32 %v7115_v52, %v9097_v4  ;;  %5271 = vmatpush1.bf16.msra.mxu0 %v7078_v12  ;;  %v9260_v46 = vpack.c.bf16 %v6823_v5, %v6811_v33  ;;  %v9102_v17 = vand.u32 4294901760, %v7290_v0  ;;  %v9265_v4 = vld [vmem:[#allocation58_spill] sm:$0xff]  ;;  %v9266_v42 = vld [vmem:[#allocation20_spill] sm:$0xff] }
  0xbf   :  { %v5274_v15 = vpack.c.bf16 %v9259_v10, %v9258_v11  ;;  %v7306_v6 = vpack.c.bf16 %v420_v54, %v410_v48  ;;  %v439_v20 = vsub.f32 %v7124_v55, %v9098_v60  ;;  %5273 = vmatprep.subr.bf16.mxu0 %v5272_v29  ;;  %v9263_v11 = vpack.c.bf16 %v9233_v25, %v6862_v7  ;;  %v9264_v10 = vld [vmem:[#allocation57_spill] sm:$0xff] }
  0xc0   :  { %5503 = vmatpush1.bf16.msra.mxu1 %v9260_v46  ;;  %v5288_v12 = vpack.c.bf16 %v415_v47, %v405_v57  ;;  %v5508_v46 = vpack.c.bf16 %v9265_v4, %v9264_v10  ;;  %v424_v54 = vsub.f32 %v7287_v34, %v9101_v39  ;;  %v430_v48 = vand.u32 4294901760, %v429_v58  ;;  %v9274_v47 = vld [vmem:[#allocation49_spill] sm:$0xff]  ;;  %v9279_v57 = vld [vmem:[#allocation76_spill] sm:$0xff] }
  0xc1   :  { %5505 = vmatprep.subr.bf16.mxu1 %v9263_v11  ;;  %v434_v60 = vsub.f32 %v7290_v0, %v9102_v17  ;;  %v440_v5 = vand.u32 4294901760, %v439_v20  ;;  %v9267_v11 = vpack.c.bf16 %v9243_v3, %v9242_v16  ;;  %v9268_v20 = vld [vmem:[#allocation66_spill] sm:$0xff]  ;;  %v9269_v17 = vld [vmem:[#allocation67_spill] sm:$0xff]  ;;  %v9282_v10 = vld [vmem:[#allocation24_spill] sm:$0xff] }
  0xc2   :  { %v425_v33 = vand.u32 4294901760, %v424_v54  ;;  %5275 = vmatpush1.bf16.msra.mxu0 %v5274_v15  ;;  %v5512_v29 = vpack.c.bf16 %v9269_v17, %v9268_v20  ;;  %v9275_v15 = vld [vmem:[#allocation55_spill] sm:$0xff]  ;;  %v9280_v17 = vld [vmem:[#allocation77_spill] sm:$0xff] }
  0xc3   :  { %v435_v58 = vand.u32 4294901760, %v434_v60  ;;  %v5294_v39 = vpack.c.bf16 %v440_v5, %v430_v48  ;;  %5277 = vmatprep.subr.bf16.mxu0 %v7170_v19  ;;  %v9270_v5 = vld [vmem:[#allocation69_spill] sm:$0xff]  ;;  %v9271_v19 = vld [vmem:[#allocation70_spill] sm:$0xff]  ;;  %v5518_v20 = vpack.c.bf16 %v9280_v17, %v9279_v57  ;;  %v9283_v3 = vld [vmem:[#allocation19_spill] sm:$0xff] }
  0xc4   :  { %5507 = vmatpush1.bf16.msra.mxu1 %v9267_v11  ;;  %v9272_v48 = vld [vmem:[#allocation74_spill] sm:$0xff]  ;;  %v9273_v11 = vld [vmem:[#allocation75_spill] sm:$0xff] }
  0xc5   :  { %5509 = vmatprep.subr.bf16.mxu1 %v5508_v46  ;;  %v5292_v54 = vpack.c.bf16 %v435_v58, %v425_v33  ;;  %v5514_v46 = vpack.c.bf16 %v9271_v19, %v9270_v5  ;;  %v5516_v58 = vpack.c.bf16 %v9273_v11, %v9272_v48  ;;  %v9278_v5 = vld [vmem:[#allocation81_spill] sm:$0xff] }
  0xc6   :  { %5279 = vmatpush1.bf16.msra.mxu0 %v7166_v44  ;;  %v6339_v44 = vld [vmem:[#allocation7 + $0x18] sm:$0xff] }
  0xc7   :  { %5281 = vmatprep.subr.bf16.mxu0 %v7218_v26  ;;  %v9276_v26 = vld [vmem:[#allocation72_spill] sm:$0xff] }
  0xc8   :  { %5511 = vmatpush1.bf16.msra.mxu1 %v5510_v38  ;;  %v6338_v38 = vld [vmem:[#allocation7 + $0x8] sm:$0xff] }
  0xc9   :  { %5513 = vmatprep.subr.bf16.mxu1 %v5512_v29  ;;  %v9277_v29 = vld [vmem:[#allocation68_spill] sm:$0xff]  ;;  %v7375_v33 = vcombine.high %v6338_v38, %v6339_v44  ;;  %v7377_v4 = vcombine.low %v6338_v38, %v6339_v44  ;;  %v9287_v44 = vand.u32 4294901760, %v9272_v48  ;;  %v9288_v38 = vand.u32 4294901760, %v9273_v11 }
  0xca   :  { %v7365_v19 = vcombine.high %v9277_v29, %v9276_v26  ;;  %5283 = vmatpush1.bf16.msra.mxu0 %v9278_v5  ;;  %v7372_v60 = vcombine.low %v9277_v29, %v9276_v26  ;;  %v7381_v5 = vcombine.high %v9283_v3, %v9282_v10  ;;  %v9296_v48 = vand.u32 4294901760, %v7043_v30 }
  0xcb   :  { %5285 = vmatprep.subr.bf16.mxu0 %v7260_v27  ;;  %9281 = vst [vmem:[#allocation60_spill] sm:$0xff] %v7375_v33  ;;  %v9284_v27 = vand.u32 4294901760, %v9261_v18  ;;  %v7398_v29 = vpack.c.bf16 %v9288_v38, %v9287_v44  ;;  %v9297_v11 = vand.u32 4294901760, %v7052_v21  ;;  %v9300_v38 = vand.u32 4294901760, %v6673_v32 }
  0xcc   :  { %5515 = vmatpush1.bf16.msra.mxu1 %v5514_v46  ;;  %v7386_v46 = vcombine.low %v9283_v3, %v9282_v10  ;;  %v9291_v3 = vand.u32 4294901760, %v6656_v23 }
  0xcd   :  { %5517 = vmatprep.subr.bf16.mxu1 %v5516_v58  ;;  %v9285_v58 = vand.u32 4294901760, %v9262_v62  ;;  %9289 = vst [vmem:[#allocation73_spill] sm:$0xff] %v7398_v29  ;;  %v7417_v44 = vpack.c.bf16 %v9297_v11, %v9296_v48  ;;  %v9312_v48 = vand.u32 4294901760, %v7117_v53  ;;  %v9313_v11 = vand.u32 4294901760, %v7119_v1 }
  0xce   :  { %5287 = vmatpush1.bf16.msra.mxu0 %v7253_v56  ;;  %v9290_v56 = vand.u32 4294901760, %v9266_v42 }
  0xcf   :  { %v7392_v26 = vpack.c.bf16 %v9285_v58, %v9284_v27  ;;  %5289 = vmatprep.subr.bf16.mxu0 %v5288_v12  ;;  %v9294_v27 = vand.u32 4294901760, %v9280_v17  ;;  %9298 = vst [vmem:[#allocation75_spill] sm:$0xff] %v7417_v44  ;;  %v9299_v12 = vand.u32 4294901760, %v6659_v24  ;;  %v9307_v17 = vld [vmem:[#allocation33_spill] sm:$0xff]  ;;  %v7441_v44 = vpack.c.bf16 %v9313_v11, %v9312_v48 }
  0xd0   :  { %5519 = vmatpush1.bf16.msra.mxu1 %v5518_v20  ;;  %v7405_v10 = vpack.c.bf16 %v9291_v3, %v9290_v56  ;;  %v9293_v20 = vand.u32 4294901760, %v9279_v57  ;;  %v9302_v56 = vld [vmem:[#allocation78_spill] sm:$0xff]  ;;  %v9324_v11 = vand.u32 4294901760, %v7193_v63 }
  0xd1   :  { %9286 = vst [vmem:[#allocation71_spill] sm:$0xff] %v7392_v26  ;;  %5521 = vmatprep.subr.bf16.mxu1 %v7375_v33  ;;  %v7423_v26 = vpack.c.bf16 %v9300_v38, %v9299_v12  ;;  %v9303_v3 = vand.u32 4294901760, %v9302_v56  ;;  %9314 = vst [vmem:[#allocation68_spill] sm:$0xff] %v7441_v44  ;;  %v9315_v12 = vld [vmem:[#allocation48_spill] sm:$0xff]  ;;  %v9316_v38 = vand.u32 4294901760, %v6763_v59  ;;  %v9325_v44 = vand.u32 4294901760, %v7201_v40 }
  0xd2   :  { %9292 = vst [vmem:[#allocation20_spill] sm:$0xff] %v7405_v10  ;;  %v7411_v58 = vpack.c.bf16 %v9294_v27, %v9293_v20  ;;  %v9304_v10 = vld [vmem:[#allocation79_spill] sm:$0xff]  ;;  %v9308_v20 = vand.u32 4294901760, %v9307_v17  ;;  %v9309_v27 = vld [vmem:[#allocation36_spill] sm:$0xff]  ;;  %5291 = vmatpush1.bf16.msra.mxu0 %v7306_v6 }
  0xd3   :  { %9301 = vst [vmem:[#allocation49_spill] sm:$0xff] %v7423_v26  ;;  %v9305_v57 = vand.u32 4294901760, %v9304_v10  ;;  %1244 = vmatmul.mubr.f32.vlgmr.msra.gmra.mrb[0].mxu1 %v9315_v12  ;;  %v9317_v26 = vand.u32 4294901760, %v6780_v35  ;;  %v7466_v16 = vpack.c.bf16 %v9325_v44, %v9324_v11  ;;  %v9334_v44 = vand.u32 4294901760, %v7110_v31  ;;  %5293 = vmatprep.subr.bf16.mxu0 %v5292_v54  ;;  %v9335_v6 = vld [vmem:[#allocation32_spill] sm:$0xff] }
  0xd4   :  { %9295 = vst [vmem:[#allocation74_spill] sm:$0xff] %v7411_v58  ;;  %v9310_v58 = vand.u32 4294901760, %v9309_v27  ;;  %5523 = vmatpush1.bf16.msra.mxu1 %v7377_v4  ;;  %1314 = vmatprep.mubr.f32.mxu1 %v9239_v2 }
  0xd5   :  { %v7429_v33 = vpack.c.bf16 %v9305_v57, %v9303_v3  ;;  %v7448_v3 = vpack.c.bf16 %v9317_v26, %v9316_v38  ;;  %v9318_v57 = vand.u32 4294901760, %v7161_v36  ;;  %9326 = vst [vmem:[#allocation77_spill] sm:$0xff] %v7466_v16  ;;  %v9327_v26 = vand.u32 4294901760, %v9274_v47  ;;  %5525 = vmatprep.subr.bf16.mxu1 %v7381_v5  ;;  %v9336_v16 = vld [vmem:[#allocation31_spill] sm:$0xff] }
  0xd6   :  { %v7435_v29 = vpack.c.bf16 %v9310_v58, %v9308_v20  ;;  %v9321_v20 = vand.u32 4294901760, %v6819_v14  ;;  %5295 = vmatpush1.bf16.msra.mxu0 %v5294_v39  ;;  %v7509_v54 = vcombine.low %v9336_v16, %v9335_v6  ;;  %v9345_v39 = vpack.c.bf16 %v6656_v23, %v9266_v42 }
  0xd7   :  { %9306 = vst [vmem:[#allocation55_spill] sm:$0xff] %v7429_v33  ;;  %v9319_v33 = vand.u32 4294901760, %v7163_v43  ;;  %v9349_v23 = vpack.c.bf16 %v6673_v32, %v6659_v24  ;;  %v5306_v42 = vpack.c.bf16 %v9309_v27, %v9307_v17  ;;  %v9352_v32 = vpack.c.bf16 %v7119_v1, %v7117_v53  ;;  %v9353_v17 = vld [vmem:[#allocation63_spill] sm:$0xff]  ;;  %v9354_v27 = vld [vmem:[#allocation62_spill] sm:$0xff] }
  0xd8   :  { %9311 = vst [vmem:[#allocation72_spill] sm:$0xff] %v7435_v29  ;;  %v9322_v29 = vand.u32 4294901760, %v6860_v13  ;;  %5527 = vmatpush1.bf16.msra.mxu1 %v7386_v46  ;;  %v9356_v53 = vpack.c.bf16 %v7163_v43, %v7161_v36  ;;  %v9357_v1 = vpack.c.bf16 %v6860_v13, %v6819_v14  ;;  %v9363_v36 = vpack.c.bf16 %v9275_v15, %v9274_v47  ;;  %v9364_v14 = vld [vmem:[#allocation25_spill] sm:$0xff] }
  0xd9   :  { %v7454_v58 = vpack.c.bf16 %v9319_v33, %v9318_v57  ;;  %v9328_v33 = vand.u32 4294901760, %v9275_v15  ;;  %v9330_v57 = vand.u32 4294901760, %v7243_v45  ;;  %v9365_v13 = vand.u32 4294901760, %v9364_v14  ;;  %v9397_v14 = vld [vmem:[#allocation52_spill] sm:$0xff] }
  0xda   :  { %v7460_v48 = vpack.c.bf16 %v9322_v29, %v9321_v20  ;;  %v9331_v29 = vand.u32 4294901760, %v7250_v28  ;;  %v9374_v47 = vpack.c.bf16 %v7110_v31, %v9250_v8  ;;  %v9375_v15 = vand.u32 4294901760, %v6707_v51 }
  0xdb   :  { %9320 = vst [vmem:[#allocation81_spill] sm:$0xff] %v7454_v58  ;;  %v7474_v38 = vpack.c.bf16 %v9328_v33, %v9327_v26  ;;  %v7491_v58 = vcombine.high %v9336_v16, %v9335_v6  ;;  %v9337_v26 = vand.u32 4294901760, %v7287_v34  ;;  %v9338_v33 = vand.u32 4294901760, %v7290_v0  ;;  %v9347_v6 = vld [vmem:[#allocation44_spill] sm:$0xff] }
  0xdc   :  { %9323 = vst [vmem:[#allocation76_spill] sm:$0xff] %v7460_v48  ;;  %v7480_v20 = vpack.c.bf16 %v9331_v29, %v9330_v57  ;;  %v9333_v48 = vand.u32 4294901760, %v9250_v8  ;;  %v9339_v57 = vand.u32 4294901760, %v7115_v52  ;;  %v9340_v29 = vand.u32 4294901760, %v7124_v55 }
  0xdd   :  { %9329 = vst [vmem:[#allocation24_spill] sm:$0xff] %v7474_v38  ;;  %v7497_v38 = vpack.c.bf16 %v9338_v33, %v9337_v26  ;;  %5529 = vmatprep.subr.bf16.mxu1 %v7491_v58  ;;  %v9343_v26 = vld [vmem:[#allocation37_spill] sm:$0xff]  ;;  %v9380_v31 = vpack.c.bf16 %v7124_v55, %v7115_v52  ;;  %v9381_v51 = vand.u32 4294901760, %v6766_v9 }
  0xde   :  { %9332 = vst [vmem:[#allocation19_spill] sm:$0xff] %v7480_v20  ;;  %v7486_v11 = vpack.c.bf16 %v9334_v44, %v9333_v48  ;;  %v7503_v20 = vpack.c.bf16 %v9340_v29, %v9339_v57  ;;  %v9341_v48 = vpack.c.bf16 %v9262_v62, %v9261_v18  ;;  %v9342_v44 = vld [vmem:[#allocation39_spill] sm:$0xff]  ;;  %v9344_v57 = vld [vmem:[#allocation80_spill] sm:$0xff]  ;;  %5531 = vmatpush1.bf16.msra.mxu1 %v7509_v54  ;;  %v9387_v52 = vld [vmem:[#allocation41_spill] sm:$0xff] }
  0xdf   :  { %v7517_v33 = vcombine.high %v9343_v26, %v9342_v44  ;;  %476 = vmatmul.mubr.f32.vlgmr.msra.gmra.mrb[0].mxu0 %v9344_v57  ;;  %v7526_v16 = vcombine.low %v9343_v26, %v9342_v44  ;;  %v9346_v18 = vpack.c.bf16 %v7052_v21, %v7043_v30  ;;  %v5304_v62 = vpack.c.bf16 %v9304_v10, %v9302_v56  ;;  %v9348_v29 = vld [vmem:[#allocation43_spill] sm:$0xff]  ;;  %v9350_v21 = vld [vmem:[#allocation54_spill] sm:$0xff] }
  0xe0   :  { %5297 = vmatprep.subr.bf16.mxu0 %v9341_v48  ;;  %v7536_v48 = vcombine.high %v9348_v29, %v9347_v6  ;;  %578 = vmatprep.mubr.f32.mxu0 %v9239_v2  ;;  %v7547_v30 = vcombine.low %v9348_v29, %v9347_v6  ;;  %v9351_v10 = vld [vmem:[#allocation51_spill] sm:$0xff]  ;;  %v7565_v44 = vcombine.high %v9354_v27, %v9353_v17  ;;  %v9388_v55 = vand.u32 4294901760, %v9387_v52  ;;  %v9420_v52 = vld [vmem:[#allocation40_spill] sm:$0xff] }
  0xe1   :  { %5299 = vmatpush1.bf16.msra.mxu0 %v9345_v39  ;;  %5533 = vmatprep.subr.bf16.mxu1 %v7517_v33  ;;  %v7552_v56 = vcombine.high %v9351_v10, %v9350_v21  ;;  %v7557_v24 = vcombine.low %v9351_v10, %v9350_v21  ;;  %v9355_v26 = vpack.c.bf16 %v6780_v35, %v6763_v59  ;;  %v9359_v35 = vld [vmem:[#allocation21_spill] sm:$0xff]  ;;  %v9366_v29 = vld [vmem:[#allocation27_spill] sm:$0xff]  ;;  %v9371_v10 = vld [vmem:[#allocation30_spill] sm:$0xff] }
  0xe2   :  { %5301 = vmatprep.subr.bf16.mxu0 %v9346_v18  ;;  %5535 = vmatpush1.bf16.msra.mxu1 %v7526_v16  ;;  %v7573_v39 = vcombine.low %v9354_v27, %v9353_v17  ;;  %v9358_v59 = vpack.c.bf16 %v7201_v40, %v7193_v63  ;;  %v9360_v18 = vand.u32 4294901760, %v9359_v35  ;;  %v9368_v40 = vpack.c.bf16 %v7250_v28, %v7243_v45  ;;  %v9369_v63 = vld [vmem:[#allocation28_spill] sm:$0xff]  ;;  %v9373_v27 = vld [vmem:[#allocation82_spill] sm:$0xff]  ;;  %v9386_v35 = vld [vmem:[#allocation17_spill] sm:$0xff] }
  0xe3   :  { %5537 = vmatprep.subr.bf16.mxu1 %v7536_v48  ;;  %v9370_v21 = vand.u32 4294901760, %v9369_v63  ;;  %v9377_v45 = vpack.c.bf16 %v7290_v0, %v7287_v34  ;;  %v9378_v28 = vand.u32 4294901760, %v6756_v49  ;;  %v9383_v34 = vld [vmem:[#allocation16_spill] sm:$0xff]  ;;  %v9384_v49 = vand.u32 4294901760, %v6805_v41  ;;  %v9402_v63 = vld [vmem:[#allocation58_spill] sm:$0xff] }
  0xe4   :  { %v9393_v41 = vand.u32 4294901760, %v9233_v25  ;;  %v9404_v25 = vld [vmem:[#allocation29_spill] sm:$0xff] }
  0xe5   :  { %5303 = vmatpush1.bf16.msra.mxu0 %v9349_v23  ;;  %v9367_v23 = vand.u32 4294901760, %v9366_v29 }
  0xe6   :  { %5305 = vmatprep.subr.bf16.mxu0 %v5304_v62  ;;  %5539 = vmatpush1.bf16.msra.mxu1 %v7547_v30  ;;  %v9361_v62 = vld [vmem:[#allocation23_spill] sm:$0xff] }
  0xe7   :  { %5541 = vmatprep.subr.bf16.mxu1 %v7552_v56  ;;  %v9362_v6 = vand.u32 4294901760, %v9361_v62 }
  0xe9   :  { %5307 = vmatpush1.bf16.msra.mxu0 %v5306_v42  ;;  %v5552_v43 = vpack.c.bf16 %v9362_v6, %v9360_v18  ;;  %v5554_v42 = vpack.c.bf16 %v9367_v23, %v9365_v13  ;;  %v9389_v18 = vld [vmem:[#allocation42_spill] sm:$0xff]  ;;  %v9392_v6 = vand.u32 4294901760, %v6862_v7  ;;  %v9398_v13 = vand.u32 4294901760, %v9397_v14  ;;  %v9430_v14 = vld [vmem:[#allocation71_spill] sm:$0xff] }
  0xea   :  { %5309 = vmatprep.subr.bf16.mxu0 %v9352_v32  ;;  %5543 = vmatpush1.bf16.msra.mxu1 %v7557_v24  ;;  %v9372_v32 = vand.u32 4294901760, %v9371_v10  ;;  %v9390_v9 = vand.u32 4294901760, %v9389_v18  ;;  %v9399_v23 = vld [vmem:[#allocation26_spill] sm:$0xff]  ;;  %v9403_v7 = vand.u32 4294901760, %v9402_v63  ;;  %v9405_v10 = vld [vmem:[#allocation59_spill] sm:$0xff]  ;;  %v9422_v18 = vld [vmem:[#allocation73_spill] sm:$0xff] }
  0xeb   :  { %5545 = vmatprep.subr.bf16.mxu1 %v7565_v44  ;;  %v9435_v63 = vld [vmem:[#allocation72_spill] sm:$0xff] }
  0xec   :  { %v5556_v17 = vpack.c.bf16 %v9372_v32, %v9370_v21  ;;  %v5566_v62 = vpack.c.bf16 %v9390_v9, %v9388_v55  ;;  %v9406_v32 = vand.u32 4294901760, %v9405_v10  ;;  %v9421_v55 = vld [vmem:[#allocation45_spill] sm:$0xff]  ;;  %v9423_v9 = vld [vmem:[#allocation46_spill] sm:$0xff] }
  0xed   :  { %5311 = vmatpush1.bf16.msra.mxu0 %v9355_v26  ;;  %v9376_v26 = vand.u32 4294901760, %v6720_v61  ;;  %v9382_v61 = vand.u32 4294901760, %v6772_v22  ;;  %v9391_v22 = vld [vmem:[#allocation18_spill] sm:$0xff]  ;;  %v9439_v10 = vld [vmem:[#allocation77_spill] sm:$0xff] }
  0xee   :  { %5313 = vmatprep.subr.bf16.mxu0 %v9356_v53  ;;  %5547 = vmatpush1.bf16.msra.mxu1 %v7573_v39 }
  0xef   :  { %5549 = vmatprep.subr.bf16.mxu1 %v7365_v19  ;;  %v5558_v53 = vpack.c.bf16 %v9376_v26, %v9375_v15  ;;  %v5562_v8 = vpack.c.bf16 %v9382_v61, %v9381_v51  ;;  %v9409_v26 = vld [vmem:[#allocation34_spill] sm:$0xff]  ;;  %v9415_v51 = vld [vmem:[#allocation69_spill] sm:$0xff] }
  0xf0   :  { %v9416_v61 = vand.u32 4294901760, %v9415_v51 }
  0xf1   :  { %5315 = vmatpush1.bf16.msra.mxu0 %v9357_v1  ;;  %v9379_v1 = vand.u32 4294901760, %v6758_v50  ;;  %v9385_v50 = vand.u32 4294901760, %v6807_v37  ;;  %v9394_v37 = vld [vmem:[#allocation22_spill] sm:$0xff] }
  0xf2   :  { %5317 = vmatprep.subr.bf16.mxu0 %v9358_v59  ;;  %5551 = vmatpush1.bf16.msra.mxu1 %v7372_v60 }
  0xf3   :  { %5553 = vmatprep.subr.bf16.mxu1 %v5552_v43  ;;  %v5560_v59 = vpack.c.bf16 %v9379_v1, %v9378_v28  ;;  %v5564_v0 = vpack.c.bf16 %v9385_v50, %v9384_v49  ;;  %v5568_v43 = vpack.c.bf16 %v9393_v41, %v9392_v6  ;;  %v9412_v28 = vld [vmem:[#allocation67_spill] sm:$0xff]  ;;  %v9425_v6 = vld [vmem:[#allocation53_spill] sm:$0xff]  ;;  %v9426_v41 = vld [vmem:[#allocation60_spill] sm:$0xff] }
  0xf4   :  { %v9413_v1 = vand.u32 4294901760, %v9412_v28 }
  0xf5   :  { %5319 = vmatpush1.bf16.msra.mxu0 %v9363_v36  ;;  %1318 = vmatmul.mubr.f32.vlgmr.msra.gmra.mrb[0].mxu1 %v9373_v27 }
  0xf6   :  { %5321 = vmatprep.subr.bf16.mxu0 %v9368_v40  ;;  %5555 = vmatpush1.bf16.msra.mxu1 %v5554_v42  ;;  %v9400_v42 = vld [vmem:[#allocation57_spill] sm:$0xff] }
  0xf7   :  { %5557 = vmatprep.subr.bf16.mxu1 %v5556_v17  ;;  %1452 = vmatprep.mubr.f32.mxu1 %v9239_v2  ;;  %v9401_v40 = vand.u32 4294901760, %v9400_v42  ;;  %v9407_v17 = vld [vmem:[#allocation61_spill] sm:$0xff] }
  0xf8   :  { %v9433_v42 = vld [vmem:[#allocation49_spill] sm:$0xff] }
  0xf9   :  { %5323 = vmatpush1.bf16.msra.mxu0 %v9374_v47  ;;  %v5572_v21 = vpack.c.bf16 %v9403_v7, %v9401_v40  ;;  %v9408_v47 = vand.u32 4294901760, %v9407_v17  ;;  %v9434_v40 = vld [vmem:[#allocation55_spill] sm:$0xff]  ;;  %v9437_v7 = vld [vmem:[#allocation81_spill] sm:$0xff] }
  0xfa   :  { %5325 = vmatprep.subr.bf16.mxu0 %v9377_v45  ;;  %5559 = vmatpush1.bf16.msra.mxu1 %v5558_v53  ;;  %v9410_v53 = vld [vmem:[#allocation66_spill] sm:$0xff]  ;;  %v9441_v17 = vld [vmem:[#allocation19_spill] sm:$0xff] }
  0xfb   :  { %5561 = vmatprep.subr.bf16.mxu1 %v5560_v59  ;;  %v5574_v15 = vpack.c.bf16 %v9408_v47, %v9406_v32  ;;  %v9411_v45 = vand.u32 4294901760, %v9410_v53  ;;  %v9440_v32 = vld [vmem:[#allocation24_spill] sm:$0xff]  ;;  %v7807_v53 = vld [vmem:[#allocation8 + $0x50] sm:$0xff]  }
  0xfd   :  { %5327 = vmatpush1.bf16.msra.mxu0 %v9380_v31  ;;  %v5576_v59 = vpack.c.bf16 %v9413_v1, %v9411_v45  ;;  %v9414_v31 = vld [vmem:[#allocation35_spill] sm:$0xff] }
  0xfe   :  { %5329 = vmatprep.subr.bf16.mxu0 %v9383_v34  ;;  %5563 = vmatpush1.bf16.msra.mxu1 %v5562_v8  ;;  %v9417_v8 = vld [vmem:[#allocation70_spill] sm:$0xff] }
  0xff   :  { %5565 = vmatprep.subr.bf16.mxu1 %v5564_v0  ;;  %v9418_v49 = vand.u32 4294901760, %v9417_v8  ;;  %v9419_v0 = vld [vmem:[#allocation38_spill] sm:$0xff] }
 0x100   :  { %581 = vmatmul.mubr.f32.vlgmr.msra.gmra.mrb[0].mxu0 %v9315_v12  ;;  %v9395_v12 = vld [vmem:[#allocation50_spill] sm:$0xff] }
 0x101   :  { %5331 = vmatpush1.bf16.msra.mxu0 %v9386_v35  ;;  %651 = vmatprep.mubr.f32.mxu0 %v9239_v2  ;;  %v9396_v36 = vand.u32 4294901760, %v9395_v12  ;;  %v5578_v50 = vpack.c.bf16 %v9418_v49, %v9416_v61  ;;  %v9428_v12 = vld [vmem:[#allocation64_spill] sm:$0xff] }
 0x102   :  { %5333 = vmatprep.subr.bf16.mxu0 %v9391_v22  ;;  %5567 = vmatpush1.bf16.msra.mxu1 %v5566_v62  ;;  %v9424_v62 = vld [vmem:[#allocation74_spill] sm:$0xff] }
 0x103   :  { %v5570_v29 = vpack.c.bf16 %v9398_v13, %v9396_v36  ;;  %5569 = vmatprep.subr.bf16.mxu1 %v5568_v43  ;;  %v9427_v43 = vld [vmem:[#allocation56_spill] sm:$0xff]  ;;  %v9429_v36 = vld [vmem:[#allocation65_spill] sm:$0xff] }
 0x104   :  { %v9431_v13 = vld [vmem:[#allocation20_spill] sm:$0xff] }
 0x105   :  { %5335 = vmatpush1.bf16.msra.mxu0 %v9394_v37 }
 0x106   :  { %5337 = vmatprep.subr.bf16.mxu0 %v9399_v23  ;;  %5571 = vmatpush1.bf16.msra.mxu1 %v5570_v29  ;;  %v9432_v29 = vld [vmem:[#allocation75_spill] sm:$0xff] }
 0x107   :  { %5573 = vmatprep.subr.bf16.mxu1 %v5572_v21  ;;  %v9438_v21 = vld [vmem:[#allocation76_spill] sm:$0xff] }
 0x109   :  { %5339 = vmatpush1.bf16.msra.mxu0 %v9404_v25 }
 0x10a   :  { %5341 = vmatprep.subr.bf16.mxu0 %v9409_v26  ;;  %5575 = vmatpush1.bf16.msra.mxu1 %v5574_v15 }
 0x10b   :  { %5577 = vmatprep.subr.bf16.mxu1 %v5576_v59 }
 0x10d   :  { %5343 = vmatpush1.bf16.msra.mxu0 %v9414_v31 }
 0x10e   :  { %5345 = vmatprep.subr.bf16.mxu0 %v9419_v0  ;;  %5579 = vmatpush1.bf16.msra.mxu1 %v5578_v50 }
 0x10f   :  { %5581 = vmatprep.subr.bf16.mxu1 %v9422_v18 }
 0x111   :  { %5347 = vmatpush1.bf16.msra.mxu0 %v9420_v52 }
 0x112   :  { %5349 = vmatprep.subr.bf16.mxu0 %v9421_v55  ;;  %5583 = vmatpush1.bf16.msra.mxu1 %v9424_v62 }
 0x113   :  { %5585 = vmatprep.subr.bf16.mxu1 %v9426_v41 }
 0x115   :  { %5351 = vmatpush1.bf16.msra.mxu0 %v9423_v9  ;;  %1454 = vmatmul.mubr.f32.vlgmr.msra.gmra.mrb[0].mxu1 %v9344_v57 }
 0x116   :  { %5353 = vmatprep.subr.bf16.mxu0 %v9425_v6  ;;  %5587 = vmatpush1.bf16.msra.mxu1 %v7377_v4 }
 0x117   :  { %5589 = vmatprep.subr.bf16.mxu1 %v7381_v5  ;;  %1524 = vmatprep.mubr.f32.mxu1 %v9239_v2 }
 0x119   :  { %5355 = vmatpush1.bf16.msra.mxu0 %v9427_v43 }
 0x11a   :  { %5357 = vmatprep.subr.bf16.mxu0 %v9428_v12  ;;  %5591 = vmatpush1.bf16.msra.mxu1 %v7386_v46 }
 0x11b   :  { %5593 = vmatprep.subr.bf16.mxu1 %v7491_v58 }
 0x11d   :  { %5359 = vmatpush1.bf16.msra.mxu0 %v9429_v36 }
 0x11e   :  { %5361 = vmatprep.subr.bf16.mxu0 %v9430_v14  ;;  %5595 = vmatpush1.bf16.msra.mxu1 %v7509_v54 }
 0x11f   :  { %5597 = vmatprep.subr.bf16.mxu1 %v7517_v33 }
 0x120   :  { %655 = vmatmul.mubr.f32.vlgmr.msra.gmra.mrb[0].mxu0 %v9373_v27  ;;  %v9436_v27 = vld [vmem:[#allocation68_spill] sm:$0xff] }
 0x121   :  { %5363 = vmatpush1.bf16.msra.mxu0 %v9431_v13  ;;  %789 = vmatprep.mubr.f32.mxu0 %v9239_v2  ;;  %v7836_v13 = vld [vmem:[#allocation8 + $0x18] sm:$0xff]  }
 0x122   :  { %5365 = vmatprep.subr.bf16.mxu0 %v9432_v29  ;;  %5599 = vmatpush1.bf16.msra.mxu1 %v7526_v16 }
 0x123   :  { %5601 = vmatprep.subr.bf16.mxu1 %v7536_v48 }
 0x125   :  { %5367 = vmatpush1.bf16.msra.mxu0 %v9433_v42 }
 0x126   :  { %5369 = vmatprep.subr.bf16.mxu0 %v9434_v40  ;;  %5603 = vmatpush1.bf16.msra.mxu1 %v7547_v30 }
 0x127   :  { %5605 = vmatprep.subr.bf16.mxu1 %v7552_v56 }
 0x129   :  { %5371 = vmatpush1.bf16.msra.mxu0 %v9435_v63 }
 0x12a   :  { %5373 = vmatprep.subr.bf16.mxu0 %v9436_v27  ;;  %5607 = vmatpush1.bf16.msra.mxu1 %v7557_v24 }
 0x12b   :  { %5609 = vmatprep.subr.bf16.mxu1 %v7565_v44 }
 0x12d   :  { %5375 = vmatpush1.bf16.msra.mxu0 %v7448_v3 }
 0x12e   :  { %5377 = vmatprep.subr.bf16.mxu0 %v9437_v7  ;;  %5611 = vmatpush1.bf16.msra.mxu1 %v7573_v39 }
 0x12f   :  { %5613 = vmatprep.subr.bf16.mxu1 %v7365_v19 }
 0x131   :  { %5379 = vmatpush1.bf16.msra.mxu0 %v9438_v21 }
 0x132   :  { %5381 = vmatprep.subr.bf16.mxu0 %v9439_v10  ;;  %5615 = vmatpush1.bf16.msra.mxu1 %v7372_v60 }
 0x135   :  { %5383 = vmatpush1.bf16.msra.mxu0 %v9440_v32  ;;  %1526 = vmatmul.mubr.f32.vlgmr.msra.gmra.mrb[0].mxu1 %v9344_v57 }
 0x136   :  { %5385 = vmatprep.subr.bf16.mxu0 %v9441_v17 }
 0x139   :  { %5387 = vmatpush1.bf16.msra.mxu0 %v7486_v11 }
 0x13a   :  { %5389 = vmatprep.subr.bf16.mxu0 %v7497_v38 }
 0x13d   :  { %5391 = vmatpush1.bf16.msra.mxu0 %v7503_v20 }
 0x13e   :  { %5393 = vmatprep.subr.bf16.mxu0 %v9383_v34 }
 0x140   :  { %791 = vmatmul.mubr.f32.vlgmr.msra.gmra.mrb[0].mxu0 %v9344_v57 }
 0x141   :  { %5395 = vmatpush1.bf16.msra.mxu0 %v9386_v35  ;;  %861 = vmatprep.mubr.f32.mxu0 %v9239_v2 }
 0x142   :  { %5397 = vmatprep.subr.bf16.mxu0 %v9391_v22 }
 0x145   :  { %5399 = vmatpush1.bf16.msra.mxu0 %v9394_v37 }
 0x146   :  { %5401 = vmatprep.subr.bf16.mxu0 %v9399_v23 }
 0x149   :  { %5403 = vmatpush1.bf16.msra.mxu0 %v9404_v25 }
 0x14a   :  { %5405 = vmatprep.subr.bf16.mxu0 %v9409_v26 }
 0x14d   :  { %5407 = vmatpush1.bf16.msra.mxu0 %v9414_v31  ;;  %v7811_v31 = vld [vmem:[#allocation8 + $0x10] sm:$0xff]  }
 0x14e   :  { %5409 = vmatprep.subr.bf16.mxu0 %v9419_v0  ;;  %v4953_v14 = vunpack.c.l.bf16 %v7811_v31  ;;  %v4954_v63 = vunpack.c.h.bf16 %v7811_v31 }
 0x150   :  { %v7844_v21 = vsub.f32 %v4953_v14, %v4953_v14 }
 0x151   :  { %5411 = vmatpush1.bf16.msra.mxu0 %v9420_v52 }
 0x152   :  { %5413 = vmatprep.subr.bf16.mxu0 %v9421_v55  ;;  %v4985_v55 = vunpack.c.l.bf16 %v7807_v53 }
 0x155   :  { %5415 = vmatpush1.bf16.msra.mxu0 %v9423_v9 }
 0x156   :  { %5417 = vmatprep.subr.bf16.mxu0 %v9425_v6  ;;  %v4986_v6 = vunpack.c.h.bf16 %v7807_v53 }
 0x158   :  { %v7839_v40 = vsub.f32 %v4986_v6, %v4986_v6 }
 0x159   :  { %5419 = vmatpush1.bf16.msra.mxu0 %v9427_v43 }
 0x15a   :  { %5421 = vmatprep.subr.bf16.mxu0 %v9428_v12  ;;  %v9116_v17 = vand.u32 4294901760, %v7839_v40 }
 0x15d   :  { %5423 = vmatpush1.bf16.msra.mxu0 %v9429_v36  ;;  %v7833_v36 = vsub.f32 %v4985_v55, %v4985_v55  ;;  %v7883_v55 = vld [vmem:[#allocation8 + $0x68] sm:$0xff]  }
 0x15e   :  { %5425 = vmatprep.subr.bf16.mxu0 %v9426_v41  ;;  %v7831_v41 = vld [vmem:[#allocation8 + $0x58] sm:$0xff]  }
 0x15f   :  { %v9117_v7 = vand.u32 4294901760, %v7833_v36  ;;  %v4989_v10 = vunpack.c.l.bf16 %v7831_v41 }
 0x160   :  { %863 = vmatmul.mubr.f32.vlgmr.msra.gmra.mrb[0].mxu0 %v9344_v57 }
 0x161   :  { %5427 = vmatpush1.bf16.msra.mxu0 %v7377_v4  ;;  %933 = vmatprep.mubr.f32.mxu0 %v9239_v2  ;;  %v9442_v4 = vld [vmem:[#allocation47_spill] sm:$0xff] }
 0x162   :  { %5429 = vmatprep.subr.bf16.mxu0 %v7381_v5  ;;  %v7755_v5 = vld [vmem:[#allocation8 + $0x40] sm:$0xff]  }
 0x163   :  { %9443 = vst [vmem:[#allocation78_spill] sm:$0xff] %v7755_v5  ;;  %v4978_v3 = vunpack.c.h.bf16 %v7755_v5 }
 0x165   :  { %5431 = vmatpush1.bf16.msra.mxu0 %v7386_v46  ;;  %v4977_v46 = vunpack.c.l.bf16 %v7755_v5 }
 0x166   :  { %5433 = vmatprep.subr.bf16.mxu0 %v7491_v58  ;;  %v7759_v58 = vld [vmem:[#allocation8] sm:$0xff]  }
 0x167   :  { %v4945_v38 = vunpack.c.l.bf16 %v7759_v58  ;;  %v4946_v20 = vunpack.c.h.bf16 %v7759_v58 }
 0x169   :  { %5435 = vmatpush1.bf16.msra.mxu0 %v7509_v54  ;;  %v7769_v11 = vsub.f32 %v4945_v38, %v4945_v38  ;;  %v7771_v54 = vsub.f32 %v4946_v20, %v4946_v20  ;;  %v1889_v38 = vsub.f32 %v7833_v36, %v9117_v7  ;;  %v9115_v20 = vand.u32 4294901760, %v7844_v21 }
 0x16a   :  { %5437 = vmatprep.subr.bf16.mxu0 %v7517_v33  ;;  %v7773_v33 = vld [vmem:[#allocation8 + $0x48] sm:$0xff]  }
 0x16d   :  { %5439 = vmatpush1.bf16.msra.mxu0 %v7526_v16 }
 0x16e   :  { %5441 = vmatprep.subr.bf16.mxu0 %v7536_v48  ;;  %v4981_v48 = vunpack.c.l.bf16 %v7773_v33 }
 0x170   :  { %v7793_v37 = vsub.f32 %v4981_v48, %v4981_v48  ;;  %v7857_v48 = vsub.f32 %v4989_v10, %v4989_v10 }
 0x171   :  { %5443 = vmatpush1.bf16.msra.mxu0 %v7547_v30  ;;  %v4982_v30 = vunpack.c.h.bf16 %v7773_v33 }
 0x172   :  { %5445 = vmatprep.subr.bf16.mxu0 %v7552_v56  ;;  %v7779_v56 = vld [vmem:[#allocation8 + $0x8] sm:$0xff]   ;;  %v9125_v1 = vand.u32 4294901760, %v7793_v37 }
 0x173   :  { %v4950_v34 = vunpack.c.h.bf16 %v7779_v56  ;;  %v7795_v23 = vsub.f32 %v4982_v30, %v4982_v30  ;;  %v4957_v30 = vunpack.c.l.bf16 %v7836_v13 }
 0x174   :  { %v1877_v0 = vsub.f32 %v7793_v37, %v9125_v1 }
 0x175   :  { %5447 = vmatpush1.bf16.msra.mxu0 %v7557_v24  ;;  %v9129_v24 = vand.u32 4294901760, %v7769_v11  ;;  %v7805_v26 = vsub.f32 %v4950_v34, %v4950_v34  ;;  %v9122_v59 = vand.u32 4294901760, %v7795_v23  ;;  %v1895_v34 = vsub.f32 %v7839_v40, %v9116_v17 }
 0x176   :  { %5449 = vmatprep.subr.bf16.mxu0 %v7565_v44  ;;  %v9127_v44 = vand.u32 4294901760, %v7771_v54  ;;  %v1878_v43 = vand.u32 4294901760, %v1877_v0 }
 0x177   :  { %v1769_v25 = vsub.f32 %v7769_v11, %v9129_v24  ;;  %v9119_v49 = vand.u32 4294901760, %v7805_v26  ;;  %v1883_v52 = vsub.f32 %v7795_v23, %v9122_v59 }
 0x178   :  { %v1775_v47 = vsub.f32 %v7771_v54, %v9127_v44 }
 0x179   :  { %5451 = vmatpush1.bf16.msra.mxu0 %v7573_v39  ;;  %v4949_v39 = vunpack.c.l.bf16 %v7779_v56  ;;  %v1770_v51 = vand.u32 4294901760, %v1769_v25  ;;  %v1787_v62 = vsub.f32 %v7805_v26, %v9119_v49  ;;  %v1884_v12 = vand.u32 4294901760, %v1883_v52 }
 0x17a   :  { %5453 = vmatprep.subr.bf16.mxu0 %v7365_v19  ;;  %v7765_v19 = vsub.f32 %v4977_v46, %v4977_v46  ;;  %v1776_v61 = vand.u32 4294901760, %v1775_v47  ;;  %v4990_v46 = vunpack.c.h.bf16 %v7831_v41  ;;  %v4958_v25 = vunpack.c.h.bf16 %v7836_v13 }
 0x17b   :  { %v7803_v15 = vsub.f32 %v4949_v39, %v4949_v39  ;;  %v1788_v42 = vand.u32 4294901760, %v1787_v62  ;;  %v5652_v27 = vpack.c.bf16 %v1884_v12, %v1878_v43  ;;  %v7860_v39 = vld [vmem:[#allocation8 + $0x20] sm:$0xff]   ;;  %v1890_v47 = vand.u32 4294901760, %v1889_v38  ;;  %v7890_v43 = vld [vmem:[#allocation8 + $0x28] sm:$0xff]  }
 0x17c   :  { %9444 = vst [vmem:[#allocation79_spill] sm:$0xff] %v7765_v19  ;;  %v9133_v57 = vand.u32 4294901760, %v7765_v19  ;;  %v5650_v18 = vpack.c.bf16 %v1776_v61, %v1770_v51  ;;  %v7875_v51 = vsub.f32 %v4957_v30, %v4957_v30  ;;  %v1896_v61 = vand.u32 4294901760, %v1895_v34 }
 0x17d   :  { %5455 = vmatpush1.bf16.msra.mxu0 %v7372_v60  ;;  %v7767_v60 = vsub.f32 %v4978_v3, %v4978_v3  ;;  %v9120_v8 = vand.u32 4294901760, %v7803_v15  ;;  %v7851_v3 = vld [vmem:[#allocation8 + $0x60] sm:$0xff]   ;;  %v7881_v52 = vsub.f32 %v4958_v25, %v4958_v25  ;;  %v4961_v25 = vunpack.c.l.bf16 %v7860_v39 }
 0x17e   :  { %5617 = vmatprep.subr.bf16.mxu0 %v7755_v5  ;;  %v1865_v35 = vsub.f32 %v7765_v19, %v9133_v57  ;;  %v9108_v62 = vand.u32 4294901760, %v7875_v51  ;;  %v4993_v6 = vunpack.c.l.bf16 %v7851_v3  ;;  %v5656_v12 = vpack.c.bf16 %v1896_v61, %v1890_v47 }
 0x17f   :  { %9445 = vst [vmem:[#allocation33_spill] sm:$0xff] %v7767_v60  ;;  %v9132_v16 = vand.u32 4294901760, %v7767_v60  ;;  %v1781_v9 = vsub.f32 %v7803_v15, %v9120_v8  ;;  %v4994_v10 = vunpack.c.h.bf16 %v7851_v3 }
 0x180   :  { %939 = vmatmul.mubr.f32.vlgmr.msra.gmra.mrb[2].mxu0 %v9442_v4  ;;  %v1866_v45 = vand.u32 4294901760, %v1865_v35  ;;  %v7848_v4 = vsub.f32 %v4954_v63, %v4954_v63 }
 0x181   :  { %5619 = vmatpush3.bf16.msra.mxu0 %v7759_v58  ;;  %v1871_v22 = vsub.f32 %v7767_v60, %v9132_v16  ;;  %v1782_v29 = vand.u32 4294901760, %v1781_v9  ;;  %v7912_v61 = vsub.f32 %v4994_v10, %v4994_v10 }
 0x182   :  { %5621 = vmatprep.subr.bf16.mxu0 %v7773_v33  ;;  %v9113_v35 = vand.u32 4294901760, %v7848_v4 }
 0x183   :  { %v1872_v28 = vand.u32 4294901760, %v1871_v22  ;;  %v5654_v32 = vpack.c.bf16 %v1788_v42, %v1782_v29  ;;  %v7867_v22 = vsub.f32 %v4990_v46, %v4990_v46  ;;  %v9107_v42 = vand.u32 4294901760, %v7881_v52  ;;  %v7904_v46 = vld [vmem:[#allocation8 + $0x70] sm:$0xff]  }
 0x184   :  { %v9112_v10 = vand.u32 4294901760, %v7912_v61 }
 0x185   :  { %5623 = vmatpush3.bf16.msra.mxu0 %v7779_v56  ;;  %v5648_v50 = vpack.c.bf16 %v1872_v28, %v1866_v45  ;;  %v1793_v45 = vsub.f32 %v7844_v21, %v9115_v20  ;;  %v9111_v28 = vand.u32 4294901760, %v7857_v48  ;;  %v9110_v0 = vand.u32 4294901760, %v7867_v22 }
 0x186   :  { %5625 = vmatprep.subr.bf16.mxu0 %v7807_v53  ;;  %v1811_v34 = vsub.f32 %v7881_v52, %v9107_v42 }
 0x187   :  { %5649 = vmatprep.subr.bf16.mxu1 %v5648_v50  ;;  %v1799_v50 = vsub.f32 %v7848_v4, %v9113_v35  ;;  %v1901_v9 = vsub.f32 %v7857_v48, %v9111_v28  ;;  %v1907_v29 = vsub.f32 %v7867_v22, %v9110_v0  ;;  %v7941_v28 = vld [vmem:[#allocation8 + $0x38] sm:$0xff]  }
 0x188   :  { %5651 = vmatpush3.bf16.msra.mxu1 %v5650_v18  ;;  %v1794_v18 = vand.u32 4294901760, %v1793_v45  ;;  %9446 = vst [vmem:[#allocation36_spill] sm:$0xff] %v7941_v28 }
 0x189   :  { %5627 = vmatpush3.bf16.msra.mxu0 %v7811_v31  ;;  %5653 = vmatprep.subr.bf16.mxu1 %v5652_v27  ;;  %v1800_v14 = vand.u32 4294901760, %v1799_v50  ;;  %v1902_v63 = vand.u32 4294901760, %v1901_v9  ;;  %v1805_v27 = vsub.f32 %v7875_v51, %v9108_v62  ;;  %v1908_v30 = vand.u32 4294901760, %v1907_v29  ;;  %v7915_v9 = vld [vmem:[#allocation8 + $0x30] sm:$0xff]   ;;  %v7920_v29 = vld [vmem:[#allocation8 + $0x78] sm:$0xff]  }
 0x18a   :  { %5629 = vmatprep.subr.bf16.mxu0 %v7831_v41  ;;  %v4962_v50 = vunpack.c.h.bf16 %v7860_v39 }
 0x18b   :  { %v5658_v38 = vpack.c.bf16 %v1800_v14, %v1794_v18  ;;  %v1806_v47 = vand.u32 4294901760, %v1805_v27  ;;  %v5660_v18 = vpack.c.bf16 %v1908_v30, %v1902_v63  ;;  %v4997_v14 = vunpack.c.l.bf16 %v7883_v55 }
 0x18c   :  { %5655 = vmatpush3.bf16.msra.mxu1 %v5654_v32  ;;  %v7902_v32 = vsub.f32 %v4993_v6, %v4993_v6  ;;  %v1812_v6 = vand.u32 4294901760, %v1811_v34  ;;  %v7927_v42 = vsub.f32 %v4962_v50, %v4962_v50 }
 0x18d   :  { %5631 = vmatpush3.bf16.msra.mxu0 %v7836_v13  ;;  %5657 = vmatprep.subr.bf16.mxu1 %v5656_v12  ;;  %v7917_v12 = vsub.f32 %v4961_v25, %v4961_v25  ;;  %v7932_v34 = vsub.f32 %v4997_v14, %v4997_v14  ;;  %v4965_v25 = vunpack.c.l.bf16 %v7890_v43 }
 0x18e   :  { %5633 = vmatprep.subr.bf16.mxu0 %v7851_v3  ;;  %v9109_v45 = vand.u32 4294901760, %v7902_v32  ;;  %v5662_v63 = vpack.c.bf16 %v1812_v6, %v1806_v47  ;;  %v9118_v50 = vand.u32 4294901760, %v7927_v42  ;;  %v4966_v6 = vunpack.c.h.bf16 %v7890_v43 }
 0x18f   :  { %v9114_v30 = vand.u32 4294901760, %v7917_v12  ;;  %v7948_v14 = vsub.f32 %v4965_v25, %v4965_v25 }
 0x190   :  { %5659 = vmatpush3.bf16.msra.mxu1 %v5658_v38  ;;  %v1913_v27 = vsub.f32 %v7902_v32, %v9109_v45  ;;  %v4998_v38 = vunpack.c.h.bf16 %v7883_v55  ;;  %v1919_v45 = vsub.f32 %v7912_v61, %v9112_v10  ;;  %v7960_v25 = vsub.f32 %v4966_v6, %v4966_v6 }
 0x191   :  { %5635 = vmatpush3.bf16.msra.mxu0 %v7860_v39  ;;  %5661 = vmatprep.subr.bf16.mxu1 %v5660_v18  ;;  %v1817_v47 = vsub.f32 %v7917_v12, %v9114_v30  ;;  %v9121_v18 = vand.u32 4294901760, %v7932_v34  ;;  %9447 = vst [vmem:[#allocation48_spill] sm:$0xff] %v7948_v14  ;;  %v9124_v20 = vand.u32 4294901760, %v7948_v14 }
 0x192   :  { %5637 = vmatprep.subr.bf16.mxu0 %v7883_v55  ;;  %v1914_v62 = vand.u32 4294901760, %v1913_v27  ;;  %v7939_v0 = vsub.f32 %v4998_v38, %v4998_v38  ;;  %v1920_v27 = vand.u32 4294901760, %v1919_v45  ;;  %v1823_v38 = vsub.f32 %v7927_v42, %v9118_v50  ;;  %9448 = vst [vmem:[#allocation32_spill] sm:$0xff] %v7960_v25 }
 0x193   :  { %v1818_v35 = vand.u32 4294901760, %v1817_v47  ;;  %v1925_v30 = vsub.f32 %v7932_v34, %v9121_v18  ;;  %v5002_v50 = vunpack.c.h.bf16 %v7904_v46  ;;  %v1829_v47 = vsub.f32 %v7948_v14, %v9124_v20 }
 0x194   :  { %5663 = vmatpush3.bf16.msra.mxu1 %v5662_v63  ;;  %v9123_v10 = vand.u32 4294901760, %v7939_v0  ;;  %v5001_v63 = vunpack.c.l.bf16 %v7904_v46  ;;  %v5664_v17 = vpack.c.bf16 %v1920_v27, %v1914_v62  ;;  %v1824_v7 = vand.u32 4294901760, %v1823_v38 }
 0x195   :  { %5639 = vmatpush3.bf16.msra.mxu0 %v7890_v43  ;;  %v1926_v49 = vand.u32 4294901760, %v1925_v30  ;;  %v9126_v8 = vand.u32 4294901760, %v7960_v25  ;;  %v7972_v62 = vsub.f32 %v5002_v50, %v5002_v50  ;;  %v4969_v27 = vunpack.c.l.bf16 %v7915_v9 }
 0x196   :  { %5641 = vmatprep.subr.bf16.mxu0 %v7904_v46  ;;  %v1931_v45 = vsub.f32 %v7939_v0, %v9123_v10  ;;  %v7970_v18 = vsub.f32 %v5001_v63, %v5001_v63  ;;  %5665 = vmatprep.subr.bf16.mxu1 %v5664_v17  ;;  %v5666_v6 = vpack.c.bf16 %v1824_v7, %v1818_v35  ;;  %v1830_v38 = vand.u32 4294901760, %v1829_v47 }
 0x197   :  { %9450 = vst [vmem:[#allocation39_spill] sm:$0xff] %v7972_v62  ;;  %v1835_v30 = vsub.f32 %v7960_v25, %v9126_v8  ;;  %v4970_v20 = vunpack.c.h.bf16 %v7915_v9  ;;  %v9130_v63 = vand.u32 4294901760, %v7972_v62  ;;  %v7981_v17 = vsub.f32 %v4969_v27, %v4969_v27 }
 0x198   :  { %9449 = vst [vmem:[#allocation31_spill] sm:$0xff] %v7970_v18  ;;  %v1932_v59 = vand.u32 4294901760, %v1931_v45  ;;  %v9128_v10 = vand.u32 4294901760, %v7970_v18  ;;  %5667 = vmatpush3.bf16.msra.mxu1 %v5666_v6  ;;  %v5005_v7 = vunpack.c.l.bf16 %v7920_v29  ;;  %v5006_v47 = vunpack.c.h.bf16 %v7920_v29 }
 0x199   :  { %5643 = vmatpush3.bf16.msra.mxu0 %v7915_v9  ;;  %9451 = vst [vmem:[#allocation37_spill] sm:$0xff] %v7981_v17  ;;  %v1836_v35 = vand.u32 4294901760, %v1835_v30  ;;  %v7987_v45 = vsub.f32 %v4970_v20, %v4970_v20  ;;  %v4973_v27 = vunpack.c.l.bf16 %v7941_v28 }
 0x19a   :  { %5645 = vmatprep.subr.bf16.mxu0 %v7920_v29  ;;  %v5668_v1 = vpack.c.bf16 %v1932_v59, %v1926_v49  ;;  %v1937_v50 = vsub.f32 %v7970_v18, %v9128_v10  ;;  %v1943_v59 = vsub.f32 %v7972_v62, %v9130_v63  ;;  %v9131_v49 = vand.u32 4294901760, %v7981_v17 }
 0x19b   :  { %9452 = vst [vmem:[#allocation80_spill] sm:$0xff] %v7987_v45  ;;  %v7994_v6 = vsub.f32 %v5005_v7, %v5005_v7  ;;  %v5670_v30 = vpack.c.bf16 %v1836_v35, %v1830_v38  ;;  %v9134_v44 = vand.u32 4294901760, %v7987_v45  ;;  %v7998_v10 = vsub.f32 %v5006_v47, %v5006_v47 }
 0x19c   :  { %5669 = vmatprep.subr.bf16.mxu1 %v5668_v1  ;;  %v1938_v8 = vand.u32 4294901760, %v1937_v50  ;;  %v1944_v20 = vand.u32 4294901760, %v1943_v59  ;;  %v1841_v1 = vsub.f32 %v7981_v17, %v9131_v49  ;;  %v4974_v63 = vunpack.c.h.bf16 %v7941_v28 }
 0x19d   :  { %5647 = vmatpush3.bf16.msra.mxu0 %v7941_v28  ;;  %9453 = vst [vmem:[#allocation44_spill] sm:$0xff] %v7994_v6  ;;  %9454 = vst [vmem:[#allocation43_spill] sm:$0xff] %v7998_v10  ;;  %v9137_v24 = vand.u32 4294901760, %v7994_v6  ;;  %5671 = vmatpush3.bf16.msra.mxu1 %v5670_v30  ;;  %v1847_v7 = vsub.f32 %v7987_v45, %v9134_v44  ;;  %v9136_v38 = vand.u32 4294901760, %v7998_v10 }
 0x19e   :  { %v8009_v35 = vsub.f32 %v4973_v27, %v4973_v27  ;;  %v5672_v50 = vpack.c.bf16 %v1944_v20, %v1938_v8  ;;  %v1842_v47 = vand.u32 4294901760, %v1841_v1  ;;  %v8014_v49 = vsub.f32 %v4974_v63, %v4974_v63 }
 0x19f   :  { %v1949_v59 = vsub.f32 %v7994_v6, %v9137_v24  ;;  %v1848_v16 = vand.u32 4294901760, %v1847_v7  ;;  %v1955_v30 = vsub.f32 %v7998_v10, %v9136_v38 }
 0x1a0   :  { %9455 = vst [vmem:[#allocation54_spill] sm:$0xff] %v8009_v35  ;;  %9456 = vst [vmem:[#allocation51_spill] sm:$0xff] %v8014_v49  ;;  %v9139_v57 = vand.u32 4294901760, %v8009_v35  ;;  %5673 = vmatprep.subr.bf16.mxu1 %v5672_v50  ;;  %v9138_v27 = vand.u32 4294901760, %v8014_v49  ;;  %v5680_v50 = vpack.c.bf16 %v7767_v60, %v7765_v19 }
 0x1a1   :  { %v1950_v44 = vand.u32 4294901760, %v1949_v59  ;;  %v5674_v2 = vpack.c.bf16 %v1848_v16, %v1842_v47  ;;  %v1956_v8 = vand.u32 4294901760, %v1955_v30 }
 0x1a2   :  { %v1853_v20 = vsub.f32 %v8009_v35, %v9139_v57  ;;  %v1859_v63 = vsub.f32 %v8014_v49, %v9138_v27  ;;  %5681 = vmatprep.subr.bf16.mxu0 %v5680_v50 }
 0x1a3   :  { %5675 = vmatpush3.bf16.msra.mxu1 %v5674_v2  ;;  %v5676_v1 = vpack.c.bf16 %v1956_v8, %v1950_v44 }
 0x1a4   :  { %v1854_v7 = vand.u32 4294901760, %v1853_v20  ;;  %v1860_v38 = vand.u32 4294901760, %v1859_v63 }
 0x1a5   :  { %5677 = vmatprep.subr.bf16.mxu1 %v5676_v1 }
 0x1a6   :  { %v5678_v24 = vpack.c.bf16 %v1860_v38, %v1854_v7 }
 0x1a8   :  { %5679 = vmatpush3.bf16.msra.mxu1 %v5678_v24 }
 0x1a9   :  { %5713 = vmatprep.subr.bf16.mxu1 %v7755_v5 }
 0x208   :  { %v1527_v59 = vpop.f32.mrb[0].mxu1 }
 0x209   :  { %v1529_v24 = vpop.f32.mrb[1].mxu1 }
 0x233   :  { %v864_v8 = vpop.f32.mrb[0].mxu0 }
 0x234   :  { %v866_v63 = vpop.f32.mrb[1].mxu0 }
 0x253   :  { %v940_v30 = vpop.f32.mrb[2].mxu0 }
 0x254   :  { %v5906_v38 = vadd.f32 %v1527_v59, %v940_v30  ;;  %v942_v1 = vpop.f32.mrb[3].mxu0 }
 0x255   :  { %v5907_v44 = vadd.f32 %v1529_v24, %v942_v1 }
 0x256   :  { %v1534_v2 = vrot.slane %v5906_v38, 1  ;;  %v1540_v7 = vrot.slane %v5906_v38, 7  ;;  %v1554_v47 = vrot.slane %v5906_v38, 6  ;;  %v1560_v16 = vrot.slane %v5906_v38, 2 }
 0x257   :  { %v1535_v50 = vrot.slane %v5907_v44, 1  ;;  %v1541_v60 = vrot.slane %v5907_v44, 7  ;;  %v1555_v19 = vrot.slane %v5907_v44, 6  ;;  %v1561_v27 = vrot.slane %v5907_v44, 2 }
 0x258   :  { %v1538_v17 = vmul.f32 %v1534_v2, %v864_v8  ;;  %v1544_v45 = vmul.f32 %v1540_v7, %v864_v8  ;;  %v1558_v57 = vmul.f32 %v1554_v47, %v864_v8  ;;  %v1564_v6 = vmul.f32 %v1560_v16, %v864_v8 }
 0x259   :  { %v1539_v10 = vmul.f32 %v1535_v50, %v866_v63  ;;  %v1545_v20 = vmul.f32 %v1541_v60, %v866_v63  ;;  %v1559_v35 = vmul.f32 %v1555_v19, %v866_v63  ;;  %v1565_v49 = vmul.f32 %v1561_v27, %v866_v63 }
 0x25a   :  { %v1548_v5 = vrot.slane %v1544_v45, 1  ;;  %v1568_v59 = vrot.slane %v1564_v6, 6 }
 0x25b   :  { %v1549_v30 = vrot.slane %v1545_v20, 1  ;;  %v1569_v24 = vrot.slane %v1565_v49, 6 }
 0x25c   :  { %v1552_v1 = vsub.f32 %v1538_v17, %v1548_v5  ;;  %v1572_v18 = vsub.f32 %v1558_v57, %v1568_v59 }
 0x25d   :  { %v1553_v62 = vsub.f32 %v1539_v10, %v1549_v30  ;;  %v1573_v38 = vsub.f32 %v1559_v35, %v1569_v24 }
 0x25e   :  { %v1574_v28 = vmul.f32 %v1552_v1, %v1552_v1  ;;  %v1576_v14 = vmul.f32 %v1572_v18, %v1572_v18 }
 0x25f   :  { %v1575_v25 = vmul.f32 %v1553_v62, %v1553_v62  ;;  %v1577_v44 = vmul.f32 %v1573_v38, %v1573_v38 }
 0x260   :  { %v1580_v2 = vrot.slane %v1576_v14, 1  ;;  %v1588_v16 = vrot.slane %v1574_v28, 7 }
 0x261   :  { %v1581_v7 = vrot.slane %v1577_v44, 1  ;;  %v1589_v60 = vrot.slane %v1575_v25, 7 }
 0x262   :  { %v1584_v47 = vadd.f32 %v1580_v2, %v1574_v28 }
 0x263   :  { %v1585_v8 = vadd.f32 %v1581_v7, %v1575_v25 }
 0x264   :  { %v1592_v19 = vadd.f32 %v1588_v16, %v1584_v47 }
 0x265   :  { %v1593_v27 = vadd.f32 %v1589_v60, %v1585_v8  ;;  %v9457_v8 = vpack.c.bf16 %v7771_v54, %v7769_v11  ;;  %v9458_v60 = vpack.c.bf16 %v7795_v23, %v7793_v37 }
 0x266   :  { %6294 = vrsqrt.f32 %v1592_v19  ;;  %vm1596_vm1 = vcmp.eq.f32.partialorder %v1592_v19, inf  ;;  %v1599_v10 = vand.u32 2147483648, %v1592_v19  ;;  %vm1598_vm3 = vcmp.eq.f32.partialorder %v1592_v19, 0.0 }
 0x267   :  { %6296 = vrsqrt.f32 %v1593_v27  ;;  %vm1603_vm2 = vcmp.eq.f32.partialorder %v1593_v27, inf  ;;  %v1606_v18 = vand.u32 2147483648, %v1593_v27  ;;  %vm1605_vm4 = vcmp.eq.f32.partialorder %v1593_v27, 0.0 }
 0x270   :  { %v6295_v45 = vpop.eup %6294 }
 0x271   :  { %v6297_v49 = vpop.eup %6296  ;;  %v1595_v5 = vmul.f32 %v6295_v45, %v1592_v19  ;;  %v9459_v45 = vpack.c.bf16 %v7805_v26, %v7803_v15 }
 0x272   :  { %v1602_v57 = vmul.f32 %v6297_v49, %v1593_v27  ;;  %v9460_v49 = vpack.c.bf16 %v7839_v40, %v7833_v36 }
 0x273   :  { %v1597_v62 = vsel %vm1596_vm1, %v1592_v19, %v1595_v5  ;;  %v8084_v19 = vld [vmem:[#allocation10 + $0x10] sm:$0xff]  ;;  %v8097_v5 = vld [vmem:[#allocation10] sm:$0xff] }
 0x274   :  { %v1604_v14 = vsel %vm1603_vm2, %v1593_v27, %v1602_v57  ;;  %v1600_v28 = vsel %vm1598_vm3, %v1599_v10, %v1597_v62  ;;  %v6501_v27 = vmov 3   ;;  %v8099_v57 = vld [vmem:[#allocation10 + $0x18] sm:$0xff]  ;;  %v9461_v10 = vpack.c.bf16 %v7848_v4, %v7844_v21 }
 0x275   :  { %v1607_v17 = vsel %vm1605_vm4, %v1606_v18, %v1604_v14  ;;  %v1610_v25 = vrot.slane %v1600_v28, 1  ;;  %v1614_v6 = vrot.slane %v1600_v28, 3  ;;  %6245 = vset.pattern.permute.xlu1 %v6501_v27  ;;  %6244 = vset.pattern.permute.xlu0 %v6501_v27  ;;  %v9462_v18 = vpack.c.bf16 %v7867_v22, %v7857_v48  ;;  %v8119_v28 = vld [vmem:[#allocation10 + $0x8] sm:$0xff] }
 0x276   :  { %v1611_v35 = vrot.slane %v1607_v17, 1  ;;  %v1615_v20 = vrot.slane %v1607_v17, 3  ;;  %2388 = vperm.xlu1 %6245, %v8084_v19   ;;  %2378 = vperm.xlu0 %6244, %v8097_v5   ;;  %v9463_v62 = vpack.c.bf16 %v7881_v52, %v7875_v51  ;;  %v9464_v14 = vpack.c.bf16 %v7912_v61, %v7902_v32 }
 0x277   :  { %v1619_v63 = vsel %vm1618_vm5, %v1610_v25, %v1614_v6  ;;  %v6502_v17 = vmov 4   ;;  %v9465_v25 = vpack.c.bf16 %v7927_v42, %v7917_v12  ;;  %v9466_v6 = vpack.c.bf16 %v7939_v0, %v7932_v34 }
 0x278   :  { %v1620_v50 = vsel %vm1618_vm5, %v1611_v35, %v1615_v20  ;;  %v8060_v59 = vand.u32 4294901760, %v1619_v63  ;;  %v9467_v35 = vld [vmem:[#allocation32_spill] sm:$0xff] }
 0x279   :  { %v8062_v30 = vand.u32 4294901760, %v1620_v50  ;;  %v9468_v20 = vld [vmem:[#allocation48_spill] sm:$0xff] }
 0x27a   :  { %v8065_v24 = vsub.f32 %v1619_v63, %v8060_v59  ;;  %2393 = vperm.xlu1 %6245, %v8099_v57   ;;  %6246 = vset.pattern.permute.xlu0 %v6502_v17  ;;  %v9469_v63 = vpack.c.bf16 %v9467_v35, %v9468_v20 }
 0x27b   :  { %1959 = vmatprep.mubr.f32.mxu1 %v8062_v30  ;;  %v1751_v1 = vsub.f32 %v1620_v50, %v8062_v30  ;;  %3272 = vperm.xlu0 %6246, %v8097_v5   ;;  %v9470_v50 = vld [vmem:[#allocation36_spill] sm:$0xff] }
 0x27c   :  { %1961 = vmatmul.mubr.f32.vlgmr.msra.gmra.mrb[2].mxu1 %v8060_v59  ;;  %v1758_v38 = vand.u32 4294901760, %v8065_v24 }
 0x27d   :  { %5715 = vmatpush3.bf16.msra.mxu1 %v7759_v58  ;;  %v1752_v44 = vand.u32 4294901760, %v1751_v1 }
 0x27e   :  { %5717 = vmatprep.subr.bf16.mxu1 %v7773_v33  ;;  %v1759_v2 = vsub.f32 %v8065_v24, %v1758_v38  ;;  %6248 = vset.pattern.permute.xlu1 %v6502_v17 }
 0x27f   :  { %2139 = vmatprep.mubr.f32.mxu1 %v1752_v44  ;;  %v1753_v7 = vsub.f32 %v1751_v1, %v1752_v44  ;;  %3276 = vperm.xlu1 %6248, %v8119_v28   ;;  %v9472_v44 = vld [vmem:[#allocation31_spill] sm:$0xff] }
 0x280   :  { %v1760_v16 = vand.u32 4294901760, %v1759_v2  ;;  %6247 = vset.pattern.permute.xlu0 %v6501_v27 }
 0x281   :  { %5719 = vmatpush3.bf16.msra.mxu1 %v7779_v56  ;;  %v1754_v47 = vand.u32 4294901760, %v1753_v7  ;;  %v9474_v7 = vld [vmem:[#allocation78_spill] sm:$0xff]  ;;  %2383 = vperm.xlu0 %6247, %v8119_v28  }
 0x282   :  { %5721 = vmatprep.subr.bf16.mxu1 %v7807_v53 }
 0x283   :  { %1755 = vmatprep.mubr.f32.mxu0 %v1754_v47  ;;  %6249 = vset.pattern.permute.xlu1 %v6501_v27  ;;  %v8141_v47 = vld [vmem:[#allocation10 + $0x20] sm:$0xff] }
 0x284   :  { %1761 = vmatmul.mubr.f32.vlgmr.msra.gmra.mrb[4].mxu0 %v1760_v16  ;;  %2398 = vperm.xlu1 %6249, %v8141_v47   ;;  %v9475_v16 = vld [vmem:[#allocation80_spill] sm:$0xff] }
 0x285   :  { %5683 = vmatpush3.bf16.msra.mxu0 %v9457_v8  ;;  %5723 = vmatpush3.bf16.msra.mxu1 %v7811_v31  ;;  %v9476_v8 = vld [vmem:[#allocation37_spill] sm:$0xff] }
 0x286   :  { %2064 = vmatprep.mubr.f32.mxu0 %v1751_v1  ;;  %5685 = vmatprep.subr.bf16.mxu0 %v9458_v60  ;;  %v9471_v1 = vld [vmem:[#allocation39_spill] sm:$0xff]  ;;  %v9477_v60 = vpack.c.bf16 %v9475_v16, %v9476_v8 }
 0x287   :  { %5725 = vmatprep.subr.bf16.mxu1 %v7831_v41  ;;  %v9473_v2 = vpack.c.bf16 %v9471_v1, %v9472_v44 }
 0x288   :  { %6250 = vset.pattern.permute.xlu1 %v6502_v17 }
 0x289   :  { %5687 = vmatpush3.bf16.msra.mxu0 %v9459_v45  ;;  %5727 = vmatpush3.bf16.msra.mxu1 %v7836_v13  ;;  %v9478_v45 = vld [vmem:[#allocation43_spill] sm:$0xff] }
 0x28a   :  { %5689 = vmatprep.subr.bf16.mxu0 %v9460_v49  ;;  %5729 = vmatprep.subr.bf16.mxu1 %v7851_v3  ;;  %v9479_v49 = vld [vmem:[#allocation44_spill] sm:$0xff] }
 0x28b   :  { %3280 = vperm.xlu1 %6250, %v8084_v19  }
 0x28d   :  { %5691 = vmatpush3.bf16.msra.mxu0 %v9461_v10  ;;  %5731 = vmatpush3.bf16.msra.mxu1 %v7860_v39  ;;  %v9480_v10 = vpack.c.bf16 %v9478_v45, %v9479_v49 }
 0x28e   :  { %5693 = vmatprep.subr.bf16.mxu0 %v9462_v18  ;;  %5733 = vmatprep.subr.bf16.mxu1 %v7883_v55  ;;  %v9481_v18 = vld [vmem:[#allocation79_spill] sm:$0xff] }
 0x28f   :  { %3284 = vperm.xlu1 %6250, %v8099_v57  }
 0x291   :  { %5695 = vmatpush3.bf16.msra.mxu0 %v9463_v62  ;;  %5735 = vmatpush3.bf16.msra.mxu1 %v7890_v43  ;;  %v9482_v62 = vand.u32 4294901760, %v9481_v18  ;;  %v9491_v18 = vand.u32 4294901760, %v7795_v23  ;;  %v9495_v23 = vand.u32 4294901760, %v7839_v40 }
 0x292   :  { %5697 = vmatprep.subr.bf16.mxu0 %v9464_v14  ;;  %5737 = vmatprep.subr.bf16.mxu1 %v7904_v46  ;;  %v9483_v14 = vld [vmem:[#allocation33_spill] sm:$0xff] }
 0x293   :  { %6251 = vset.pattern.permute.xlu1 %v6501_v27 }
 0x295   :  { %5699 = vmatpush3.bf16.msra.mxu0 %v9465_v25  ;;  %5739 = vmatpush3.bf16.msra.mxu1 %v7915_v9  ;;  %v9484_v25 = vand.u32 4294901760, %v9483_v14  ;;  %v8187_v14 = vld [vmem:[#allocation10 + $0x30] sm:$0xff] }
 0x296   :  { %5701 = vmatprep.subr.bf16.mxu0 %v9466_v6  ;;  %5741 = vmatprep.subr.bf16.mxu1 %v7920_v29 }
 0x297   :  { %v5744_v6 = vpack.c.bf16 %v9484_v25, %v9482_v62 }
 0x299   :  { %5703 = vmatpush3.bf16.msra.mxu0 %v9469_v63  ;;  %5743 = vmatpush3.bf16.msra.mxu1 %v9470_v50  ;;  %v9486_v63 = vld [vmem:[#allocation54_spill] sm:$0xff] }
 0x29a   :  { %5705 = vmatprep.subr.bf16.mxu0 %v9473_v2  ;;  %5777 = vmatprep.subr.bf16.mxu1 %v9474_v7  ;;  %v9488_v7 = vand.u32 4294901760, %v7769_v11  ;;  %v9492_v11 = vand.u32 4294901760, %v7803_v15  ;;  %v9496_v15 = vand.u32 4294901760, %v7844_v21  ;;  %v9500_v21 = vand.u32 4294901760, %v7875_v51 }
 0x29b   :  { %v9505_v51 = vand.u32 4294901760, %v7927_v42 }
 0x29c   :  { %2143 = vmatmul.mubr.f32.vlgmr.msra.gmra.mrb[4].mxu1 %v1758_v38  ;;  %v8158_v38 = vld [vmem:[#allocation10 + $0x28] sm:$0xff] }
 0x29d   :  { %5707 = vmatpush3.bf16.msra.mxu0 %v9477_v60  ;;  %5779 = vmatpush3.bf16.msra.mxu1 %v7759_v58  ;;  %v9485_v58 = vld [vmem:[#allocation51_spill] sm:$0xff]  ;;  %v9489_v60 = vand.u32 4294901760, %v7771_v54  ;;  %v9493_v54 = vand.u32 4294901760, %v7805_v26  ;;  %v9497_v26 = vand.u32 4294901760, %v7848_v4  ;;  %v9501_v4 = vand.u32 4294901760, %v7881_v52 }
 0x29e   :  { %2349 = vmatprep.mubr.f32.mxu1 %v8062_v30  ;;  %5709 = vmatprep.subr.bf16.mxu0 %v9480_v10  ;;  %v9487_v2 = vpack.c.bf16 %v9485_v58, %v9486_v63 }
 0x29f   :  { %5781 = vmatprep.subr.bf16.mxu1 %v7773_v33  ;;  %2403 = vperm.xlu0 %6247, %v8158_v38   ;;  %v5746_v10 = vpack.c.bf16 %v9489_v60, %v9488_v7  ;;  %v9490_v33 = vand.u32 4294901760, %v7793_v37  ;;  %v9494_v37 = vand.u32 4294901760, %v7833_v36  ;;  %v9498_v36 = vand.u32 4294901760, %v7857_v48 }
 0x2a0   :  { %v5758_v27 = vpack.c.bf16 %v9501_v4, %v9500_v21  ;;  %v9503_v48 = vand.u32 4294901760, %v7912_v61  ;;  %v9507_v61 = vand.u32 4294901760, %v7939_v0  ;;  %v2445_v0 = vsel %vm2442_vm6, %v8119_v28, 0 }
 0x2a1   :  { %5711 = vmatpush3.bf16.msra.mxu0 %v9487_v2  ;;  %5783 = vmatpush3.bf16.msra.mxu1 %v7779_v56  ;;  %v5748_v62 = vpack.c.bf16 %v9491_v18, %v9490_v33  ;;  %v5750_v56 = vpack.c.bf16 %v9493_v54, %v9492_v11  ;;  %v9508_v2 = vand.u32 4294901760, %v9468_v20  ;;  %v8260_v33 = vand.u32 4294901760, %v2445_v0 }
 0x2a2   :  { %5745 = vmatprep.subr.bf16.mxu0 %v5744_v6  ;;  %5785 = vmatprep.subr.bf16.mxu1 %v7807_v53  ;;  %v5752_v53 = vpack.c.bf16 %v9495_v23, %v9494_v37  ;;  %v9515_v11 = vand.u32 4294901760, %v9478_v45  ;;  %v2449_v23 = vsel %vm2442_vm6, %v8099_v57, 0  ;;  %v9517_v45 = vand.u32 4294901760, %v9485_v58 }
 0x2a3   :  { %2408 = vperm.xlu0 %6247, %v8187_v14  }
 0x2a4   :  { %2067 = vmatmul.mubr.f32.vlgmr.msra.gmra.mrb[6].mxu0 %v8065_v24  ;;  %v2365_v24 = vld [vmem:[#allocation5] sm:$0x77] }
 0x2a5   :  { %5747 = vmatpush3.bf16.msra.mxu0 %v5746_v10  ;;  %2277 = vmatprep.mubr.f32.mxu0 %v8062_v30  ;;  %v8191_v30 = vld [vmem:[#allocation10 + $0x38] sm:$0xff]  ;;  %v8210_v25 = vcombine.high %v2365_v24, %v2365_v24 }
 0x2a6   :  { %5787 = vmatpush3.bf16.msra.mxu1 %v7811_v31  ;;  %5749 = vmatprep.subr.bf16.mxu0 %v5748_v62  ;;  %v5754_v31 = vpack.c.bf16 %v9497_v26, %v9496_v15  ;;  %v2447_v62 = vsel %vm2442_vm6, %v8084_v19, 0  ;;  %v9518_v26 = vmov 0.0  }
 0x2a7   :  { %5789 = vmatprep.subr.bf16.mxu1 %v7831_v41  ;;  %2413 = vperm.xlu1 %6251, %v8191_v30   ;;  %v9499_v41 = vand.u32 4294901760, %v7867_v22  ;;  %v9504_v22 = vand.u32 4294901760, %v7917_v12  ;;  %v2459_v12 = vsel %vm87_vm0, %v2365_v24, 0  ;;  %v8281_v37 = vand.u32 4294901760, %v2447_v62 }
 0x2a8   :  { %6252 = vset.pattern.permute.xlu0 %v6502_v17  ;;  %v8255_v20 = vand.u32 4294901760, %v2459_v12 }
 0x2a9   :  { %5751 = vmatpush3.bf16.msra.mxu0 %v5750_v56  ;;  %v5756_v40 = vpack.c.bf16 %v9499_v41, %v9498_v36  ;;  %3288 = vperm.xlu0 %6252, %v8141_v47   ;;  %v5762_v52 = vpack.c.bf16 %v9505_v51, %v9504_v22  ;;  %v8302_v58 = vsub.f32 %v2447_v62, %v8281_v37  ;;  %v2453_v22 = vsel %vm2442_vm6, %v8158_v38, 0 }
 0x2aa   :  { %5791 = vmatpush3.bf16.msra.mxu1 %v7836_v13  ;;  %5753 = vmatprep.subr.bf16.mxu0 %v5752_v53  ;;  %v9502_v13 = vand.u32 4294901760, %v7902_v32  ;;  %v2443_v32 = vsel %vm2442_vm6, %v8097_v5, 0 }
 0x2ab   :  { %5793 = vmatprep.subr.bf16.mxu1 %v7851_v3  ;;  %6253 = vset.pattern.permute.xlu1 %v6502_v17  ;;  %v8238_v6 = vand.u32 4294901760, %v2443_v32 }
 0x2ac   :  { %v5760_v3 = vpack.c.bf16 %v9503_v48, %v9502_v13  ;;  %3292 = vperm.xlu1 %6253, %v8158_v38   ;;  %v2554_v13 = vand.u32 4294901760, %v8302_v58 }
 0x2ad   :  { %5755 = vmatpush3.bf16.msra.mxu0 %v5754_v31  ;;  %3300 = vperm.xlu0 %6252, %v8191_v30   ;;  %v8295_v31 = vand.u32 4294901760, %v2449_v23 }
 0x2ae   :  { %5795 = vmatpush3.bf16.msra.mxu1 %v7860_v39  ;;  %5757 = vmatprep.subr.bf16.mxu0 %v5756_v40  ;;  %v2461_v39 = vsel %vm87_vm0, %v8210_v25, 0  ;;  %v2451_v40 = vsel %vm2442_vm6, %v8141_v47, 0 }
 0x2af   :  { %5797 = vmatprep.subr.bf16.mxu1 %v7883_v55  ;;  %v9506_v55 = vand.u32 4294901760, %v7932_v34  ;;  %v8235_v42 = vand.u32 4294901760, %v2461_v39  ;;  %v9511_v34 = vand.u32 4294901760, %v9471_v1  ;;  %v8267_v1 = vsub.f32 %v2459_v12, %v8255_v20 }
 0x2b0   :  { %3296 = vperm.xlu1 %6253, %v8187_v14   ;;  %v8311_v21 = vsub.f32 %v2449_v23, %v8295_v31  ;;  %v8318_v48 = vand.u32 4294901760, %v2451_v40 }
 0x2b1   :  { %5759 = vmatpush3.bf16.msra.mxu0 %v5758_v27  ;;  %v5764_v17 = vpack.c.bf16 %v9507_v61, %v9506_v55  ;;  %v8252_v10 = vsub.f32 %v2461_v39, %v8235_v42  ;;  %v2626_v53 = vand.u32 4294901760, %v8267_v1  ;;  %v2455_v55 = vsel %vm2442_vm6, %v8187_v14, 0  ;;  %4046 = vrot.lane.b32.xlu0 %v8119_v28, %s6504_s4 }
 0x2b2   :  { %5799 = vmatpush3.bf16.msra.mxu1 %v7890_v43  ;;  %5761 = vmatprep.subr.bf16.mxu0 %v5760_v3  ;;  %v9509_v43 = vand.u32 4294901760, %v9467_v35  ;;  %v8258_v35 = vsub.f32 %v2443_v32, %v8238_v6  ;;  %v8329_v39 = vsub.f32 %v2451_v40, %v8318_v48  ;;  %v8331_v32 = vand.u32 4294901760, %v2453_v22 }
 0x2b3   :  { %5801 = vmatprep.subr.bf16.mxu1 %v7904_v46  ;;  %v9510_v46 = vand.u32 4294901760, %v9472_v44  ;;  %v9513_v44 = vand.u32 4294901760, %v9475_v16  ;;  %v2620_v56 = vand.u32 4294901760, %v8252_v10  ;;  %v8279_v16 = vsub.f32 %v2445_v0, %v8260_v33 }
 0x2b4   :  { %v5766_v7 = vpack.c.bf16 %v9509_v43, %v9508_v2  ;;  %v2627_v41 = vsub.f32 %v8267_v1, %v2626_v53  ;;  %v2576_v12 = vand.u32 4294901760, %v8329_v39  ;;  %v8342_v2 = vsub.f32 %v2453_v22, %v8331_v32 }
 0x2b5   :  { %5763 = vmatpush3.bf16.msra.mxu0 %v5762_v52  ;;  %v5768_v60 = vpack.c.bf16 %v9511_v34, %v9510_v46  ;;  %v2621_v15 = vsub.f32 %v8252_v10, %v2620_v56  ;;  %v2555_v52 = vsub.f32 %v8302_v58, %v2554_v13  ;;  %v8344_v43 = vand.u32 4294901760, %v2455_v55  ;;  %4050 = vrot.lane.b32.xlu0 %v8099_v57, %s6504_s4 }
 0x2b6   :  { %5803 = vmatpush3.bf16.msra.mxu1 %v7915_v9  ;;  %5765 = vmatprep.subr.bf16.mxu0 %v5764_v17  ;;  %v9512_v9 = vand.u32 4294901760, %v9476_v8  ;;  %v2532_v8 = vand.u32 4294901760, %v8258_v35  ;;  %v2628_v3 = vand.u32 4294901760, %v2627_v41  ;;  %v2577_v46 = vsub.f32 %v8329_v39, %v2576_v12 }
 0x2b7   :  { %5805 = vmatprep.subr.bf16.mxu1 %v7920_v29  ;;  %v9514_v29 = vand.u32 4294901760, %v9479_v49  ;;  %v2622_v24 = vand.u32 4294901760, %v2621_v15  ;;  %v2556_v17 = vand.u32 4294901760, %v2555_v52  ;;  %v2587_v34 = vand.u32 4294901760, %v8342_v2 }
 0x2b8   :  { %v5770_v18 = vpack.c.bf16 %v9513_v44, %v9512_v9  ;;  %v2533_v36 = vsub.f32 %v8258_v35, %v2532_v8  ;;  %v2578_v44 = vand.u32 4294901760, %v2577_v46 }
 0x2b9   :  { %5767 = vmatpush3.bf16.msra.mxu0 %v5766_v7  ;;  %v5772_v54 = vpack.c.bf16 %v9515_v11, %v9514_v29  ;;  %v2457_v7 = vsel %vm2442_vm6, %v8191_v30, 0  ;;  %4054 = vrot.lane.b32.xlu0 %v8158_v38, %s6504_s4 }
 0x2ba   :  { %5807 = vmatpush3.bf16.msra.mxu1 %v9470_v50  ;;  %5769 = vmatprep.subr.bf16.mxu0 %v5768_v60  ;;  %v9516_v50 = vand.u32 4294901760, %v9486_v63  ;;  %v2543_v63 = vand.u32 4294901760, %v8279_v16  ;;  %v2534_v4 = vand.u32 4294901760, %v2533_v36  ;;  %v8354_v60 = vsub.f32 %v2455_v55, %v8344_v43 }
 0x2bb   :  { %v8356_v9 = vand.u32 4294901760, %v2457_v7 }
 0x2bc   :  { %v5774_v49 = vpack.c.bf16 %v9517_v45, %v9516_v50  ;;  %v2544_v27 = vsub.f32 %v8279_v16, %v2543_v63  ;;  %v2598_v62 = vand.u32 4294901760, %v8354_v60 }
 0x2bd   :  { %2351 = vmatmul.mubr.f32.vlgmr.msra.gmra.mrb[6].mxu1 %v8060_v59  ;;  %5771 = vmatpush3.bf16.msra.mxu0 %v5770_v18  ;;  %v2588_v18 = vsub.f32 %v8342_v2, %v2587_v34  ;;  %v8364_v29 = vsub.f32 %v2457_v7, %v8356_v9  ;;  %v2375_v7 = vld [vmem:[#allocation10 + $0x42] sm:$0x1] }
 0x2be   :  { %5773 = vmatprep.subr.bf16.mxu0 %v5772_v54  ;;  %3580 = vmatprep.mubr.f32.mxu1 %v9518_v26  ;;  %v2545_v51 = vand.u32 4294901760, %v2544_v27  ;;  %v2599_v54 = vsub.f32 %v8354_v60, %v2598_v62 }
 0x2bf   :  { %v2589_v11 = vand.u32 4294901760, %v2588_v18  ;;  %v2609_v23 = vand.u32 4294901760, %v8364_v29  ;;  %4058 = vrot.lane.b32.xlu0 %v8191_v30, %s6504_s4 }
 0x2c0   :  { %v2600_v50 = vand.u32 4294901760, %v2599_v54 }
 0x2c1   :  { %5775 = vmatpush3.bf16.msra.mxu0 %v5774_v49  ;;  %v2610_v45 = vsub.f32 %v8364_v29, %v2609_v23 }
 0x2c2   :  { %2464 = vmatprep.subr.mxu0 %v8235_v42 }
 0x2c3   :  { %v2611_v49 = vand.u32 4294901760, %v2610_v45 }
 0x2c4   :  { %2279 = vmatmul.mubr.f32.vlgmr.msra.gmra.mrb[8].mxu0 %v8060_v59  ;;  %v2565_v59 = vand.u32 4294901760, %v8311_v21 }
 0x2c5   :  { %2466 = vmatpush1.msra.mxu0 %v8255_v20  ;;  %2529 = vmatprep.mubr.f32.mxu0 %v9518_v26 }
 0x2c6   :  { %2623 = vmatprep.subr.mxu0 %v2622_v24  ;;  %v2566_v61 = vsub.f32 %v8311_v21, %v2565_v59 }
 0x2c8   :  { %2535 = vmatmul.mubr.f32.vlgmr.msra.gmra.mrb[10].mxu0 %v2534_v4  ;;  %v2567_v0 = vand.u32 4294901760, %v2566_v61 }
 0x2c9   :  { %2540 = vmatprep.mubr.f32.mxu0 %v9518_v26  ;;  %2629 = vmatpush1.msra.mxu0 %v2628_v3  ;;  %v2416_v3 = vlaneseq }
 0x2ca   :  { %2751 = vmatprep.subr.mxu0 %v8252_v10 }
 0x2cb   :  { %v2417_v52 = vshrl.u32 %v2416_v3, 7 }
 0x2cc   :  { %2546 = vmatmul.mubr.f32.gmra.mrb[12].mxu0 %v2545_v51 }
 0x2cd   :  { %2551 = vmatprep.mubr.f32.mxu0 %v9518_v26  ;;  %v8473_v55 = vsub.s32 0, %v2417_v52 }
 0x2d0   :  { %2557 = vmatmul.mubr.f32.gmra.mrb[14].mxu0 %v2556_v17 }
 0x2d1   :  { %2562 = vmatprep.mubr.f32.mxu0 %v9518_v26 }
 0x2d4   :  { %2568 = vmatmul.mubr.f32.gmra.mrb[16].mxu0 %v2567_v0  ;;  %v6503_v0 = vmov 0  }
 0x2d5   :  { %2573 = vmatprep.mubr.f32.mxu0 %v9518_v26  ;;  %6254 = vset.pattern.permute.xlu1 %v6503_v0 }
 0x2d6   :  { %3337 = vperm.xlu1 %6254, %v2375_v7  }
 0x2d8   :  { %2579 = vmatmul.mubr.f32.gmra.mrb[18].mxu0 %v2578_v44 }
 0x2d9   :  { %2584 = vmatprep.mubr.f32.mxu0 %v9518_v26 }
 0x2da   :  { %4048 = vrot.lane.b32.xlu1 %v8084_v19, %s6504_s4 }
 0x2dc   :  { %2590 = vmatmul.mubr.f32.gmra.mrb[20].mxu0 %v2589_v11 }
 0x2dd   :  { %2595 = vmatprep.mubr.f32.mxu0 %v9518_v26 }
 0x2de   :  { %4052 = vrot.lane.b32.xlu1 %v8141_v47, %s6504_s4 }
 0x2e0   :  { %2601 = vmatmul.mubr.f32.gmra.mrb[22].mxu0 %v2600_v50 }
 0x2e1   :  { %2606 = vmatprep.mubr.f32.mxu0 %v9518_v26 }
 0x2e2   :  { %4056 = vrot.lane.b32.xlu1 %v8187_v14, %s6504_s4 }
 0x2e4   :  { %2612 = vmatmul.mubr.f32.gmra.mrb[24].mxu0 %v2611_v49 }
 0x2e5   :  { %2692 = vmatprep.mubr.f32.mxu0 %v9518_v26 }
 0x2e6   :  { %4044 = vrot.lane.b32.xlu1 %v8097_v5, %s6504_s4 }
 0x2e8   :  { %2694 = vmatmul.mubr.f32.vlgmr.msra.gmra.mrb[10].mxu0 %v8238_v6 }
 0x2e9   :  { %2699 = vmatprep.mubr.f32.mxu0 %v9518_v26  ;;  %2754 = vmatpush1.msra.mxu0 %v8267_v1 }
 0x2ea   :  { %2883 = vmatprep.subr.mxu0 %v8235_v42 }
 0x2ec   :  { %2701 = vmatmul.mubr.f32.gmra.mrb[12].mxu0 %v8260_v33 }
 0x2ed   :  { %2706 = vmatprep.mubr.f32.mxu0 %v9518_v26 }
 0x2f0   :  { %2708 = vmatmul.mubr.f32.gmra.mrb[14].mxu0 %v8281_v37 }
 0x2f1   :  { %2713 = vmatprep.mubr.f32.mxu0 %v9518_v26 }
 0x2f4   :  { %2715 = vmatmul.mubr.f32.gmra.mrb[16].mxu0 %v8295_v31 }
 0x2f5   :  { %2720 = vmatprep.mubr.f32.mxu0 %v9518_v26  ;;  %v2379_v51 = vpop.permute.xlu0 %2378 }
 0x2f8   :  { %2722 = vmatmul.mubr.f32.gmra.mrb[18].mxu0 %v8318_v48 }
 0x2f9   :  { %2727 = vmatprep.mubr.f32.mxu0 %v9518_v26 }
 0x2fa   :  { %v3273_v17 = vpop.permute.xlu0 %3272 }
 0x2fc   :  { %2729 = vmatmul.mubr.f32.gmra.mrb[20].mxu0 %v8331_v32 }
 0x2fd   :  { %2734 = vmatprep.mubr.f32.mxu0 %v9518_v26 }
 0x300   :  { %2736 = vmatmul.mubr.f32.gmra.mrb[22].mxu0 %v8344_v43  ;;  %v2384_v46 = vpop.permute.xlu0 %2383 }
 0x301   :  { %2741 = vmatprep.mubr.f32.mxu0 %v9518_v26 }
 0x304   :  { %2743 = vmatmul.mubr.f32.gmra.mrb[24].mxu0 %v8356_v9 }
 0x305   :  { %2817 = vmatprep.mubr.f32.mxu0 %v9518_v26 }
 0x308   :  { %2820 = vmatmul.mubr.f32.vlgmr.msra.gmra.mrb[10].mxu0 %v8258_v35 }
 0x309   :  { %2825 = vmatprep.mubr.f32.mxu0 %v9518_v26  ;;  %2885 = vmatpush1.msra.mxu0 %v8255_v20 }
 0x30a   :  { %3024 = vmatprep.subr.mxu0 %v2620_v56 }
 0x30c   :  { %2828 = vmatmul.mubr.f32.gmra.mrb[12].mxu0 %v8279_v16 }
 0x30d   :  { %2833 = vmatprep.mubr.f32.mxu0 %v9518_v26 }
 0x310   :  { %2836 = vmatmul.mubr.f32.gmra.mrb[14].mxu0 %v8302_v58 }
 0x311   :  { %2841 = vmatprep.mubr.f32.mxu0 %v9518_v26 }
 0x314   :  { %2844 = vmatmul.mubr.f32.gmra.mrb[16].mxu0 %v8311_v21 }
 0x315   :  { %2849 = vmatprep.mubr.f32.mxu0 %v9518_v26 }
 0x318   :  { %2852 = vmatmul.mubr.f32.gmra.mrb[18].mxu0 %v8329_v39 }
 0x319   :  { %2857 = vmatprep.mubr.f32.mxu0 %v9518_v26 }
 0x31c   :  { %2860 = vmatmul.mubr.f32.gmra.mrb[20].mxu0 %v8342_v2 }
 0x31d   :  { %2865 = vmatprep.mubr.f32.mxu0 %v9518_v26 }
 0x31e   :  { %v2404_v45 = vpop.permute.xlu0 %2403 }
 0x320   :  { %2868 = vmatmul.mubr.f32.gmra.mrb[22].mxu0 %v8354_v60 }
 0x321   :  { %2873 = vmatprep.mubr.f32.mxu0 %v9518_v26 }
 0x322   :  { %v2409_v38 = vpop.permute.xlu0 %2408 }
 0x324   :  { %2876 = vmatmul.mubr.f32.gmra.mrb[24].mxu0 %v8364_v29 }
 0x325   :  { %2948 = vmatprep.mubr.f32.mxu0 %v9518_v26 }
 0x328   :  { %2952 = vmatmul.mubr.f32.vlgmr.msra.gmra.mrb[10].mxu0 %v2532_v8 }
 0x329   :  { %2957 = vmatprep.mubr.f32.mxu0 %v9518_v26  ;;  %3028 = vmatpush1.msra.mxu0 %v2626_v53 }
 0x32a   :  { %3149 = vmatprep.subr.mxu0 %v8235_v42 }
 0x32c   :  { %2961 = vmatmul.mubr.f32.gmra.mrb[12].mxu0 %v2543_v63 }
 0x32d   :  { %2966 = vmatprep.mubr.f32.mxu0 %v9518_v26 }
 0x330   :  { %2970 = vmatmul.mubr.f32.gmra.mrb[14].mxu0 %v2554_v13  ;;  %v2389_v13 = vpop.permute.xlu1 %2388 }
 0x331   :  { %2975 = vmatprep.mubr.f32.mxu0 %v9518_v26 }
 0x334   :  { %2979 = vmatmul.mubr.f32.gmra.mrb[16].mxu0 %v2565_v59  ;;  %v4942_v59 = vld [vmem:[#allocation10 + $0x40] ss:$0 sm:$0xff] }
 0x335   :  { %2984 = vmatprep.mubr.f32.mxu0 %v9518_v26 }
 0x338   :  { %2988 = vmatmul.mubr.f32.gmra.mrb[18].mxu0 %v2576_v12 }
 0x339   :  { %2993 = vmatprep.mubr.f32.mxu0 %v9518_v26 }
 0x33c   :  { %2997 = vmatmul.mubr.f32.gmra.mrb[20].mxu0 %v2587_v34 }
 0x33d   :  { %3002 = vmatprep.mubr.f32.mxu0 %v9518_v26 }
 0x340   :  { %3006 = vmatmul.mubr.f32.gmra.mrb[22].mxu0 %v2598_v62 }
 0x341   :  { %3011 = vmatprep.mubr.f32.mxu0 %v9518_v26 }
 0x344   :  { %3015 = vmatmul.mubr.f32.gmra.mrb[24].mxu0 %v2609_v23 }
 0x345   :  { %3091 = vmatprep.mubr.f32.mxu0 %v9518_v26 }
 0x348   :  { %3093 = vmatmul.mubr.f32.vlgmr.msra.gmra.mrb[10].mxu0 %v8238_v6 }
 0x349   :  { %3098 = vmatprep.mubr.f32.mxu0 %v9518_v26  ;;  %3151 = vmatpush1.msra.mxu0 %v8255_v20 }
 0x34c   :  { %3100 = vmatmul.mubr.f32.gmra.mrb[12].mxu0 %v8260_v33 }
 0x34d   :  { %3105 = vmatprep.mubr.f32.mxu0 %v9518_v26 }
 0x34f   :  { %v5089_v42 = vpop.f32.mrb[2].mxu1 }
 0x350   :  { %3107 = vmatmul.mubr.f32.gmra.mrb[14].mxu0 %v8281_v37  ;;  %v5090_v10 = vpop.f32.mrb[3].mxu1 }
 0x351   :  { %v5091_v35 = vadd.f32 %v5090_v10, %v5089_v42  ;;  %3112 = vmatprep.mubr.f32.mxu0 %v9518_v26 }
 0x354   :  { %3114 = vmatmul.mubr.f32.gmra.mrb[16].mxu0 %v8295_v31 }
 0x355   :  { %3119 = vmatprep.mubr.f32.mxu0 %v9518_v26 }
 0x357   :  { %v5054_v1 = vpop.f32.mrb[4].mxu0 }
 0x358   :  { %3121 = vmatmul.mubr.f32.gmra.mrb[18].mxu0 %v8318_v48  ;;  %v5055_v56 = vpop.f32.mrb[5].mxu0 }
 0x359   :  { %v5056_v20 = vadd.f32 %v5055_v56, %v5054_v1  ;;  %3126 = vmatprep.mubr.f32.mxu0 %v9518_v26 }
 0x35b   :  { %v1963_v8 = vadd.f32 %v5091_v35, %v5056_v20 }
 0x35c   :  { %3128 = vmatmul.mubr.f32.gmra.mrb[20].mxu0 %v8331_v32 }
 0x35d   :  { %3133 = vmatprep.mubr.f32.mxu0 %v9518_v26 }
 0x360   :  { %3135 = vmatmul.mubr.f32.gmra.mrb[22].mxu0 %v8344_v43 }
 0x361   :  { %3140 = vmatprep.mubr.f32.mxu0 %v9518_v26 }
 0x364   :  { %3142 = vmatmul.mubr.f32.gmra.mrb[24].mxu0 %v8356_v9 }
 0x365   :  { %3214 = vmatprep.mubr.f32.mxu0 %v9518_v26 }
 0x368   :  { %3216 = vmatmul.mubr.f32.vlgmr.msra.gmra.mrb[10].mxu0 %v8238_v6 }
 0x369   :  { %3221 = vmatprep.mubr.f32.mxu0 %v9518_v26 }
 0x36c   :  { %3223 = vmatmul.mubr.f32.gmra.mrb[12].mxu0 %v8260_v33 }
 0x36d   :  { %3228 = vmatprep.mubr.f32.mxu0 %v9518_v26 }
 0x36f   :  { %v5159_v16 = vpop.f32.mrb[4].mxu1 }
 0x370   :  { %v5160_v53 = vpop.f32.mrb[5].mxu1  ;;  %3230 = vmatmul.mubr.f32.gmra.mrb[14].mxu0 %v8281_v37 }
 0x371   :  { %v5161_v15 = vadd.f32 %v5160_v53, %v5159_v16  ;;  %3235 = vmatprep.mubr.f32.mxu0 %v9518_v26 }
 0x374   :  { %3237 = vmatmul.mubr.f32.gmra.mrb[16].mxu0 %v8295_v31 }
 0x375   :  { %3242 = vmatprep.mubr.f32.mxu0 %v9518_v26 }
 0x377   :  { %v5124_v36 = vpop.f32.mrb[6].mxu0 }
 0x378   :  { %v5125_v63 = vpop.f32.mrb[7].mxu0  ;;  %3244 = vmatmul.mubr.f32.gmra.mrb[18].mxu0 %v8318_v48  ;;  %v8471_v48 = vpop.permute.xlu1 %2393 }
 0x379   :  { %v5126_v6 = vadd.f32 %v5125_v63, %v5124_v36  ;;  %3249 = vmatprep.mubr.f32.mxu0 %v9518_v26 }
 0x37b   :  { %v2069_v33 = vadd.f32 %v5126_v6, %v1963_v8  ;;  %v2374_v8 = vld [vmem:[#allocation10 + $0x41] sm:$0x1] }
 0x37c   :  { %3251 = vmatmul.mubr.f32.gmra.mrb[20].mxu0 %v8331_v32  ;;  %v3277_v39 = vpop.permute.xlu1 %3276  ;;  %v3342_v47 = vsel %vm3340_vm7, %v2374_v8, 0 }
 0x37d   :  { %3256 = vmatprep.mubr.f32.mxu0 %v9518_v26  ;;  %v2145_v37 = vadd.f32 %v5161_v15, %v2069_v33 }
 0x380   :  { %3258 = vmatmul.mubr.f32.gmra.mrb[22].mxu0 %v8344_v43  ;;  %v8475_v12 = vpop.permute.xlu1 %2398 }
 0x381   :  { %3263 = vmatprep.mubr.f32.mxu0 %v9518_v26 }
 0x384   :  { %3265 = vmatmul.mubr.f32.gmra.mrb[24].mxu0 %v8356_v9  ;;  %v3281_v60 = vpop.permute.xlu1 %3280 }
 0x385   :  { %3424 = vmatprep.mubr.f32.mxu0 %v9518_v26 }
 0x388   :  { %v3285_v10 = vpop.permute.xlu1 %3284 }
 0x38c   :  { %v2414_v6 = vpop.permute.xlu1 %2413 }
 0x390   :  { %v5229_v31 = vpop.f32.mrb[6].mxu1  ;;  %v3293_v5 = vpop.permute.xlu1 %3292 }
 0x391   :  { %v5230_v58 = vpop.f32.mrb[7].mxu1 }
 0x392   :  { %v5231_v41 = vadd.f32 %v5230_v58, %v5229_v31 }
 0x397   :  { %v5194_v40 = vpop.f32.mrb[8].mxu0 }
 0x398   :  { %v5195_v24 = vpop.f32.mrb[9].mxu0 }
 0x399   :  { %v5196_v21 = vadd.f32 %v5195_v24, %v5194_v40  ;;  %v8508_v24 = vand.u32 4294901760, %v3342_v47 }
 0x39b   :  { %v2281_v4 = vadd.f32 %v5196_v21, %v2145_v37 }
 0x39d   :  { %v2353_v27 = vadd.f32 %v5231_v41, %v2281_v4 }
 0x39f   :  { %v2356_v22 = vmul.f32 0.16666667, %v2353_v27 }
 0x3a1   :  { %v2361_v32 = vsub.f32 %v2356_v22, %v4942_v59 }
 0x3a3   :  { %v2363_v61 = vrot.slane %v2361_v32, 1  ;;  %v8478_v2 = vrot.slane %v2361_v32, %v8473_v55 }
 0x3a5   :  { %v8481_v43 = vrot.slane %v2363_v61, %v8473_v55  ;;  %v2424_v34 = vmul.f32 %v8478_v2, %v2379_v51  ;;  %v2426_v11 = vmul.f32 %v8478_v2, %v2384_v46  ;;  %v2428_v1 = vmul.f32 %v8478_v2, %v2389_v13 }
 0x3a6   :  { %v2430_v63 = vmul.f32 %v8478_v2, %v8471_v48  ;;  %v2434_v30 = vmul.f32 %v8478_v2, %v2404_v45  ;;  %v8511_v4 = vmul.f32 %v8478_v2, %v2414_v6  ;;  %v2436_v14 = vmul.f32 %v8478_v2, %v2409_v38 }
 0x3a7   :  { %v2425_v44 = vmul.f32 %v8481_v43, %v2379_v51  ;;  %v2427_v28 = vmul.f32 %v8481_v43, %v2384_v46  ;;  %v2429_v20 = vmul.f32 %v8481_v43, %v2389_v13  ;;  %v2431_v31 = vmul.f32 %v8481_v43, %v8471_v48  ;;  %v3289_v51 = vpop.permute.xlu0 %3288 }
 0x3a8   :  { %v2432_v13 = vmul.f32 %v8478_v2, %v8475_v12  ;;  %v2433_v59 = vmul.f32 %v8481_v43, %v8475_v12  ;;  %v2435_v32 = vmul.f32 %v8481_v43, %v2404_v45  ;;  %v2439_v12 = vmul.f32 %v8481_v43, %v2414_v6 }
 0x43b   :  { %v3217_v9 = vpop.f32.mrb[10].mxu0 }
 0x43c   :  { %v5908_v18 = vadd.f32 %v3217_v9, %v2424_v34  ;;  %v3219_v62 = vpop.f32.mrb[11].mxu0 }
 0x43d   :  { %v5909_v29 = vadd.f32 %v3219_v62, %v2425_v44 }
 0x43e   :  { %v3303_v54 = vadd.f32 %v5908_v18, %v3273_v17 }
 0x43f   :  { %v3304_v23 = vadd.f32 %v5909_v29, %v3273_v17  ;;  %v3224_v50 = vpop.f32.mrb[12].mxu0 }
 0x440   :  { %6298 = vtanh.f32 %v3303_v54  ;;  %v5910_v49 = vadd.f32 %v3224_v50, %v2426_v11  ;;  %v3226_v42 = vpop.f32.mrb[13].mxu0 }
 0x441   :  { %6300 = vtanh.f32 %v3304_v23  ;;  %v5911_v35 = vadd.f32 %v3226_v42, %v2427_v28 }
 0x442   :  { %v3305_v57 = vadd.f32 %v5910_v49, %v3277_v39 }
 0x443   :  { %v3306_v19 = vadd.f32 %v5911_v35, %v3277_v39  ;;  %v3231_v56 = vpop.f32.mrb[14].mxu0  ;;  %v8521_v39 = vsub.f32 %v3342_v47, %v8508_v24 }
 0x444   :  { %6302 = vtanh.f32 %v3305_v57  ;;  %v5912_v16 = vadd.f32 %v3231_v56, %v2428_v1  ;;  %v3233_v53 = vpop.f32.mrb[15].mxu0 }
 0x445   :  { %6304 = vtanh.f32 %v3306_v19  ;;  %v5913_v15 = vadd.f32 %v3233_v53, %v2429_v20  ;;  %v3427_v46 = vand.u32 4294901760, %v8521_v39  ;;  %v3297_v53 = vpop.permute.xlu1 %3296 }
 0x446   :  { %v3307_v36 = vadd.f32 %v5912_v16, %v3281_v60 }
 0x447   :  { %v3308_v33 = vadd.f32 %v5913_v15, %v3281_v60  ;;  %v3238_v37 = vpop.f32.mrb[16].mxu0  ;;  %v2437_v60 = vmul.f32 %v8481_v43, %v2409_v38  ;;  %v8535_v28 = vsub.f32 %v8521_v39, %v3427_v46 }
 0x448   :  { %6306 = vtanh.f32 %v3307_v36  ;;  %v5914_v58 = vadd.f32 %v3238_v37, %v2430_v63  ;;  %v3240_v41 = vpop.f32.mrb[17].mxu0 }
 0x449   :  { %6308 = vtanh.f32 %v3308_v33  ;;  %v5915_v40 = vadd.f32 %v3240_v41, %v2431_v31 }
 0x44a   :  { %v6299_v21 = vpop.eup %6298  ;;  %v3309_v27 = vadd.f32 %v5914_v58, %v3285_v10 }
 0x44b   :  { %v6301_v48 = vpop.eup %6300  ;;  %v3310_v3 = vadd.f32 %v5915_v40, %v3285_v10  ;;  %v3245_v22 = vpop.f32.mrb[18].mxu0  ;;  %v3346_v52 = vand.u32 4294901760, %v6299_v21 }
 0x44c   :  { %6310 = vtanh.f32 %v3309_v27  ;;  %v5916_v61 = vadd.f32 %v3245_v22, %v2432_v13  ;;  %v3247_v17 = vpop.f32.mrb[19].mxu0  ;;  %v3344_v2 = vand.u32 4294901760, %v6301_v48 }
 0x44d   :  { %6312 = vtanh.f32 %v3310_v3  ;;  %v5917_v7 = vadd.f32 %v3247_v17, %v2433_v59  ;;  %v8524_v0 = vsub.f32 %v6299_v21, %v3346_v52  ;;  %v3301_v17 = vpop.permute.xlu0 %3300 }
 0x44e   :  { %v6303_v34 = vpop.eup %6302  ;;  %v3311_v9 = vadd.f32 %v5916_v61, %v3289_v51  ;;  %v8529_v44 = vsub.f32 %v6301_v48, %v3344_v2 }
 0x44f   :  { %v6305_v18 = vpop.eup %6304  ;;  %v3312_v62 = vadd.f32 %v5917_v7, %v3289_v51  ;;  %v3252_v29 = vpop.f32.mrb[20].mxu0  ;;  %v3350_v11 = vand.u32 4294901760, %v6303_v34  ;;  %v3444_v54 = vand.u32 4294901760, %v8524_v0 }
 0x450   :  { %6314 = vtanh.f32 %v3311_v9  ;;  %v5918_v23 = vadd.f32 %v3252_v29, %v2434_v30  ;;  %v3254_v50 = vpop.f32.mrb[21].mxu0  ;;  %v3348_v45 = vand.u32 4294901760, %v6305_v18  ;;  %v3438_v43 = vand.u32 4294901760, %v8529_v44 }
 0x451   :  { %6316 = vtanh.f32 %v3312_v62  ;;  %v5919_v49 = vadd.f32 %v3254_v50, %v2435_v32  ;;  %v8538_v42 = vpack.c.bf16 %v3350_v11, %v3346_v52  ;;  %v8540_v10 = vsub.f32 %v6303_v34, %v3350_v11 }
 0x452   :  { %v6307_v35 = vpop.eup %6306  ;;  %v3313_v57 = vadd.f32 %v5918_v23, %v3293_v5  ;;  %v8542_v1 = vpack.c.bf16 %v3348_v45, %v3344_v2  ;;  %v8544_v19 = vsub.f32 %v6305_v18, %v3348_v45  ;;  %v3439_v56 = vsub.f32 %v8529_v44, %v3438_v43 }
 0x453   :  { %v6309_v20 = vpop.eup %6308  ;;  %v3314_v8 = vadd.f32 %v5919_v49, %v3293_v5  ;;  %v3259_v16 = vpop.f32.mrb[22].mxu0  ;;  %v3354_v15 = vand.u32 4294901760, %v6307_v35  ;;  %v3445_v38 = vsub.f32 %v8524_v0, %v3444_v54  ;;  %v3456_v36 = vand.u32 4294901760, %v8540_v10 }
 0x454   :  { %6318 = vtanh.f32 %v3313_v57  ;;  %v5920_v63 = vadd.f32 %v3259_v16, %v2436_v14  ;;  %v3261_v47 = vpop.f32.mrb[23].mxu0  ;;  %5809 = vmatprep.subr.bf16.mxu0 %v8542_v1  ;;  %v3352_v6 = vand.u32 4294901760, %v6309_v20  ;;  %v3440_v33 = vand.u32 4294901760, %v3439_v56 }
 0x455   :  { %6320 = vtanh.f32 %v3314_v8  ;;  %v5921_v37 = vadd.f32 %v3261_v47, %v2437_v60  ;;  %5811 = vmatpush1.bf16.msra.mxu0 %v8538_v42  ;;  %v3450_v31 = vand.u32 4294901760, %v8544_v19  ;;  %v8556_v58 = vsub.f32 %v6307_v35, %v3354_v15 }
 0x456   :  { %v6311_v41 = vpop.eup %6310  ;;  %v3315_v30 = vadd.f32 %v5920_v63, %v3297_v53  ;;  %v8558_v40 = vsub.f32 %v6309_v20, %v3352_v6  ;;  %v3446_v21 = vand.u32 4294901760, %v3445_v38  ;;  %v3457_v14 = vsub.f32 %v8540_v10, %v3456_v36 }
 0x457   :  { %v6313_v27 = vpop.eup %6312  ;;  %v3316_v13 = vadd.f32 %v5921_v37, %v3297_v53  ;;  %v3266_v48 = vpop.f32.mrb[24].mxu0  ;;  %v3451_v3 = vsub.f32 %v8544_v19, %v3450_v31  ;;  %v3358_v22 = vand.u32 4294901760, %v6311_v41  ;;  %v3468_v59 = vand.u32 4294901760, %v8556_v58 }
 0x458   :  { %6322 = vtanh.f32 %v3315_v30  ;;  %v5922_v51 = vadd.f32 %v3266_v48, %v8511_v4  ;;  %v3268_v52 = vpop.f32.mrb[25].mxu0  ;;  %v3356_v32 = vand.u32 4294901760, %v6313_v27  ;;  %v3458_v61 = vand.u32 4294901760, %v3457_v14 }
 0x459   :  { %6324 = vtanh.f32 %v3316_v13  ;;  %v5923_v2 = vadd.f32 %v3268_v52, %v2439_v12  ;;  %v3452_v7 = vand.u32 4294901760, %v3451_v3  ;;  %v8568_v5 = vpack.c.bf16 %v3358_v22, %v3354_v15 }
 0x45a   :  { %v6315_v34 = vpop.eup %6314  ;;  %v3317_v60 = vadd.f32 %v5922_v51, %v3301_v17  ;;  %v8570_v9 = vpack.c.bf16 %v3356_v32, %v3352_v6  ;;  %v8572_v18 = vsub.f32 %v6313_v27, %v3356_v32  ;;  %v8574_v62 = vsub.f32 %v6311_v41, %v3358_v22 }
 0x45b   :  { %v6317_v29 = vpop.eup %6316  ;;  %v3318_v11 = vadd.f32 %v5923_v2, %v3301_v17  ;;  %v5824_v4 = vpack.c.bf16 %v3452_v7, %v3440_v33  ;;  %v5826_v23 = vpack.c.bf16 %v3458_v61, %v3446_v21  ;;  %v3462_v50 = vand.u32 4294901760, %v8558_v40 }
 0x45c   :  { %6326 = vtanh.f32 %v3317_v60  ;;  %5813 = vmatprep.subr.bf16.mxu0 %v8570_v9  ;;  %v3360_v12 = vand.u32 4294901760, %v6317_v29  ;;  %v3474_v45 = vand.u32 4294901760, %v8572_v18  ;;  %v3362_v49 = vand.u32 4294901760, %v6315_v34 }
 0x45d   :  { %6328 = vtanh.f32 %v3318_v11  ;;  %5825 = vmatprep.subr.bf16.mxu1 %v5824_v4  ;;  %5815 = vmatpush1.bf16.msra.mxu0 %v8568_v5  ;;  %v3463_v35 = vsub.f32 %v8558_v40, %v3462_v50  ;;  %v3469_v57 = vsub.f32 %v8556_v58, %v3468_v59  ;;  %v3480_v56 = vand.u32 4294901760, %v8574_v62 }
 0x45e   :  { %v6319_v20 = vpop.eup %6318  ;;  %5827 = vmatpush1.bf16.msra.mxu1 %v5826_v23  ;;  %v8587_v8 = vsub.f32 %v6317_v29, %v3360_v12  ;;  %v3475_v16 = vsub.f32 %v8572_v18, %v3474_v45  ;;  %v8592_v53 = vsub.f32 %v6315_v34, %v3362_v49  ;;  %v5840_v15 = vpack.c.bf16 %v8544_v19, %v8529_v44 }
 0x45f   :  { %v6321_v38 = vpop.eup %6320  ;;  %v3464_v63 = vand.u32 4294901760, %v3463_v35  ;;  %v3366_v47 = vand.u32 4294901760, %v6319_v20  ;;  %v3470_v6 = vand.u32 4294901760, %v3469_v57  ;;  %v3481_v33 = vsub.f32 %v8574_v62, %v3480_v56 }
 0x460   :  { %v3364_v37 = vand.u32 4294901760, %v6321_v38  ;;  %v3476_v41 = vand.u32 4294901760, %v3475_v16  ;;  %v3486_v30 = vand.u32 4294901760, %v8587_v8  ;;  %v3492_v21 = vand.u32 4294901760, %v8592_v53 }
 0x461   :  { %v8601_v14 = vpack.c.bf16 %v3366_v47, %v3362_v49  ;;  %v8603_v27 = vsub.f32 %v6319_v20, %v3366_v47  ;;  %v3482_v13 = vand.u32 4294901760, %v3481_v33  ;;  %v5842_v48 = vpack.c.bf16 %v8540_v10, %v8524_v0 }
 0x462   :  { %v6323_v3 = vpop.eup %6322  ;;  %v8607_v22 = vpack.c.bf16 %v3364_v37, %v3360_v12  ;;  %v8609_v51 = vsub.f32 %v6321_v38, %v3364_v37  ;;  %v5828_v52 = vpack.c.bf16 %v3476_v41, %v3464_v63  ;;  %v3487_v32 = vsub.f32 %v8587_v8, %v3486_v30 }
 0x463   :  { %v6325_v61 = vpop.eup %6324  ;;  %v5830_v17 = vpack.c.bf16 %v3482_v13, %v3470_v6  ;;  %v3370_v2 = vand.u32 4294901760, %v6323_v3  ;;  %v3493_v7 = vsub.f32 %v8592_v53, %v3492_v21  ;;  %v3504_v34 = vand.u32 4294901760, %v8603_v27 }
 0x464   :  { %5817 = vmatprep.subr.bf16.mxu0 %v8607_v22  ;;  %5829 = vmatprep.subr.bf16.mxu1 %v5828_v52  ;;  %v3368_v60 = vand.u32 4294901760, %v6325_v61  ;;  %v3488_v29 = vand.u32 4294901760, %v3487_v32  ;;  %v3498_v11 = vand.u32 4294901760, %v8609_v51  ;;  %v5844_v4 = vpack.c.bf16 %v8572_v18, %v8558_v40 }
 0x465   :  { %5819 = vmatpush1.bf16.msra.mxu0 %v8601_v14  ;;  %5831 = vmatpush1.bf16.msra.mxu1 %v5830_v17  ;;  %v3515_v23 = vsub.f32 %v6323_v3, %v3370_v2  ;;  %v3494_v12 = vand.u32 4294901760, %v3493_v7  ;;  %v3505_v49 = vsub.f32 %v8603_v27, %v3504_v34  ;;  %v5846_v35 = vpack.c.bf16 %v8574_v62, %v8556_v58 }
 0x466   :  { %v6327_v57 = vpop.eup %6326  ;;  %v3509_v20 = vsub.f32 %v6325_v61, %v3368_v60  ;;  %v3499_v16 = vsub.f32 %v8609_v51, %v3498_v11  ;;  %v5848_v38 = vpack.c.bf16 %v8609_v51, %v8587_v8  ;;  %v5850_v63 = vpack.c.bf16 %v8603_v27, %v8592_v53 }
 0x467   :  { %v6329_v47 = vpop.eup %6328  ;;  %v3374_v6 = vand.u32 4294901760, %v6327_v57  ;;  %v3506_v33 = vand.u32 4294901760, %v3505_v49  ;;  %v3516_v37 = vand.u32 4294901760, %v3515_v23  ;;  %v5872_v41 = vpack.c.bf16 %v3450_v31, %v3438_v43 }
 0x468   :  { %v3372_v13 = vand.u32 4294901760, %v6329_v47  ;;  %v3500_v3 = vand.u32 4294901760, %v3499_v16  ;;  %v3510_v52 = vand.u32 4294901760, %v3509_v20  ;;  %v5874_v8 = vpack.c.bf16 %v3456_v36, %v3444_v54 }
 0x469   :  { %v8635_v51 = vpack.c.bf16 %v3374_v6, %v3370_v2  ;;  %v3527_v53 = vsub.f32 %v6327_v57, %v3374_v6  ;;  %v5834_v27 = vpack.c.bf16 %v3506_v33, %v3494_v12  ;;  %v3429_v7 = vand.u32 4294901760, %v8535_v28 }
 0x46a   :  { %v8637_v32 = vpack.c.bf16 %v3372_v13, %v3368_v60  ;;  %v3521_v61 = vsub.f32 %v6329_v47, %v3372_v13  ;;  %v5832_v17 = vpack.c.bf16 %v3500_v3, %v3488_v29  ;;  %v3517_v49 = vsub.f32 %v3515_v23, %v3516_v37 }
 0x46b   :  { %v3528_v43 = vand.u32 4294901760, %v3527_v53  ;;  %v5854_v31 = vpack.c.bf16 %v3527_v53, %v3515_v23  ;;  %v5876_v16 = vpack.c.bf16 %v3474_v45, %v3462_v50  ;;  %v3511_v54 = vsub.f32 %v3509_v20, %v3510_v52 }
 0x46c   :  { %5821 = vmatprep.subr.bf16.mxu0 %v8637_v32  ;;  %5833 = vmatprep.subr.bf16.mxu1 %v5832_v17  ;;  %v3522_v36 = vand.u32 4294901760, %v3521_v61  ;;  %v5852_v2 = vpack.c.bf16 %v3521_v61, %v3509_v20  ;;  %v5878_v60 = vpack.c.bf16 %v3480_v56, %v3468_v59  ;;  %v5880_v29 = vpack.c.bf16 %v3498_v11, %v3486_v30 }
 0x46d   :  { %5823 = vmatpush1.bf16.msra.mxu0 %v8635_v51  ;;  %5835 = vmatpush1.bf16.msra.mxu1 %v5834_v27  ;;  %v3529_v28 = vsub.f32 %v3527_v53, %v3528_v43  ;;  %v5882_v40 = vpack.c.bf16 %v3504_v34, %v3492_v21  ;;  %v5886_v50 = vpack.c.bf16 %v3528_v43, %v3516_v37  ;;  %v3518_v45 = vand.u32 4294901760, %v3517_v49  ;;  %v6340_v43 = vld [vmem:[#allocation5] sm:$0x77] }
 0x46e   :  { %v3523_v23 = vsub.f32 %v3521_v61, %v3522_v36  ;;  %v5884_v18 = vpack.c.bf16 %v3522_v36, %v3510_v52  ;;  %v3512_v57 = vand.u32 4294901760, %v3511_v54 }
 0x46f   :  { %v3530_v12 = vand.u32 4294901760, %v3529_v28 }
 0x470   :  { %v3524_v47 = vand.u32 4294901760, %v3523_v23  ;;  %3430 = vmatmul.mubr.f32.vlgmr.msra.gmra.mrb[26].mxu0 %v3429_v7  ;;  %v6341_v23 = vld [vmem:[#allocation10] sm:$0xff] }
 0x471   :  { %v5838_v20 = vpack.c.bf16 %v3530_v12, %v3518_v45  ;;  %4148 = vmatprep.mubr.f32.mxu0 %v9518_v26 }
 0x472   :  { %v5836_v58 = vpack.c.bf16 %v3524_v47, %v3512_v57 }
 0x474   :  { %5837 = vmatprep.subr.bf16.mxu1 %v5836_v58 }
 0x475   :  { %5839 = vmatpush1.bf16.msra.mxu1 %v5838_v20 }
 0x476   :  { %5841 = vmatprep.subr.bf16.mxu1 %v5840_v15 }
 0x478   :  { %3582 = vmatmul.mubr.f32.vlgmr.msra.gmra.mrb[8].mxu1 %v8508_v24 }
 0x479   :  { %5843 = vmatpush1.bf16.msra.mxu1 %v5842_v48  ;;  %3684 = vmatprep.mubr.f32.mxu1 %v9518_v26 }
 0x47a   :  { %5845 = vmatprep.subr.bf16.mxu1 %v5844_v4 }
 0x47d   :  { %5847 = vmatpush1.bf16.msra.mxu1 %v5846_v35 }
 0x47e   :  { %5849 = vmatprep.subr.bf16.mxu1 %v5848_v38 }
 0x481   :  { %5851 = vmatpush1.bf16.msra.mxu1 %v5850_v63 }
 0x482   :  { %5853 = vmatprep.subr.bf16.mxu1 %v5852_v2 }
 0x485   :  { %5855 = vmatpush1.bf16.msra.mxu1 %v5854_v31 }
 0x486   :  { %5857 = vmatprep.subr.bf16.mxu1 %v8542_v1 }
 0x488   :  { %3687 = vmatmul.mubr.f32.vlgmr.msra.gmra.mrb[8].mxu1 %v8521_v39 }
 0x489   :  { %5859 = vmatpush1.bf16.msra.mxu1 %v8538_v42  ;;  %3773 = vmatprep.mubr.f32.mxu1 %v9518_v26 }
 0x48a   :  { %5861 = vmatprep.subr.bf16.mxu1 %v8570_v9 }
 0x48d   :  { %5863 = vmatpush1.bf16.msra.mxu1 %v8568_v5 }
 0x48e   :  { %5865 = vmatprep.subr.bf16.mxu1 %v8607_v22 }
 0x491   :  { %5867 = vmatpush1.bf16.msra.mxu1 %v8601_v14 }
 0x492   :  { %5869 = vmatprep.subr.bf16.mxu1 %v8637_v32 }
 0x495   :  { %5871 = vmatpush1.bf16.msra.mxu1 %v8635_v51 }
 0x496   :  { %5873 = vmatprep.subr.bf16.mxu1 %v5872_v41 }
 0x498   :  { %3777 = vmatmul.mubr.f32.vlgmr.msra.gmra.mrb[8].mxu1 %v3427_v46  ;;  %v3338_v46 = vpop.permute.xlu1 %3337 }
 0x499   :  { %5875 = vmatpush1.bf16.msra.mxu1 %v5874_v8  ;;  %3895 = vmatprep.mubr.f32.mxu1 %v9518_v26 }
 0x49a   :  { %5877 = vmatprep.subr.bf16.mxu1 %v5876_v16 }
 0x49d   :  { %5879 = vmatpush1.bf16.msra.mxu1 %v5878_v60  ;;  %v6505_v60 = vmov 11  }
 0x49e   :  { %5881 = vmatprep.subr.bf16.mxu1 %v5880_v29  ;;  %6255 = vset.pattern.permute.xlu0 %v6505_v60 }
 0x49f   :  { %6256 = vset.pattern.permute.xlu1 %v6505_v60  ;;  %4013 = vperm.xlu0 %6255, %v6341_v23  }
 0x4a1   :  { %5883 = vmatpush1.bf16.msra.mxu1 %v5882_v40 }
 0x4a2   :  { %5885 = vmatprep.subr.bf16.mxu1 %v5884_v18  ;;  %v6342_v18 = vld [vmem:[#allocation10 + $0x8] sm:$0xff] }
 0x4a3   :  { %4017 = vperm.xlu1 %6256, %v6342_v18  }
 0x4a5   :  { %5887 = vmatpush1.bf16.msra.mxu1 %v5886_v50 }
 0x4a6   :  { %5889 = vmatprep.subr.bf16.mxu1 %v8542_v1 }
 0x4a8   :  { %3897 = vmatmul.mubr.f32.vlgmr.msra.gmra.mrb[8].mxu1 %v8508_v24 }
 0x4a9   :  { %5891 = vmatpush1.bf16.msra.mxu1 %v8538_v42  ;;  %3983 = vmatprep.mubr.f32.mxu1 %v9518_v26 }
 0x4aa   :  { %5893 = vmatprep.subr.bf16.mxu1 %v8570_v9  ;;  %v4049_v9 = vpop.permute.xlu1 %4048 }
 0x4ab   :  { %v4064_v6 = vsel %vm2442_vm6, %v4049_v9, 0  ;;  %v6343_v9 = vld [vmem:[#allocation10 + $0x10] sm:$0xff] }
 0x4ac   :  { %v8697_v13 = vand.u32 4294901760, %v4064_v6  ;;  %4021 = vperm.xlu1 %6256, %v6343_v9  }
 0x4ad   :  { %5895 = vmatpush1.bf16.msra.mxu1 %v8568_v5 }
 0x4ae   :  { %5897 = vmatprep.subr.bf16.mxu1 %v8607_v22  ;;  %v4053_v30 = vpop.permute.xlu1 %4052  ;;  %v8703_v53 = vsub.f32 %v4064_v6, %v8697_v13 }
 0x4af   :  { %v4068_v7 = vsel %vm2442_vm6, %v4053_v30, 0 }
 0x4b0   :  { %v4173_v36 = vand.u32 4294901760, %v8703_v53  ;;  %v8722_v29 = vand.u32 4294901760, %v4068_v7 }
 0x4b1   :  { %5899 = vmatpush1.bf16.msra.mxu1 %v8601_v14  ;;  %v4047_v14 = vpop.permute.xlu0 %4046 }
 0x4b2   :  { %5901 = vmatprep.subr.bf16.mxu1 %v8637_v32  ;;  %v4062_v35 = vsel %vm2442_vm6, %v4047_v14, 0  ;;  %v4174_v47 = vsub.f32 %v8703_v53, %v4173_v36 }
 0x4b3   :  { %v8688_v63 = vand.u32 4294901760, %v4062_v35 }
 0x4b5   :  { %5903 = vmatpush1.bf16.msra.mxu1 %v8635_v51  ;;  %v4051_v33 = vpop.permute.xlu0 %4050  ;;  %v8695_v41 = vsub.f32 %v4062_v35, %v8688_v63 }
 0x4b6   :  { %v4066_v3 = vsel %vm2442_vm6, %v4051_v33, 0  ;;  %v6346_v33 = vld [vmem:[#allocation10 + $0x28] sm:$0xff] }
 0x4b7   :  { %v4162_v51 = vand.u32 4294901760, %v8695_v41  ;;  %v8706_v61 = vand.u32 4294901760, %v4066_v3 }
 0x4b8   :  { %3985 = vmatmul.mubr.f32.vlgmr.msra.gmra.mrb[8].mxu1 %v8508_v24  ;;  %v4057_v24 = vpop.permute.xlu1 %4056 }
 0x4b9   :  { %4159 = vmatprep.mubr.f32.mxu1 %v9518_v26  ;;  %v4055_v49 = vpop.permute.xlu0 %4054  ;;  %v4163_v54 = vsub.f32 %v8695_v41, %v4162_v51 }
 0x4ba   :  { %v4070_v40 = vsel %vm2442_vm6, %v4055_v49, 0 }
 0x4bb   :  { %v8730_v57 = vand.u32 4294901760, %v4070_v40  ;;  %v4164_v58 = vand.u32 4294901760, %v4163_v54 }
 0x4bc   :  { %v4045_v21 = vpop.permute.xlu1 %4044 }
 0x4bd   :  { %v4060_v11 = vsel %vm2442_vm6, %v4045_v21, 0 }
 0x4be   :  { %v8686_v38 = vand.u32 4294901760, %v4060_v11 }
 0x4c0   :  { %v8692_v37 = vsub.f32 %v4060_v11, %v8686_v38 }
 0x4c2   :  { %v4151_v52 = vand.u32 4294901760, %v8692_v37 }
 0x4c4   :  { %v4152_v16 = vsub.f32 %v8692_v37, %v4151_v52 }
 0x4c6   :  { %v4153_v12 = vand.u32 4294901760, %v4152_v16 }
 0x543   :  { %v3431_v39 = vpop.f32.mrb[26].mxu0 }
 0x544   :  { %v3433_v0 = vpop.f32.mrb[27].mxu0  ;;  %v3432_v44 = vadd.f32 %v3431_v39, %v3338_v46 }
 0x545   :  { %v3434_v42 = vadd.f32 %v3433_v0, %v3338_v46  ;;  %v8742_v0 = vsub.f32 %v4068_v7, %v8722_v29  ;;  %v6348_v7 = vld [vmem:[#allocation10 + $0x38] sm:$0xff] }
 0x58b   :  { %v3986_v10 = vpop.f32.mrb[8].mxu1 }
 0x58c   :  { %v5925_v1 = vadd.f32 %v3986_v10, %v3432_v44  ;;  %v3988_v19 = vpop.f32.mrb[9].mxu1 }
 0x58d   :  { %v5927_v59 = vadd.f32 %v3988_v19, %v3434_v42  ;;  %v4072_v42 = vsel %vm2442_vm6, %v4057_v24, 0  ;;  %v8754_v19 = vsub.f32 %v4070_v40, %v8730_v57  ;;  %v6344_v24 = vld [vmem:[#allocation10 + $0x18] sm:$0xff] }
 0x58e   :  { %v3991_v5 = vsub.f32 0.0, %v5925_v1  ;;  %v4059_v1 = vpop.permute.xlu0 %4058  ;;  %4025 = vperm.xlu0 %6255, %v6344_v24  }
 0x58f   :  { %v3992_v62 = vsub.f32 0.0, %v5927_v59  ;;  %v4175_v59 = vand.u32 4294901760, %v4174_v47  ;;  %v4074_v21 = vsel %vm2442_vm6, %v4059_v1, 0 }
 0x590   :  { %v3993_v56 = vmul.f32 1.442695, %v3991_v5  ;;  %v8774_v35 = vand.u32 4294901760, %v4074_v21 }
 0x591   :  { %v3995_v15 = vmul.f32 1.442695, %v3992_v62  ;;  %v4195_v62 = vand.u32 4294901760, %v8742_v0 }
 0x592   :  { %6330 = vpow2.f32 %v3993_v56  ;;  %4033 = vperm.xlu0 %6255, %v6346_v33  }
 0x593   :  { %6332 = vpow2.f32 %v3995_v15  ;;  %v8763_v15 = vand.u32 4294901760, %v4072_v42  ;;  %v4196_v6 = vsub.f32 %v8742_v0, %v4195_v62 }
 0x595   :  { %v8772_v11 = vsub.f32 %v4072_v42, %v8763_v15 }
 0x596   :  { %4041 = vperm.xlu0 %6255, %v6348_v7  }
 0x59c   :  { %v6331_v48 = vpop.eup %6330 }
 0x59d   :  { %v6333_v22 = vpop.eup %6332  ;;  %v3997_v34 = vadd.f32 1.0, %v6331_v48  ;;  %v4206_v48 = vand.u32 4294901760, %v8754_v19 }
 0x59e   :  { %v3998_v4 = vadd.f32 1.0, %v6333_v22 }
 0x59f   :  { %6334 = vrcp.f32 %v3997_v34  ;;  %v6345_v34 = vld [vmem:[#allocation10 + $0x20] sm:$0xff] }
 0x5a0   :  { %6336 = vrcp.f32 %v3998_v4  ;;  %4029 = vperm.xlu1 %6256, %v6345_v34  }
 0x5a9   :  { %v6335_v8 = vpop.eup %6334 }
 0x5aa   :  { %v6337_v27 = vpop.eup %6336  ;;  %v4004_v32 = vrot.slane %v6335_v8, %v8473_v55  ;;  %v4217_v8 = vand.u32 4294901760, %v8772_v11 }
 0x5ab   :  { %v4008_v17 = vrot.slane %v6337_v27, %v8473_v55  ;;  %v8719_v55 = vsub.f32 %v4066_v3, %v8706_v61  ;;  %v6347_v3 = vld [vmem:[#allocation10 + $0x30] sm:$0xff]  ;;  %v8783_v27 = vsub.f32 %v4074_v21, %v8774_v35 }
 0x5ac   :  { %v4010_v31 = vmul.f32 %v6340_v43, %v4004_v32  ;;  %4037 = vperm.xlu1 %6256, %v6347_v3   ;;  %v4197_v32 = vand.u32 4294901760, %v4196_v6 }
 0x5ad   :  { %v4011_v2 = vmul.f32 %v4008_v17, %v8210_v25  ;;  %v4184_v39 = vand.u32 4294901760, %v8719_v55  ;;  %v4207_v17 = vsub.f32 %v8754_v19, %v4206_v48  ;;  %v4228_v49 = vand.u32 4294901760, %v8783_v27 }
 0x5ae   :  { %v4077_v28 = vsel %vm87_vm0, %v4010_v31, 0  ;;  %v4218_v31 = vsub.f32 %v8772_v11, %v4217_v8 }
 0x5af   :  { %v4080_v50 = vsel %vm87_vm0, %v4011_v2, 0  ;;  %v8726_v45 = vand.u32 4294901760, %v4077_v28  ;;  %v4185_v30 = vsub.f32 %v8719_v55, %v4184_v39  ;;  %v4208_v43 = vand.u32 4294901760, %v4207_v17 }
 0x5b0   :  { %v8728_v25 = vand.u32 4294901760, %v4080_v50  ;;  %v4219_v16 = vand.u32 4294901760, %v4218_v31  ;;  %v4229_v54 = vsub.f32 %v8783_v27, %v4228_v49 }
 0x5b1   :  { %v8736_v20 = vsub.f32 %v4077_v28, %v8726_v45  ;;  %v4186_v4 = vand.u32 4294901760, %v4185_v30 }
 0x5b2   :  { %4083 = vmatprep.subr.mxu0 %v8728_v25  ;;  %5904 = vmatprep.subr.mxu1 %v8728_v25  ;;  %v8745_v46 = vsub.f32 %v4080_v50, %v8728_v25  ;;  %v4230_v2 = vand.u32 4294901760, %v4229_v54 }
 0x5b3   :  { %4085 = vmatpush1.msra.mxu0 %v8726_v45  ;;  %5905 = vmatpush1.msra.mxu1 %v8726_v45  ;;  %v4245_v44 = vand.u32 4294901760, %v8736_v20 }
 0x5b4   :  { %4165 = vmatmul.mubr.f32.vlgmr.msra.gmra.mrb[10].mxu1 %v4164_v58  ;;  %v4239_v10 = vand.u32 4294901760, %v8745_v46  ;;  %4154 = vmatmul.mubr.f32.vlgmr.msra.gmra.mrb[28].mxu0 %v4153_v12 }
 0x5b5   :  { %4170 = vmatprep.mubr.f32.mxu1 %v9518_v26  ;;  %v4246_v5 = vsub.f32 %v8736_v20, %v4245_v44 }
 0x5b6   :  { %v4240_v56 = vsub.f32 %v8745_v46, %v4239_v10 }
 0x5b7   :  { %v4247_v22 = vand.u32 4294901760, %v4246_v5 }
 0x5b8   :  { %4176 = vmatmul.mubr.f32.gmra.mrb[12].mxu1 %v4175_v59  ;;  %v4241_v14 = vand.u32 4294901760, %v4240_v56 }
 0x5b9   :  { %4181 = vmatprep.mubr.f32.mxu1 %v9518_v26 }
 0x5ba   :  { %4242 = vmatprep.subr.mxu1 %v4241_v14 }
 0x5bb   :  { %4248 = vmatpush1.msra.mxu1 %v4247_v22 }
 0x5bc   :  { %4187 = vmatmul.mubr.f32.gmra.mrb[14].mxu1 %v4186_v4  ;;  %4370 = vmatprep.subr.mxu1 %v8745_v46 }
 0x5bd   :  { %4192 = vmatprep.mubr.f32.mxu1 %v9518_v26 }
 0x5c0   :  { %4198 = vmatmul.mubr.f32.gmra.mrb[16].mxu1 %v4197_v32 }
 0x5c1   :  { %4203 = vmatprep.mubr.f32.mxu1 %v9518_v26 }
 0x5c4   :  { %4209 = vmatmul.mubr.f32.gmra.mrb[18].mxu1 %v4208_v43 }
 0x5c5   :  { %4214 = vmatprep.mubr.f32.mxu1 %v9518_v26 }
 0x5c8   :  { %4220 = vmatmul.mubr.f32.gmra.mrb[20].mxu1 %v4219_v16 }
 0x5c9   :  { %4225 = vmatprep.mubr.f32.mxu1 %v9518_v26 }
 0x5cc   :  { %4231 = vmatmul.mubr.f32.gmra.mrb[22].mxu1 %v4230_v2 }
 0x5cd   :  { %4311 = vmatprep.mubr.f32.mxu1 %v9518_v26 }
 0x5d0   :  { %4313 = vmatmul.mubr.f32.vlgmr.msra.gmra.mrb[24].mxu1 %v8686_v38 }
 0x5d1   :  { %4373 = vmatpush1.msra.mxu1 %v8736_v20  ;;  %4318 = vmatprep.mubr.f32.mxu1 %v9518_v26 }
 0x5d2   :  { %4502 = vmatprep.subr.mxu1 %v8728_v25 }
 0x5d4   :  { %4320 = vmatmul.mubr.f32.gmra.mrb[10].mxu1 %v8688_v63 }
 0x5d5   :  { %4325 = vmatprep.mubr.f32.mxu1 %v9518_v26 }
 0x5d8   :  { %4327 = vmatmul.mubr.f32.gmra.mrb[12].mxu1 %v8697_v13 }
 0x5d9   :  { %4332 = vmatprep.mubr.f32.mxu1 %v9518_v26 }
 0x5dc   :  { %4334 = vmatmul.mubr.f32.gmra.mrb[14].mxu1 %v8706_v61 }
 0x5dd   :  { %4339 = vmatprep.mubr.f32.mxu1 %v9518_v26 }
 0x5e0   :  { %4341 = vmatmul.mubr.f32.gmra.mrb[16].mxu1 %v8722_v29 }
 0x5e1   :  { %4346 = vmatprep.mubr.f32.mxu1 %v9518_v26 }
 0x5e4   :  { %4348 = vmatmul.mubr.f32.gmra.mrb[18].mxu1 %v8730_v57 }
 0x5e5   :  { %4353 = vmatprep.mubr.f32.mxu1 %v9518_v26 }
 0x5e8   :  { %4355 = vmatmul.mubr.f32.gmra.mrb[20].mxu1 %v8763_v15 }
 0x5e9   :  { %4360 = vmatprep.mubr.f32.mxu1 %v9518_v26 }
 0x5ec   :  { %4362 = vmatmul.mubr.f32.gmra.mrb[22].mxu1 %v8774_v35 }
 0x5ed   :  { %4436 = vmatprep.mubr.f32.mxu1 %v9518_v26 }
 0x5f0   :  { %4439 = vmatmul.mubr.f32.vlgmr.msra.gmra.mrb[24].mxu1 %v8692_v37  ;;  %v4014_v37 = vpop.permute.xlu0 %4013 }
 0x5f1   :  { %4504 = vmatpush1.msra.mxu1 %v8726_v45  ;;  %4444 = vmatprep.mubr.f32.mxu1 %v9518_v26 }
 0x5f2   :  { %4643 = vmatprep.subr.mxu1 %v4239_v10 }
 0x5f4   :  { %4447 = vmatmul.mubr.f32.gmra.mrb[10].mxu1 %v8695_v41 }
 0x5f5   :  { %4452 = vmatprep.mubr.f32.mxu1 %v9518_v26 }
 0x5f8   :  { %4455 = vmatmul.mubr.f32.gmra.mrb[12].mxu1 %v8703_v53 }
 0x5f9   :  { %4460 = vmatprep.mubr.f32.mxu1 %v9518_v26 }
 0x5fc   :  { %4463 = vmatmul.mubr.f32.gmra.mrb[14].mxu1 %v8719_v55 }
 0x5fd   :  { %4468 = vmatprep.mubr.f32.mxu1 %v9518_v26 }
 0x600   :  { %4471 = vmatmul.mubr.f32.gmra.mrb[16].mxu1 %v8742_v0 }
 0x601   :  { %4476 = vmatprep.mubr.f32.mxu1 %v9518_v26 }
 0x604   :  { %4479 = vmatmul.mubr.f32.gmra.mrb[18].mxu1 %v8754_v19 }
 0x605   :  { %4484 = vmatprep.mubr.f32.mxu1 %v9518_v26 }
 0x608   :  { %4487 = vmatmul.mubr.f32.gmra.mrb[20].mxu1 %v8772_v11 }
 0x609   :  { %4492 = vmatprep.mubr.f32.mxu1 %v9518_v26 }
 0x60c   :  { %4495 = vmatmul.mubr.f32.gmra.mrb[22].mxu1 %v8783_v27 }
 0x60d   :  { %4567 = vmatprep.mubr.f32.mxu1 %v9518_v26  ;;  %v4026_v58 = vpop.permute.xlu0 %4025 }
 0x610   :  { %4571 = vmatmul.mubr.f32.vlgmr.msra.gmra.mrb[24].mxu1 %v4151_v52 }
 0x611   :  { %4647 = vmatpush1.msra.mxu1 %v4245_v44  ;;  %4576 = vmatprep.mubr.f32.mxu1 %v9518_v26 }
 0x612   :  { %4768 = vmatprep.subr.mxu1 %v8728_v25 }
 0x614   :  { %4580 = vmatmul.mubr.f32.gmra.mrb[10].mxu1 %v4162_v51  ;;  %v4018_v51 = vpop.permute.xlu1 %4017 }
 0x615   :  { %4585 = vmatprep.mubr.f32.mxu1 %v9518_v26 }
 0x618   :  { %4589 = vmatmul.mubr.f32.gmra.mrb[12].mxu1 %v4173_v36  ;;  %v4022_v23 = vpop.permute.xlu1 %4021 }
 0x619   :  { %4594 = vmatprep.mubr.f32.mxu1 %v9518_v26 }
 0x61c   :  { %4598 = vmatmul.mubr.f32.gmra.mrb[14].mxu1 %v4184_v39 }
 0x61d   :  { %4603 = vmatprep.mubr.f32.mxu1 %v9518_v26 }
 0x61f   :  { %v4030_v1 = vpop.permute.xlu1 %4029 }
 0x620   :  { %4607 = vmatmul.mubr.f32.gmra.mrb[16].mxu1 %v4195_v62 }
 0x621   :  { %4612 = vmatprep.mubr.f32.mxu1 %v9518_v26 }
 0x624   :  { %4616 = vmatmul.mubr.f32.gmra.mrb[18].mxu1 %v4206_v48 }
 0x625   :  { %4621 = vmatprep.mubr.f32.mxu1 %v9518_v26 }
 0x628   :  { %4625 = vmatmul.mubr.f32.gmra.mrb[20].mxu1 %v4217_v8 }
 0x629   :  { %4630 = vmatprep.mubr.f32.mxu1 %v9518_v26 }
 0x62b   :  { %v4038_v34 = vpop.permute.xlu1 %4037 }
 0x62c   :  { %4634 = vmatmul.mubr.f32.gmra.mrb[22].mxu1 %v4228_v49 }
 0x62d   :  { %4710 = vmatprep.mubr.f32.mxu1 %v9518_v26 }
 0x630   :  { %4712 = vmatmul.mubr.f32.vlgmr.msra.gmra.mrb[24].mxu1 %v8686_v38 }
 0x631   :  { %4770 = vmatpush1.msra.mxu1 %v8726_v45  ;;  %4717 = vmatprep.mubr.f32.mxu1 %v9518_v26 }
 0x634   :  { %4719 = vmatmul.mubr.f32.gmra.mrb[10].mxu1 %v8688_v63 }
 0x635   :  { %4724 = vmatprep.mubr.f32.mxu1 %v9518_v26 }
 0x638   :  { %4726 = vmatmul.mubr.f32.gmra.mrb[12].mxu1 %v8697_v13 }
 0x639   :  { %4731 = vmatprep.mubr.f32.mxu1 %v9518_v26 }
 0x63c   :  { %4733 = vmatmul.mubr.f32.gmra.mrb[14].mxu1 %v8706_v61 }
 0x63d   :  { %4738 = vmatprep.mubr.f32.mxu1 %v9518_v26 }
 0x640   :  { %4740 = vmatmul.mubr.f32.gmra.mrb[16].mxu1 %v8722_v29 }
 0x641   :  { %4745 = vmatprep.mubr.f32.mxu1 %v9518_v26 }
 0x644   :  { %4747 = vmatmul.mubr.f32.gmra.mrb[18].mxu1 %v8730_v57 }
 0x645   :  { %4752 = vmatprep.mubr.f32.mxu1 %v9518_v26 }
 0x648   :  { %4754 = vmatmul.mubr.f32.gmra.mrb[20].mxu1 %v8763_v15 }
 0x649   :  { %4759 = vmatprep.mubr.f32.mxu1 %v9518_v26 }
 0x64c   :  { %4761 = vmatmul.mubr.f32.gmra.mrb[22].mxu1 %v8774_v35 }
 0x64d   :  { %4833 = vmatprep.mubr.f32.mxu1 %v9518_v26 }
 0x650   :  { %4835 = vmatmul.mubr.f32.vlgmr.msra.gmra.mrb[24].mxu1 %v8686_v38 }
 0x651   :  { %4840 = vmatprep.mubr.f32.mxu1 %v9518_v26 }
 0x654   :  { %4842 = vmatmul.mubr.f32.gmra.mrb[10].mxu1 %v8688_v63 }
 0x655   :  { %4847 = vmatprep.mubr.f32.mxu1 %v9518_v26 }
 0x658   :  { %4849 = vmatmul.mubr.f32.gmra.mrb[12].mxu1 %v8697_v13 }
 0x659   :  { %4854 = vmatprep.mubr.f32.mxu1 %v9518_v26 }
 0x65c   :  { %4856 = vmatmul.mubr.f32.gmra.mrb[14].mxu1 %v8706_v61 }
 0x65d   :  { %4861 = vmatprep.mubr.f32.mxu1 %v9518_v26 }
 0x660   :  { %4863 = vmatmul.mubr.f32.gmra.mrb[16].mxu1 %v8722_v29 }
 0x661   :  { %4868 = vmatprep.mubr.f32.mxu1 %v9518_v26 }
 0x664   :  { %4870 = vmatmul.mubr.f32.gmra.mrb[18].mxu1 %v8730_v57 }
 0x665   :  { %4875 = vmatprep.mubr.f32.mxu1 %v9518_v26 }
 0x668   :  { %4877 = vmatmul.mubr.f32.gmra.mrb[20].mxu1 %v8763_v15  ;;  %v4034_v15 = vpop.permute.xlu0 %4033 }
 0x669   :  { %4882 = vmatprep.mubr.f32.mxu1 %v9518_v26 }
 0x66c   :  { %4884 = vmatmul.mubr.f32.gmra.mrb[22].mxu1 %v8774_v35  ;;  %v4042_v3 = vpop.permute.xlu0 %4041 }
 0x687   :  { %v4155_v38 = vpop.f32.mrb[28].mxu0 }
 0x688   :  { %v4157_v63 = vpop.f32.mrb[29].mxu0  ;;  %v4156_v41 = vadd.f32 %v4155_v38, %v4014_v37 }
 0x689   :  { %v4158_v13 = vadd.f32 %v4157_v63, %v4014_v37 }
 0x723   :  { %v4836_v52 = vpop.f32.mrb[24].mxu1 }
 0x724   :  { %v5929_v53 = vadd.f32 %v4836_v52, %v4156_v41  ;;  %v4838_v61 = vpop.f32.mrb[25].mxu1 }
 0x725   :  { %v5931_v36 = vadd.f32 %v4838_v61, %v4158_v13 }
 0x726   :  { %v4890_v60 = vmax.f32 %v5929_v53, 0.0 }
 0x727   :  { %v4891_v55 = vmax.f32 %v5931_v36, 0.0  ;;  %v4843_v28 = vpop.f32.mrb[10].mxu1 }
 0x728   :  { %4906 = vst [vmem:[#allocation11] sm:$0xff] %v4890_v60  ;;  %v5932_v29 = vadd.f32 %v4843_v28, %v4018_v51  ;;  %v4845_v40 = vpop.f32.mrb[11].mxu1 }
 0x729   :  { %4915 = vst [vmem:[#allocation11 + $0x40] sm:$0xff] %v4891_v55  ;;  %v5933_v26 = vadd.f32 %v4845_v40, %v4018_v51 }
 0x72a   :  { %v4892_v18 = vmax.f32 %v5932_v29, 0.0 }
 0x72b   :  { %v4893_v50 = vmax.f32 %v5933_v26, 0.0  ;;  %v4850_v45 = vpop.f32.mrb[12].mxu1 }
 0x72c   :  { %4907 = vst [vmem:[#allocation11 + $0x8] sm:$0xff] %v4892_v18  ;;  %v5934_v25 = vadd.f32 %v4850_v45, %v4022_v23  ;;  %v4852_v12 = vpop.f32.mrb[13].mxu1 }
 0x72d   :  { %4916 = vst [vmem:[#allocation11 + $0x48] sm:$0xff] %v4893_v50  ;;  %v5935_v57 = vadd.f32 %v4852_v12, %v4022_v23 }
 0x72e   :  { %v4894_v47 = vmax.f32 %v5934_v25, 0.0 }
 0x72f   :  { %v4895_v20 = vmax.f32 %v5935_v57, 0.0  ;;  %v4857_v39 = vpop.f32.mrb[14].mxu1 }
 0x730   :  { %4908 = vst [vmem:[#allocation11 + $0x10] sm:$0xff] %v4894_v47  ;;  %v5936_v0 = vadd.f32 %v4857_v39, %v4026_v58  ;;  %v4859_v46 = vpop.f32.mrb[15].mxu1 }
 0x731   :  { %4917 = vst [vmem:[#allocation11 + $0x50] sm:$0xff] %v4895_v20  ;;  %v5937_v44 = vadd.f32 %v4859_v46, %v4026_v58 }
 0x732   :  { %v4896_v42 = vmax.f32 %v5936_v0, 0.0 }
 0x733   :  { %v4897_v10 = vmax.f32 %v5937_v44, 0.0  ;;  %v4864_v19 = vpop.f32.mrb[16].mxu1 }
 0x734   :  { %4909 = vst [vmem:[#allocation11 + $0x18] sm:$0xff] %v4896_v42  ;;  %v5938_v59 = vadd.f32 %v4864_v19, %v4030_v1  ;;  %v4866_v5 = vpop.f32.mrb[17].mxu1 }
 0x735   :  { %4918 = vst [vmem:[#allocation11 + $0x58] sm:$0xff] %v4897_v10  ;;  %v5939_v9 = vadd.f32 %v4866_v5, %v4030_v1 }
 0x736   :  { %v4898_v62 = vmax.f32 %v5938_v59, 0.0 }
 0x737   :  { %v4899_v56 = vmax.f32 %v5939_v9, 0.0  ;;  %v4871_v30 = vpop.f32.mrb[18].mxu1 }
 0x738   :  { %4910 = vst [vmem:[#allocation11 + $0x20] sm:$0xff] %v4898_v62  ;;  %v5940_v24 = vadd.f32 %v4871_v30, %v4034_v15  ;;  %v4873_v21 = vpop.f32.mrb[19].mxu1 }
 0x739   :  { %4919 = vst [vmem:[#allocation11 + $0x60] sm:$0xff] %v4899_v56  ;;  %v5941_v14 = vadd.f32 %v4873_v21, %v4034_v15 }
 0x73a   :  { %v4900_v48 = vmax.f32 %v5940_v24, 0.0 }
 0x73b   :  { %v4901_v22 = vmax.f32 %v5941_v14, 0.0  ;;  %v4878_v11 = vpop.f32.mrb[20].mxu1 }
 0x73c   :  { %4911 = vst [vmem:[#allocation11 + $0x28] sm:$0xff] %v4900_v48  ;;  %v5942_v4 = vadd.f32 %v4878_v11, %v4038_v34  ;;  %v4880_v35 = vpop.f32.mrb[21].mxu1 }
 0x73d   :  { %4920 = vst [vmem:[#allocation11 + $0x68] sm:$0xff] %v4901_v22  ;;  %v5943_v6 = vadd.f32 %v4880_v35, %v4038_v34 }
 0x73e   :  { %v4902_v33 = vmax.f32 %v5942_v4, 0.0 }
 0x73f   :  { %v4903_v8 = vmax.f32 %v5943_v6, 0.0  ;;  %v4885_v27 = vpop.f32.mrb[22].mxu1 }
 0x740   :  { %4912 = vst [vmem:[#allocation11 + $0x30] sm:$0xff] %v4902_v33  ;;  %v5944_v32 = vadd.f32 %v4885_v27, %v4042_v3  ;;  %v4887_v17 = vpop.f32.mrb[23].mxu1 }
 0x741   :  { %4921 = vst [vmem:[#allocation11 + $0x70] sm:$0xff] %v4903_v8  ;;  %v5945_v7 = vadd.f32 %v4887_v17, %v4042_v3 }
 0x742   :  { %v4904_v49 = vmax.f32 %v5944_v32, 0.0 }
 0x743   :  { %v4905_v43 = vmax.f32 %v5945_v7, 0.0 }
 0x744   :  { %4913 = vst [vmem:[#allocation11 + $0x38] sm:$0xff] %v4904_v49 }
 0x745   :  { %4922 = vst [vmem:[#allocation11 + $0x78] sm:$0xff] %v4905_v43 }
 0x746   :  { %6470 = shalt.err (!%p6467_p2)
}
 0x747   :  { %s6471_s8 = scalar_lea.hbm %s8915_s5, 2048 }
 0x748   :  { %p6472_p3 = scmp.ne.s32.totalorder %s8915_s5, %s6471_s8  ;;  %p6475_p4 = scmp.lt.u32.totalorder %s6471_s8, %s8915_s5 }
 0x74a   :  { %p6477_p5 = pnand %p6475_p4, %p6472_p3 }
 0x74c   :  { %6480 = shalt.err (!%p6477_p5)
}
 0x74d   :  { %4934 = dma.vmem_to_hbm [thread:$0]  %s4929_s21, 2048, %s8915_s5, [#allocation4], %s6498_s2, %s6498_s2, %s6499_s22  }
 0x74e   :  { %6487 = dma.done.wait [#allocation4], 2048  }
 0x74f   :  { %6488 = vsyncadd [#allocation4], 4294965248 }
 0x750   :  { %4938 = vsyncpa [#allocation3], 1 }
 0x751   :  { %4939 = vsyncpa [#allocation6], 1 }
 0x752   :  { %4940 = vsyncpa [#allocation9], 1 }
 0x753   :  { %4941 = vsyncpa [#allocation4], 1 }

</bundles_post_ra>
